<compile_context>
chip_gen: v5e
topology: v5e:2x2
jax: 0.10.0
libtpu: 0.0.40
codegen_flags: <defaults>
</compile_context>

<pallas_src>
import functools
import math

import jax
import jax.numpy as jnp
from jax.experimental import pallas as pl
from jax.experimental.pallas import tpu as pltpu

EPS = 1e-5  # PyTorch LayerNorm default

# Per-transformer packed weight fields, in kernel-argument order.
_PER_T_FIELDS = (
    "e_wqkv", "e_bqkv", "e_wo", "e_bo", "e_w1", "e_b1", "e_w2", "e_b2", "e_ln",
    "d_wqkv_s", "d_bqkv_s", "d_wo_s", "d_bo_s",
    "d_wqkv_c", "d_bqkv_c", "d_wo_c", "d_bo_c",
    "d_w1", "d_b1", "d_w2", "d_b2", "d_ln",
    "f_ln", "out_w", "out_b",
)


# ------------------------------ fused kernel ---------------------------------
def _fused_kernel(*refs, nhead, n_enc, n_dec, field_names):
    x_ref, emb_w_ref, emb_b_ref = refs[:3]
    w = dict(zip(field_names, refs[3:3 + len(field_names)]))
    o_ref = refs[3 + len(field_names)]

    E = emb_w_ref.shape[1]
    dh = E // nhead
    scale = 1.0 / math.sqrt(dh)

    def ln(x, g, b):
        xf = x.astype(jnp.float32)
        mean = jnp.mean(xf, axis=-1, keepdims=True)
        c = xf - mean
        var = jnp.mean(c * c, axis=-1, keepdims=True)
        return c * jax.lax.rsqrt(var + EPS) * g + b

    def softmax(s):
        m = jnp.max(s, axis=-1, keepdims=True)
        p = jnp.exp(s - m)
        return p * pl.reciprocal(jnp.sum(p, axis=-1, keepdims=True), approx=True)

    def mha(q_in, kv_in, wqkv, bqkv, wo, bo):
        # Single-token self-attention: softmax over one key is exactly 1.0,
        # so the attention output is exactly the V projection.
        if q_in is kv_in and q_in.shape[0] == 1:
            v = jnp.dot(q_in, wqkv[:, 2 * E:],
                        preferred_element_type=jnp.float32) + bqkv[:, 2 * E:]
            return jnp.dot(v, wo, preferred_element_type=jnp.float32) + bo

        if q_in is kv_in:
            qkv = jnp.dot(q_in, wqkv, preferred_element_type=jnp.float32) + bqkv
            q, k, v = qkv[:, :E], qkv[:, E:2 * E], qkv[:, 2 * E:]
        else:
            q = jnp.dot(q_in, wqkv[:, :E],
                        preferred_element_type=jnp.float32) + bqkv[:, :E]
            kv = jnp.dot(kv_in, wqkv[:, E:],
                         preferred_element_type=jnp.float32) + bqkv[:, E:]
            k, v = kv[:, :E], kv[:, E:]

        heads = []
        for h in range(nhead):
            sl = slice(h * dh, (h + 1) * dh)
            s = jnp.dot(q[:, sl], k[:, sl].T,
                        preferred_element_type=jnp.float32) * scale
            heads.append(jnp.dot(softmax(s), v[:, sl],
                                 preferred_element_type=jnp.float32))
        o = heads[0] if nhead == 1 else jnp.concatenate(heads, axis=-1)
        return jnp.dot(o, wo, preferred_element_type=jnp.float32) + bo

    # ---- shared input embedding (recompute per grid step; ~free) ----
    x = x_ref[...].astype(jnp.float32)
    mem = jnp.dot(x, emb_w_ref[...], preferred_element_type=jnp.float32) + emb_b_ref[...]

    # ---- encoder stack (post-LN) ----
    for li in range(n_enc):
        lnp = w["e_ln"][0, li]                                   # (4, E)
        a = mha(mem, mem, w["e_wqkv"][0, li], w["e_bqkv"][0, li],
                w["e_wo"][0, li], w["e_bo"][0, li])
        mem = ln(mem + a, lnp[0:1], lnp[1:2])
        h = jnp.maximum(
            jnp.dot(mem, w["e_w1"][0, li],
                    preferred_element_type=jnp.float32) + w["e_b1"][0, li], 0.0)
        f = jnp.dot(h, w["e_w2"][0, li],
                    preferred_element_type=jnp.float32) + w["e_b2"][0, li]
        mem = ln(mem + f, lnp[2:3], lnp[3:4])

    fln = w["f_ln"][0]                                           # (4, E)
    mem = ln(mem, fln[0:1], fln[1:2])                            # encoder final norm

    # ---- decoder stack on the ones(1, 1, E) target ----
    out = jnp.ones((1, E), jnp.float32)
    for li in range(n_dec):
        lnp = w["d_ln"][0, li]                                   # (6, E)
        a = mha(out, out, w["d_wqkv_s"][0, li], w["d_bqkv_s"][0, li],
                w["d_wo_s"][0, li], w["d_bo_s"][0, li])
        out = ln(out + a, lnp[0:1], lnp[1:2])
        a2 = mha(out, mem, w["d_wqkv_c"][0, li], w["d_bqkv_c"][0, li],
                 w["d_wo_c"][0, li], w["d_bo_c"][0, li])
        out = ln(out + a2, lnp[2:3], lnp[3:4])
        h = jnp.maximum(
            jnp.dot(out, w["d_w1"][0, li],
                    preferred_element_type=jnp.float32) + w["d_b1"][0, li], 0.0)
        f = jnp.dot(h, w["d_w2"][0, li],
                    preferred_element_type=jnp.float32) + w["d_b2"][0, li]
        out = ln(out + f, lnp[4:5], lnp[5:6])
    out = ln(out, fln[2:3], fln[3:4])                            # decoder final norm

    # ---- output head: relu(out @ W + b) ----
    y = jnp.maximum(
        jnp.dot(out, w["out_w"][0], preferred_element_type=jnp.float32)
        + w["out_b"][0], 0.0)
    o_ref[0] = y.astype(o_ref.dtype)


# ------------------------------ wrapper ---------------------------------------
def transformer_tragger_seq_forward(packed, human_inputs, *, embedding_dim, nhead):
    S, N, F = human_inputs.shape
    assert N == 1, "module hard-codes tgt batch of 1"
    E = embedding_dim
    x2d = human_inputs.reshape(S, F).astype(jnp.float32)

    per_t_args = [packed[name] for name in _PER_T_FIELDS]

    def shared_spec(shape):
        rank = len(shape)
        return pl.BlockSpec(shape, lambda t, _r=rank: (0,) * _r)

    def per_t_spec(arr):
        inner = tuple(arr.shape[1:])
        rank = len(inner)
        return pl.BlockSpec((1,) + inner, lambda t, _r=rank: (t,) + (0,) * _r)

    in_specs = ([shared_spec((S, F)), shared_spec((F, E)), shared_spec((1, E))]
                + [per_t_spec(a) for a in per_t_args])

    kernel = functools.partial(_fused_kernel, nhead=nhead, n_enc=3, n_dec=3,
                               field_names=_PER_T_FIELDS)

    out = pl.pallas_call(
        kernel,
        out_shape=jax.ShapeDtypeStruct((2, 1, 36), jnp.float32),
        grid=(2,),
        in_specs=in_specs,
        out_specs=pl.BlockSpec((1, 1, 36), lambda t: (t, 0, 0)),
        compiler_params=pltpu.CompilerParams(dimension_semantics=("parallel",)),
    )(x2d, packed["emb_w"], packed["emb_b"], *per_t_args)

    out_xyz = out[0].reshape(1, 1, 36)
    out_vel = out[1].reshape(1, 1, 36)
    return out_xyz, out_vel


# ------------------------------- init -----------------------------------------
def _init_linear(key, fan_in, fan_out):
    kw, kb = jax.random.split(key)
    bound = 1.0 / math.sqrt(fan_in)
    w = jax.random.uniform(kw, (fan_in, fan_out), jnp.float32, -bound, bound)
    b = jax.random.uniform(kb, (1, fan_out), jnp.float32, -bound, bound)
    return w, b


def _init_mha(key, E):
    ks = jax.random.split(key, 4)
    wq, bq = _init_linear(ks[0], E, E)
    wk, bk = _init_linear(ks[1], E, E)
    wv, bv = _init_linear(ks[2], E, E)
    wo, bo = _init_linear(ks[3], E, E)
    return dict(wq=wq, bq=bq, wk=wk, bk=bk, wv=wv, bv=bv, wo=wo, bo=bo)


def _init_layernorm(E):
    return dict(g=jnp.ones((1, E), jnp.float32), b=jnp.zeros((1, E), jnp.float32))


def _init_encoder_layer(key, E, H):
    ks = jax.random.split(key, 3)
    w1, b1 = _init_linear(ks[1], E, H)
    w2, b2 = _init_linear(ks[2], H, E)
    return dict(self_attn=_init_mha(ks[0], E), w1=w1, b1=b1, w2=w2, b2=b2,
                norm1=_init_layernorm(E), norm2=_init_layernorm(E))


def _init_decoder_layer(key, E, H):
    ks = jax.random.split(key, 4)
    w1, b1 = _init_linear(ks[2], E, H)
    w2, b2 = _init_linear(ks[3], H, E)
    return dict(self_attn=_init_mha(ks[0], E), cross_attn=_init_mha(ks[1], E),
                w1=w1, b1=b1, w2=w2, b2=b2,
                norm1=_init_layernorm(E), norm2=_init_layernorm(E),
                norm3=_init_layernorm(E))


def _init_transformer(key, E, H, n_enc=3, n_dec=3):
    ks = jax.random.split(key, n_enc + n_dec)
    return dict(
        encoder_layers=[_init_encoder_layer(ks[i], E, H) for i in range(n_enc)],
        decoder_layers=[_init_decoder_layer(ks[n_enc + i], E, H) for i in range(n_dec)],
        encoder_norm=_init_layernorm(E),
        decoder_norm=_init_layernorm(E),
    )


def init_params(key, embedding_dim, hidden_dim):
    ks = jax.random.split(key, 6)
    w_in, b_in = _init_linear(ks[0], 159, embedding_dim)
    w_xyz, b_xyz = _init_linear(ks[1], embedding_dim, 36)
    w_vel, b_vel = _init_linear(ks[2], embedding_dim, 36)
    return dict(
        human_emb_w=w_in, human_emb_b=b_in,
        trans_xyz=_init_transformer(ks[3], embedding_dim, hidden_dim),
        trans_vel=_init_transformer(ks[4], embedding_dim, hidden_dim),
        out_xyz_w=w_xyz, out_xyz_b=b_xyz,
        out_vel_w=w_vel, out_vel_b=b_vel,
    )


# --------------------------- weight packing -----------------------------------
def pack_params(params):
    """Pack the nested per-layer weights into stacked arrays with a leading
    transformer axis (0: trans_xyz, 1: trans_vel) for the fused kernel."""
    T = ("trans_xyz", "trans_vel")

    def qkv_w(a): return jnp.concatenate([a["wq"], a["wk"], a["wv"]], axis=1)
    def qkv_b(a): return jnp.concatenate([a["bq"], a["bk"], a["bv"]], axis=1)

    def enc(fn):
        return jnp.stack([jnp.stack([fn(lp) for lp in params[t]["encoder_layers"]])
                          for t in T])

    def dec(fn):
        return jnp.stack([jnp.stack([fn(lp) for lp in params[t]["decoder_layers"]])
                          for t in T])

    def lncat(*gb):
        return jnp.concatenate(list(gb), axis=0)

    return {
        "emb_w": params["human_emb_w"],
        "emb_b": params["human_emb_b"],
        "e_wqkv": enc(lambda lp: qkv_w(lp["self_attn"])),
        "e_bqkv": enc(lambda lp: qkv_b(lp["self_attn"])),
        "e_wo": enc(lambda lp: lp["self_attn"]["wo"]),
        "e_bo": enc(lambda lp: lp["self_attn"]["bo"]),
        "e_w1": enc(lambda lp: lp["w1"]),
        "e_b1": enc(lambda lp: lp["b1"]),
        "e_w2": enc(lambda lp: lp["w2"]),
        "e_b2": enc(lambda lp: lp["b2"]),
        "e_ln": enc(lambda lp: lncat(lp["norm1"]["g"], lp["norm1"]["b"],
                                     lp["norm2"]["g"], lp["norm2"]["b"])),
        "d_wqkv_s": dec(lambda lp: qkv_w(lp["self_attn"])),
        "d_bqkv_s": dec(lambda lp: qkv_b(lp["self_attn"])),
        "d_wo_s": dec(lambda lp: lp["self_attn"]["wo"]),
        "d_bo_s": dec(lambda lp: lp["self_attn"]["bo"]),
        "d_wqkv_c": dec(lambda lp: qkv_w(lp["cross_attn"])),
        "d_bqkv_c": dec(lambda lp: qkv_b(lp["cross_attn"])),
        "d_wo_c": dec(lambda lp: lp["cross_attn"]["wo"]),
        "d_bo_c": dec(lambda lp: lp["cross_attn"]["bo"]),
        "d_w1": dec(lambda lp: lp["w1"]),
        "d_b1": dec(lambda lp: lp["b1"]),
        "d_w2": dec(lambda lp: lp["w2"]),
        "d_b2": dec(lambda lp: lp["b2"]),
        "d_ln": dec(lambda lp: lncat(lp["norm1"]["g"], lp["norm1"]["b"],
                                     lp["norm2"]["g"], lp["norm2"]["b"],
                                     lp["norm3"]["g"], lp["norm3"]["b"])),
        "f_ln": jnp.stack([lncat(params[t]["encoder_norm"]["g"],
                                 params[t]["encoder_norm"]["b"],
                                 params[t]["decoder_norm"]["g"],
                                 params[t]["decoder_norm"]["b"]) for t in T]),
        "out_w": jnp.stack([params["out_xyz_w"], params["out_vel_w"]]),
        "out_b": jnp.stack([params["out_xyz_b"], params["out_vel_b"]]),
    }


# ------------------------------- main -----------------------------------------
if __name__ == "__main__":
    EMBEDDING_DIM = 32
    HIDDEN_DIM = 64
    NUM_LAYERS = 2       # used as nhead by the reference module
    SEQ = 8
    BATCH = 1            # module hard-codes tgt batch of 1

    key = jax.random.PRNGKey(0)
    k_param, k_inp = jax.random.split(key)
    params = init_params(k_param, EMBEDDING_DIM, HIDDEN_DIM)
    packed = jax.tree_util.tree_map(jnp.asarray, pack_params(params))
    human_inputs = jax.random.normal(k_inp, (SEQ, BATCH, 159), jnp.float32)

    fwd = jax.jit(functools.partial(transformer_tragger_seq_forward,
                                    embedding_dim=EMBEDDING_DIM, nhead=NUM_LAYERS))
    out_xyz, out_vel = fwd(packed, human_inputs)
    jax.block_until_ready((out_xyz, out_vel))

    assert out_xyz.shape == (1, 1, 36) and out_vel.shape == (1, 1, 36)
    assert bool(jnp.all(out_xyz >= 0)) and bool(jnp.all(out_vel >= 0))  # ReLU outputs
    assert bool(jnp.all(jnp.isfinite(out_xyz))) and bool(jnp.all(jnp.isfinite(out_vel)))
    print("KERNEL_OK")
</pallas_src>

<mosaic_0001>
module attributes {stable_mosaic.version = 11 : i64} {
  func.func @_fused_kernel(%arg0: i32, %arg1: memref<8x159xf32, #tpu.memory_space<vmem>>, %arg2: memref<159x32xf32, #tpu.memory_space<vmem>>, %arg3: memref<1x32xf32, #tpu.memory_space<vmem>>, %arg4: memref<1x3x32x96xf32, #tpu.memory_space<vmem>>, %arg5: memref<1x3x1x96xf32, #tpu.memory_space<vmem>>, %arg6: memref<1x3x32x32xf32, #tpu.memory_space<vmem>>, %arg7: memref<1x3x1x32xf32, #tpu.memory_space<vmem>>, %arg8: memref<1x3x32x64xf32, #tpu.memory_space<vmem>>, %arg9: memref<1x3x1x64xf32, #tpu.memory_space<vmem>>, %arg10: memref<1x3x64x32xf32, #tpu.memory_space<vmem>>, %arg11: memref<1x3x1x32xf32, #tpu.memory_space<vmem>>, %arg12: memref<1x3x4x32xf32, #tpu.memory_space<vmem>>, %arg13: memref<1x3x32x96xf32, #tpu.memory_space<vmem>>, %arg14: memref<1x3x1x96xf32, #tpu.memory_space<vmem>>, %arg15: memref<1x3x32x32xf32, #tpu.memory_space<vmem>>, %arg16: memref<1x3x1x32xf32, #tpu.memory_space<vmem>>, %arg17: memref<1x3x32x96xf32, #tpu.memory_space<vmem>>, %arg18: memref<1x3x1x96xf32, #tpu.memory_space<vmem>>, %arg19: memref<1x3x32x32xf32, #tpu.memory_space<vmem>>, %arg20: memref<1x3x1x32xf32, #tpu.memory_space<vmem>>, %arg21: memref<1x3x32x64xf32, #tpu.memory_space<vmem>>, %arg22: memref<1x3x1x64xf32, #tpu.memory_space<vmem>>, %arg23: memref<1x3x64x32xf32, #tpu.memory_space<vmem>>, %arg24: memref<1x3x1x32xf32, #tpu.memory_space<vmem>>, %arg25: memref<1x3x6x32xf32, #tpu.memory_space<vmem>>, %arg26: memref<1x4x32xf32, #tpu.memory_space<vmem>>, %arg27: memref<1x32x36xf32, #tpu.memory_space<vmem>>, %arg28: memref<1x1x36xf32, #tpu.memory_space<vmem>>, %arg29: memref<1x1x36xf32, #tpu.memory_space<vmem>>) attributes {dimension_semantics = [#tpu.dimension_semantics<parallel>], iteration_bounds = array<i64: 2>, scalar_prefetch = 0 : i64, scratch_operands = 0 : i64, tpu.core_type = #tpu.core_type<tc>, window_params = [{pipeline_mode = #tpu.pipeline_mode<synchronous>, transform_indices = @transform_0, window_bounds = array<i64: 8, 159>}, {pipeline_mode = #tpu.pipeline_mode<synchronous>, transform_indices = @transform_1, window_bounds = array<i64: 159, 32>}, {pipeline_mode = #tpu.pipeline_mode<synchronous>, transform_indices = @transform_2, window_bounds = array<i64: 1, 32>}, {transform_indices = @transform_3, window_bounds = array<i64: 1, 3, 32, 96>}, {transform_indices = @transform_4, window_bounds = array<i64: 1, 3, 1, 96>}, {transform_indices = @transform_5, window_bounds = array<i64: 1, 3, 32, 32>}, {transform_indices = @transform_6, window_bounds = array<i64: 1, 3, 1, 32>}, {transform_indices = @transform_7, window_bounds = array<i64: 1, 3, 32, 64>}, {transform_indices = @transform_8, window_bounds = array<i64: 1, 3, 1, 64>}, {transform_indices = @transform_9, window_bounds = array<i64: 1, 3, 64, 32>}, {transform_indices = @transform_10, window_bounds = array<i64: 1, 3, 1, 32>}, {transform_indices = @transform_11, window_bounds = array<i64: 1, 3, 4, 32>}, {transform_indices = @transform_12, window_bounds = array<i64: 1, 3, 32, 96>}, {transform_indices = @transform_13, window_bounds = array<i64: 1, 3, 1, 96>}, {transform_indices = @transform_14, window_bounds = array<i64: 1, 3, 32, 32>}, {transform_indices = @transform_15, window_bounds = array<i64: 1, 3, 1, 32>}, {transform_indices = @transform_16, window_bounds = array<i64: 1, 3, 32, 96>}, {transform_indices = @transform_17, window_bounds = array<i64: 1, 3, 1, 96>}, {transform_indices = @transform_18, window_bounds = array<i64: 1, 3, 32, 32>}, {transform_indices = @transform_19, window_bounds = array<i64: 1, 3, 1, 32>}, {transform_indices = @transform_20, window_bounds = array<i64: 1, 3, 32, 64>}, {transform_indices = @transform_21, window_bounds = array<i64: 1, 3, 1, 64>}, {transform_indices = @transform_22, window_bounds = array<i64: 1, 3, 64, 32>}, {transform_indices = @transform_23, window_bounds = array<i64: 1, 3, 1, 32>}, {transform_indices = @transform_24, window_bounds = array<i64: 1, 3, 6, 32>}, {transform_indices = @transform_25, window_bounds = array<i64: 1, 4, 32>}, {transform_indices = @transform_26, window_bounds = array<i64: 1, 32, 36>}, {transform_indices = @transform_27, window_bounds = array<i64: 1, 1, 36>}, {transform_indices = @transform_28, window_bounds = array<i64: 1, 1, 36>}]} {
    %c0 = arith.constant 0 : index
    %c0_0 = arith.constant 0 : index
    %0 = vector.load %arg1[%c0, %c0_0] : memref<8x159xf32, #tpu.memory_space<vmem>>, vector<8x159xf32>
    %c0_1 = arith.constant 0 : index
    %c0_2 = arith.constant 0 : index
    %1 = vector.load %arg2[%c0_1, %c0_2] : memref<159x32xf32, #tpu.memory_space<vmem>>, vector<159x32xf32>
    %cst = arith.constant dense<0.000000e+00> : vector<8x32xf32>
    %2 = tpu.matmul %0, %1, %cst {dimension_numbers = #tpu.dot_dimension_numbers<[1], [0], [0], [1], [0, 0, 1, 1], [], []>} : vector<8x159xf32>, vector<159x32xf32>, vector<8x32xf32> -> vector<8x32xf32>
    %c0_3 = arith.constant 0 : index
    %c0_4 = arith.constant 0 : index
    %3 = vector.load %arg3[%c0_3, %c0_4] : memref<1x32xf32, #tpu.memory_space<vmem>>, vector<1x32xf32>
    %4 = vector.broadcast %3 : vector<1x32xf32> to vector<8x32xf32>
    %5 = arith.addf %2, %4 : vector<8x32xf32>
    %c0_5 = arith.constant 0 : index
    %c0_6 = arith.constant 0 : index
    %c0_7 = arith.constant 0 : index
    %c0_8 = arith.constant 0 : index
    %6 = vector.load %arg12[%c0_5, %c0_6, %c0_7, %c0_8] : memref<1x3x4x32xf32, #tpu.memory_space<vmem>>, vector<1x1x4x32xf32>
    %7 = vector.shape_cast %6 : vector<1x1x4x32xf32> to vector<4x32xf32>
    %c0_9 = arith.constant 0 : index
    %c0_10 = arith.constant 0 : index
    %c0_11 = arith.constant 0 : index
    %c0_12 = arith.constant 0 : index
    %8 = vector.load %arg4[%c0_9, %c0_10, %c0_11, %c0_12] : memref<1x3x32x96xf32, #tpu.memory_space<vmem>>, vector<1x1x32x96xf32>
    %9 = vector.shape_cast %8 : vector<1x1x32x96xf32> to vector<32x96xf32>
    %c0_13 = arith.constant 0 : index
    %c0_14 = arith.constant 0 : index
    %c0_15 = arith.constant 0 : index
    %c0_16 = arith.constant 0 : index
    %10 = vector.load %arg5[%c0_13, %c0_14, %c0_15, %c0_16] : memref<1x3x1x96xf32, #tpu.memory_space<vmem>>, vector<1x1x1x96xf32>
    %11 = vector.shape_cast %10 : vector<1x1x1x96xf32> to vector<1x96xf32>
    %c0_17 = arith.constant 0 : index
    %c0_18 = arith.constant 0 : index
    %c0_19 = arith.constant 0 : index
    %c0_20 = arith.constant 0 : index
    %12 = vector.load %arg6[%c0_17, %c0_18, %c0_19, %c0_20] : memref<1x3x32x32xf32, #tpu.memory_space<vmem>>, vector<1x1x32x32xf32>
    %13 = vector.shape_cast %12 : vector<1x1x32x32xf32> to vector<32x32xf32>
    %c0_21 = arith.constant 0 : index
    %c0_22 = arith.constant 0 : index
    %c0_23 = arith.constant 0 : index
    %c0_24 = arith.constant 0 : index
    %14 = vector.load %arg7[%c0_21, %c0_22, %c0_23, %c0_24] : memref<1x3x1x32xf32, #tpu.memory_space<vmem>>, vector<1x1x1x32xf32>
    %15 = vector.shape_cast %14 : vector<1x1x1x32xf32> to vector<1x32xf32>
    %cst_25 = arith.constant dense<0.000000e+00> : vector<8x96xf32>
    %16 = tpu.matmul %5, %9, %cst_25 {dimension_numbers = #tpu.dot_dimension_numbers<[1], [0], [0], [1], [0, 0, 1, 1], [], []>} : vector<8x32xf32>, vector<32x96xf32>, vector<8x96xf32> -> vector<8x96xf32>
    %17 = vector.broadcast %11 : vector<1x96xf32> to vector<8x96xf32>
    %18 = arith.addf %16, %17 : vector<8x96xf32>
    %19 = vector.extract_strided_slice %18 {offsets = [0, 0], sizes = [8, 32], strides = [1, 1]} : vector<8x96xf32> to vector<8x32xf32>
    %20 = vector.extract_strided_slice %18 {offsets = [0, 32], sizes = [8, 32], strides = [1, 1]} : vector<8x96xf32> to vector<8x32xf32>
    %21 = vector.extract_strided_slice %18 {offsets = [0, 64], sizes = [8, 32], strides = [1, 1]} : vector<8x96xf32> to vector<8x32xf32>
    %22 = vector.extract_strided_slice %19 {offsets = [0, 0], sizes = [8, 16], strides = [1, 1]} : vector<8x32xf32> to vector<8x16xf32>
    %23 = vector.extract_strided_slice %20 {offsets = [0, 0], sizes = [8, 16], strides = [1, 1]} : vector<8x32xf32> to vector<8x16xf32>
    %24 = tpu.transpose %23, [1, 0] : vector<8x16xf32> -> vector<16x8xf32>
    %cst_26 = arith.constant dense<0.000000e+00> : vector<8x8xf32>
    %25 = tpu.matmul %22, %24, %cst_26 {dimension_numbers = #tpu.dot_dimension_numbers<[1], [0], [0], [1], [0, 0, 1, 1], [], []>} : vector<8x16xf32>, vector<16x8xf32>, vector<8x8xf32> -> vector<8x8xf32>
    %cst_27 = arith.constant 2.500000e-01 : f32
    %26 = vector.broadcast %cst_27 : f32 to vector<8x8xf32>
    %27 = arith.mulf %25, %26 : vector<8x8xf32>
    %cst_28 = arith.constant dense<0xFF800000> : vector<8xf32>
    %28 = vector.multi_reduction <maximumf>, %27, %cst_28 [1] : vector<8x8xf32> to vector<8xf32>
    %29 = vector.shape_cast %28 : vector<8xf32> to vector<8x1xf32>
    %30 = vector.broadcast %29 : vector<8x1xf32> to vector<8x8xf32>
    %31 = arith.subf %27, %30 : vector<8x8xf32>
    %32 = math.exp %31 : vector<8x8xf32>
    %cst_29 = arith.constant dense<0.000000e+00> : vector<8xf32>
    %33 = vector.multi_reduction <add>, %32, %cst_29 [1] : vector<8x8xf32> to vector<8xf32>
    %34 = vector.shape_cast %33 : vector<8xf32> to vector<8x1xf32>
    %35 = tpu.reciprocal %34 {approx = true} : vector<8x1xf32> -> vector<8x1xf32>
    %36 = vector.broadcast %35 : vector<8x1xf32> to vector<8x8xf32>
    %37 = arith.mulf %32, %36 : vector<8x8xf32>
    %38 = vector.extract_strided_slice %21 {offsets = [0, 0], sizes = [8, 16], strides = [1, 1]} : vector<8x32xf32> to vector<8x16xf32>
    %cst_30 = arith.constant dense<0.000000e+00> : vector<8x16xf32>
    %39 = tpu.matmul %37, %38, %cst_30 {dimension_numbers = #tpu.dot_dimension_numbers<[1], [0], [0], [1], [0, 0, 1, 1], [], []>} : vector<8x8xf32>, vector<8x16xf32>, vector<8x16xf32> -> vector<8x16xf32>
    %40 = vector.extract_strided_slice %19 {offsets = [0, 16], sizes = [8, 16], strides = [1, 1]} : vector<8x32xf32> to vector<8x16xf32>
    %41 = vector.extract_strided_slice %20 {offsets = [0, 16], sizes = [8, 16], strides = [1, 1]} : vector<8x32xf32> to vector<8x16xf32>
    %42 = tpu.transpose %41, [1, 0] : vector<8x16xf32> -> vector<16x8xf32>
    %cst_31 = arith.constant dense<0.000000e+00> : vector<8x8xf32>
    %43 = tpu.matmul %40, %42, %cst_31 {dimension_numbers = #tpu.dot_dimension_numbers<[1], [0], [0], [1], [0, 0, 1, 1], [], []>} : vector<8x16xf32>, vector<16x8xf32>, vector<8x8xf32> -> vector<8x8xf32>
    %cst_32 = arith.constant 2.500000e-01 : f32
    %44 = vector.broadcast %cst_32 : f32 to vector<8x8xf32>
    %45 = arith.mulf %43, %44 : vector<8x8xf32>
    %cst_33 = arith.constant dense<0xFF800000> : vector<8xf32>
    %46 = vector.multi_reduction <maximumf>, %45, %cst_33 [1] : vector<8x8xf32> to vector<8xf32>
    %47 = vector.shape_cast %46 : vector<8xf32> to vector<8x1xf32>
    %48 = vector.broadcast %47 : vector<8x1xf32> to vector<8x8xf32>
    %49 = arith.subf %45, %48 : vector<8x8xf32>
    %50 = math.exp %49 : vector<8x8xf32>
    %cst_34 = arith.constant dense<0.000000e+00> : vector<8xf32>
    %51 = vector.multi_reduction <add>, %50, %cst_34 [1] : vector<8x8xf32> to vector<8xf32>
    %52 = vector.shape_cast %51 : vector<8xf32> to vector<8x1xf32>
    %53 = tpu.reciprocal %52 {approx = true} : vector<8x1xf32> -> vector<8x1xf32>
    %54 = vector.broadcast %53 : vector<8x1xf32> to vector<8x8xf32>
    %55 = arith.mulf %50, %54 : vector<8x8xf32>
    %56 = vector.extract_strided_slice %21 {offsets = [0, 16], sizes = [8, 16], strides = [1, 1]} : vector<8x32xf32> to vector<8x16xf32>
    %cst_35 = arith.constant dense<0.000000e+00> : vector<8x16xf32>
    %57 = tpu.matmul %55, %56, %cst_35 {dimension_numbers = #tpu.dot_dimension_numbers<[1], [0], [0], [1], [0, 0, 1, 1], [], []>} : vector<8x8xf32>, vector<8x16xf32>, vector<8x16xf32> -> vector<8x16xf32>
    %58 = tpu.concatenate %39, %57 in 1 : vector<8x16xf32>, vector<8x16xf32> -> vector<8x32xf32>
    %cst_36 = arith.constant dense<0.000000e+00> : vector<8x32xf32>
    %59 = tpu.matmul %58, %13, %cst_36 {dimension_numbers = #tpu.dot_dimension_numbers<[1], [0], [0], [1], [0, 0, 1, 1], [], []>} : vector<8x32xf32>, vector<32x32xf32>, vector<8x32xf32> -> vector<8x32xf32>
    %60 = vector.broadcast %15 : vector<1x32xf32> to vector<8x32xf32>
    %61 = arith.addf %59, %60 : vector<8x32xf32>
    %62 = arith.addf %5, %61 : vector<8x32xf32>
    %63 = vector.extract_strided_slice %7 {offsets = [0, 0], sizes = [1, 32], strides = [1, 1]} : vector<4x32xf32> to vector<1x32xf32>
    %64 = vector.extract_strided_slice %7 {offsets = [1, 0], sizes = [1, 32], strides = [1, 1]} : vector<4x32xf32> to vector<1x32xf32>
    %cst_37 = arith.constant dense<0.000000e+00> : vector<8xf32>
    %65 = vector.multi_reduction <add>, %62, %cst_37 [1] : vector<8x32xf32> to vector<8xf32>
    %66 = vector.shape_cast %65 : vector<8xf32> to vector<8x1xf32>
    %cst_38 = arith.constant 3.200000e+01 : f32
    %67 = vector.broadcast %cst_38 : f32 to vector<8x1xf32>
    %68 = arith.divf %66, %67 : vector<8x1xf32>
    %69 = vector.broadcast %68 : vector<8x1xf32> to vector<8x32xf32>
    %70 = arith.subf %62, %69 : vector<8x32xf32>
    %71 = arith.mulf %70, %70 : vector<8x32xf32>
    %cst_39 = arith.constant dense<0.000000e+00> : vector<8xf32>
    %72 = vector.multi_reduction <add>, %71, %cst_39 [1] : vector<8x32xf32> to vector<8xf32>
    %73 = vector.shape_cast %72 : vector<8xf32> to vector<8x1xf32>
    %cst_40 = arith.constant 3.200000e+01 : f32
    %74 = vector.broadcast %cst_40 : f32 to vector<8x1xf32>
    %75 = arith.divf %73, %74 : vector<8x1xf32>
    %cst_41 = arith.constant 9.99999974E-6 : f32
    %76 = vector.broadcast %cst_41 : f32 to vector<8x1xf32>
    %77 = arith.addf %75, %76 : vector<8x1xf32>
    %78 = math.rsqrt %77 : vector<8x1xf32>
    %79 = vector.broadcast %78 : vector<8x1xf32> to vector<8x32xf32>
    %80 = arith.mulf %70, %79 : vector<8x32xf32>
    %81 = vector.broadcast %63 : vector<1x32xf32> to vector<8x32xf32>
    %82 = arith.mulf %80, %81 : vector<8x32xf32>
    %83 = vector.broadcast %64 : vector<1x32xf32> to vector<8x32xf32>
    %84 = arith.addf %82, %83 : vector<8x32xf32>
    %c0_42 = arith.constant 0 : index
    %c0_43 = arith.constant 0 : index
    %c0_44 = arith.constant 0 : index
    %c0_45 = arith.constant 0 : index
    %85 = vector.load %arg8[%c0_42, %c0_43, %c0_44, %c0_45] : memref<1x3x32x64xf32, #tpu.memory_space<vmem>>, vector<1x1x32x64xf32>
    %86 = vector.shape_cast %85 : vector<1x1x32x64xf32> to vector<32x64xf32>
    %cst_46 = arith.constant dense<0.000000e+00> : vector<8x64xf32>
    %87 = tpu.matmul %84, %86, %cst_46 {dimension_numbers = #tpu.dot_dimension_numbers<[1], [0], [0], [1], [0, 0, 1, 1], [], []>} : vector<8x32xf32>, vector<32x64xf32>, vector<8x64xf32> -> vector<8x64xf32>
    %c0_47 = arith.constant 0 : index
    %c0_48 = arith.constant 0 : index
    %c0_49 = arith.constant 0 : index
    %c0_50 = arith.constant 0 : index
    %88 = vector.load %arg9[%c0_47, %c0_48, %c0_49, %c0_50] : memref<1x3x1x64xf32, #tpu.memory_space<vmem>>, vector<1x1x1x64xf32>
    %89 = vector.shape_cast %88 : vector<1x1x1x64xf32> to vector<1x64xf32>
    %90 = vector.broadcast %89 : vector<1x64xf32> to vector<8x64xf32>
    %91 = arith.addf %87, %90 : vector<8x64xf32>
    %cst_51 = arith.constant 0.000000e+00 : f32
    %92 = vector.broadcast %cst_51 : f32 to vector<8x64xf32>
    %93 = arith.maximumf %91, %92 : vector<8x64xf32>
    %c0_52 = arith.constant 0 : index
    %c0_53 = arith.constant 0 : index
    %c0_54 = arith.constant 0 : index
    %c0_55 = arith.constant 0 : index
    %94 = vector.load %arg10[%c0_52, %c0_53, %c0_54, %c0_55] : memref<1x3x64x32xf32, #tpu.memory_space<vmem>>, vector<1x1x64x32xf32>
    %95 = vector.shape_cast %94 : vector<1x1x64x32xf32> to vector<64x32xf32>
    %cst_56 = arith.constant dense<0.000000e+00> : vector<8x32xf32>
    %96 = tpu.matmul %93, %95, %cst_56 {dimension_numbers = #tpu.dot_dimension_numbers<[1], [0], [0], [1], [0, 0, 1, 1], [], []>} : vector<8x64xf32>, vector<64x32xf32>, vector<8x32xf32> -> vector<8x32xf32>
    %c0_57 = arith.constant 0 : index
    %c0_58 = arith.constant 0 : index
    %c0_59 = arith.constant 0 : index
    %c0_60 = arith.constant 0 : index
    %97 = vector.load %arg11[%c0_57, %c0_58, %c0_59, %c0_60] : memref<1x3x1x32xf32, #tpu.memory_space<vmem>>, vector<1x1x1x32xf32>
    %98 = vector.shape_cast %97 : vector<1x1x1x32xf32> to vector<1x32xf32>
    %99 = vector.broadcast %98 : vector<1x32xf32> to vector<8x32xf32>
    %100 = arith.addf %96, %99 : vector<8x32xf32>
    %101 = arith.addf %84, %100 : vector<8x32xf32>
    %102 = vector.extract_strided_slice %7 {offsets = [2, 0], sizes = [1, 32], strides = [1, 1]} : vector<4x32xf32> to vector<1x32xf32>
    %103 = vector.extract_strided_slice %7 {offsets = [3, 0], sizes = [1, 32], strides = [1, 1]} : vector<4x32xf32> to vector<1x32xf32>
    %cst_61 = arith.constant dense<0.000000e+00> : vector<8xf32>
    %104 = vector.multi_reduction <add>, %101, %cst_61 [1] : vector<8x32xf32> to vector<8xf32>
    %105 = vector.shape_cast %104 : vector<8xf32> to vector<8x1xf32>
    %cst_62 = arith.constant 3.200000e+01 : f32
    %106 = vector.broadcast %cst_62 : f32 to vector<8x1xf32>
    %107 = arith.divf %105, %106 : vector<8x1xf32>
    %108 = vector.broadcast %107 : vector<8x1xf32> to vector<8x32xf32>
    %109 = arith.subf %101, %108 : vector<8x32xf32>
    %110 = arith.mulf %109, %109 : vector<8x32xf32>
    %cst_63 = arith.constant dense<0.000000e+00> : vector<8xf32>
    %111 = vector.multi_reduction <add>, %110, %cst_63 [1] : vector<8x32xf32> to vector<8xf32>
    %112 = vector.shape_cast %111 : vector<8xf32> to vector<8x1xf32>
    %cst_64 = arith.constant 3.200000e+01 : f32
    %113 = vector.broadcast %cst_64 : f32 to vector<8x1xf32>
    %114 = arith.divf %112, %113 : vector<8x1xf32>
    %cst_65 = arith.constant 9.99999974E-6 : f32
    %115 = vector.broadcast %cst_65 : f32 to vector<8x1xf32>
    %116 = arith.addf %114, %115 : vector<8x1xf32>
    %117 = math.rsqrt %116 : vector<8x1xf32>
    %118 = vector.broadcast %117 : vector<8x1xf32> to vector<8x32xf32>
    %119 = arith.mulf %109, %118 : vector<8x32xf32>
    %120 = vector.broadcast %102 : vector<1x32xf32> to vector<8x32xf32>
    %121 = arith.mulf %119, %120 : vector<8x32xf32>
    %122 = vector.broadcast %103 : vector<1x32xf32> to vector<8x32xf32>
    %123 = arith.addf %121, %122 : vector<8x32xf32>
    %c0_66 = arith.constant 0 : index
    %c1 = arith.constant 1 : index
    %c0_67 = arith.constant 0 : index
    %c0_68 = arith.constant 0 : index
    %124 = vector.load %arg12[%c0_66, %c1, %c0_67, %c0_68] : memref<1x3x4x32xf32, #tpu.memory_space<vmem>>, vector<1x1x4x32xf32>
    %125 = vector.shape_cast %124 : vector<1x1x4x32xf32> to vector<4x32xf32>
    %c0_69 = arith.constant 0 : index
    %c1_70 = arith.constant 1 : index
    %c0_71 = arith.constant 0 : index
    %c0_72 = arith.constant 0 : index
    %126 = vector.load %arg4[%c0_69, %c1_70, %c0_71, %c0_72] : memref<1x3x32x96xf32, #tpu.memory_space<vmem>>, vector<1x1x32x96xf32>
    %127 = vector.shape_cast %126 : vector<1x1x32x96xf32> to vector<32x96xf32>
    %c0_73 = arith.constant 0 : index
    %c1_74 = arith.constant 1 : index
    %c0_75 = arith.constant 0 : index
    %c0_76 = arith.constant 0 : index
    %128 = vector.load %arg5[%c0_73, %c1_74, %c0_75, %c0_76] : memref<1x3x1x96xf32, #tpu.memory_space<vmem>>, vector<1x1x1x96xf32>
    %129 = vector.shape_cast %128 : vector<1x1x1x96xf32> to vector<1x96xf32>
    %c0_77 = arith.constant 0 : index
    %c1_78 = arith.constant 1 : index
    %c0_79 = arith.constant 0 : index
    %c0_80 = arith.constant 0 : index
    %130 = vector.load %arg6[%c0_77, %c1_78, %c0_79, %c0_80] : memref<1x3x32x32xf32, #tpu.memory_space<vmem>>, vector<1x1x32x32xf32>
    %131 = vector.shape_cast %130 : vector<1x1x32x32xf32> to vector<32x32xf32>
    %c0_81 = arith.constant 0 : index
    %c1_82 = arith.constant 1 : index
    %c0_83 = arith.constant 0 : index
    %c0_84 = arith.constant 0 : index
    %132 = vector.load %arg7[%c0_81, %c1_82, %c0_83, %c0_84] : memref<1x3x1x32xf32, #tpu.memory_space<vmem>>, vector<1x1x1x32xf32>
    %133 = vector.shape_cast %132 : vector<1x1x1x32xf32> to vector<1x32xf32>
    %cst_85 = arith.constant dense<0.000000e+00> : vector<8x96xf32>
    %134 = tpu.matmul %123, %127, %cst_85 {dimension_numbers = #tpu.dot_dimension_numbers<[1], [0], [0], [1], [0, 0, 1, 1], [], []>} : vector<8x32xf32>, vector<32x96xf32>, vector<8x96xf32> -> vector<8x96xf32>
    %135 = vector.broadcast %129 : vector<1x96xf32> to vector<8x96xf32>
    %136 = arith.addf %134, %135 : vector<8x96xf32>
    %137 = vector.extract_strided_slice %136 {offsets = [0, 0], sizes = [8, 32], strides = [1, 1]} : vector<8x96xf32> to vector<8x32xf32>
    %138 = vector.extract_strided_slice %136 {offsets = [0, 32], sizes = [8, 32], strides = [1, 1]} : vector<8x96xf32> to vector<8x32xf32>
    %139 = vector.extract_strided_slice %136 {offsets = [0, 64], sizes = [8, 32], strides = [1, 1]} : vector<8x96xf32> to vector<8x32xf32>
    %140 = vector.extract_strided_slice %137 {offsets = [0, 0], sizes = [8, 16], strides = [1, 1]} : vector<8x32xf32> to vector<8x16xf32>
    %141 = vector.extract_strided_slice %138 {offsets = [0, 0], sizes = [8, 16], strides = [1, 1]} : vector<8x32xf32> to vector<8x16xf32>
    %142 = tpu.transpose %141, [1, 0] : vector<8x16xf32> -> vector<16x8xf32>
    %cst_86 = arith.constant dense<0.000000e+00> : vector<8x8xf32>
    %143 = tpu.matmul %140, %142, %cst_86 {dimension_numbers = #tpu.dot_dimension_numbers<[1], [0], [0], [1], [0, 0, 1, 1], [], []>} : vector<8x16xf32>, vector<16x8xf32>, vector<8x8xf32> -> vector<8x8xf32>
    %cst_87 = arith.constant 2.500000e-01 : f32
    %144 = vector.broadcast %cst_87 : f32 to vector<8x8xf32>
    %145 = arith.mulf %143, %144 : vector<8x8xf32>
    %cst_88 = arith.constant dense<0xFF800000> : vector<8xf32>
    %146 = vector.multi_reduction <maximumf>, %145, %cst_88 [1] : vector<8x8xf32> to vector<8xf32>
    %147 = vector.shape_cast %146 : vector<8xf32> to vector<8x1xf32>
    %148 = vector.broadcast %147 : vector<8x1xf32> to vector<8x8xf32>
    %149 = arith.subf %145, %148 : vector<8x8xf32>
    %150 = math.exp %149 : vector<8x8xf32>
    %cst_89 = arith.constant dense<0.000000e+00> : vector<8xf32>
    %151 = vector.multi_reduction <add>, %150, %cst_89 [1] : vector<8x8xf32> to vector<8xf32>
    %152 = vector.shape_cast %151 : vector<8xf32> to vector<8x1xf32>
    %153 = tpu.reciprocal %152 {approx = true} : vector<8x1xf32> -> vector<8x1xf32>
    %154 = vector.broadcast %153 : vector<8x1xf32> to vector<8x8xf32>
    %155 = arith.mulf %150, %154 : vector<8x8xf32>
    %156 = vector.extract_strided_slice %139 {offsets = [0, 0], sizes = [8, 16], strides = [1, 1]} : vector<8x32xf32> to vector<8x16xf32>
    %cst_90 = arith.constant dense<0.000000e+00> : vector<8x16xf32>
    %157 = tpu.matmul %155, %156, %cst_90 {dimension_numbers = #tpu.dot_dimension_numbers<[1], [0], [0], [1], [0, 0, 1, 1], [], []>} : vector<8x8xf32>, vector<8x16xf32>, vector<8x16xf32> -> vector<8x16xf32>
    %158 = vector.extract_strided_slice %137 {offsets = [0, 16], sizes = [8, 16], strides = [1, 1]} : vector<8x32xf32> to vector<8x16xf32>
    %159 = vector.extract_strided_slice %138 {offsets = [0, 16], sizes = [8, 16], strides = [1, 1]} : vector<8x32xf32> to vector<8x16xf32>
    %160 = tpu.transpose %159, [1, 0] : vector<8x16xf32> -> vector<16x8xf32>
    %cst_91 = arith.constant dense<0.000000e+00> : vector<8x8xf32>
    %161 = tpu.matmul %158, %160, %cst_91 {dimension_numbers = #tpu.dot_dimension_numbers<[1], [0], [0], [1], [0, 0, 1, 1], [], []>} : vector<8x16xf32>, vector<16x8xf32>, vector<8x8xf32> -> vector<8x8xf32>
    %cst_92 = arith.constant 2.500000e-01 : f32
    %162 = vector.broadcast %cst_92 : f32 to vector<8x8xf32>
    %163 = arith.mulf %161, %162 : vector<8x8xf32>
    %cst_93 = arith.constant dense<0xFF800000> : vector<8xf32>
    %164 = vector.multi_reduction <maximumf>, %163, %cst_93 [1] : vector<8x8xf32> to vector<8xf32>
    %165 = vector.shape_cast %164 : vector<8xf32> to vector<8x1xf32>
    %166 = vector.broadcast %165 : vector<8x1xf32> to vector<8x8xf32>
    %167 = arith.subf %163, %166 : vector<8x8xf32>
    %168 = math.exp %167 : vector<8x8xf32>
    %cst_94 = arith.constant dense<0.000000e+00> : vector<8xf32>
    %169 = vector.multi_reduction <add>, %168, %cst_94 [1] : vector<8x8xf32> to vector<8xf32>
    %170 = vector.shape_cast %169 : vector<8xf32> to vector<8x1xf32>
    %171 = tpu.reciprocal %170 {approx = true} : vector<8x1xf32> -> vector<8x1xf32>
    %172 = vector.broadcast %171 : vector<8x1xf32> to vector<8x8xf32>
    %173 = arith.mulf %168, %172 : vector<8x8xf32>
    %174 = vector.extract_strided_slice %139 {offsets = [0, 16], sizes = [8, 16], strides = [1, 1]} : vector<8x32xf32> to vector<8x16xf32>
    %cst_95 = arith.constant dense<0.000000e+00> : vector<8x16xf32>
    %175 = tpu.matmul %173, %174, %cst_95 {dimension_numbers = #tpu.dot_dimension_numbers<[1], [0], [0], [1], [0, 0, 1, 1], [], []>} : vector<8x8xf32>, vector<8x16xf32>, vector<8x16xf32> -> vector<8x16xf32>
    %176 = tpu.concatenate %157, %175 in 1 : vector<8x16xf32>, vector<8x16xf32> -> vector<8x32xf32>
    %cst_96 = arith.constant dense<0.000000e+00> : vector<8x32xf32>
    %177 = tpu.matmul %176, %131, %cst_96 {dimension_numbers = #tpu.dot_dimension_numbers<[1], [0], [0], [1], [0, 0, 1, 1], [], []>} : vector<8x32xf32>, vector<32x32xf32>, vector<8x32xf32> -> vector<8x32xf32>
    %178 = vector.broadcast %133 : vector<1x32xf32> to vector<8x32xf32>
    %179 = arith.addf %177, %178 : vector<8x32xf32>
    %180 = arith.addf %123, %179 : vector<8x32xf32>
    %181 = vector.extract_strided_slice %125 {offsets = [0, 0], sizes = [1, 32], strides = [1, 1]} : vector<4x32xf32> to vector<1x32xf32>
    %182 = vector.extract_strided_slice %125 {offsets = [1, 0], sizes = [1, 32], strides = [1, 1]} : vector<4x32xf32> to vector<1x32xf32>
    %cst_97 = arith.constant dense<0.000000e+00> : vector<8xf32>
    %183 = vector.multi_reduction <add>, %180, %cst_97 [1] : vector<8x32xf32> to vector<8xf32>
    %184 = vector.shape_cast %183 : vector<8xf32> to vector<8x1xf32>
    %cst_98 = arith.constant 3.200000e+01 : f32
    %185 = vector.broadcast %cst_98 : f32 to vector<8x1xf32>
    %186 = arith.divf %184, %185 : vector<8x1xf32>
    %187 = vector.broadcast %186 : vector<8x1xf32> to vector<8x32xf32>
    %188 = arith.subf %180, %187 : vector<8x32xf32>
    %189 = arith.mulf %188, %188 : vector<8x32xf32>
    %cst_99 = arith.constant dense<0.000000e+00> : vector<8xf32>
    %190 = vector.multi_reduction <add>, %189, %cst_99 [1] : vector<8x32xf32> to vector<8xf32>
    %191 = vector.shape_cast %190 : vector<8xf32> to vector<8x1xf32>
    %cst_100 = arith.constant 3.200000e+01 : f32
    %192 = vector.broadcast %cst_100 : f32 to vector<8x1xf32>
    %193 = arith.divf %191, %192 : vector<8x1xf32>
    %cst_101 = arith.constant 9.99999974E-6 : f32
    %194 = vector.broadcast %cst_101 : f32 to vector<8x1xf32>
    %195 = arith.addf %193, %194 : vector<8x1xf32>
    %196 = math.rsqrt %195 : vector<8x1xf32>
    %197 = vector.broadcast %196 : vector<8x1xf32> to vector<8x32xf32>
    %198 = arith.mulf %188, %197 : vector<8x32xf32>
    %199 = vector.broadcast %181 : vector<1x32xf32> to vector<8x32xf32>
    %200 = arith.mulf %198, %199 : vector<8x32xf32>
    %201 = vector.broadcast %182 : vector<1x32xf32> to vector<8x32xf32>
    %202 = arith.addf %200, %201 : vector<8x32xf32>
    %c0_102 = arith.constant 0 : index
    %c1_103 = arith.constant 1 : index
    %c0_104 = arith.constant 0 : index
    %c0_105 = arith.constant 0 : index
    %203 = vector.load %arg8[%c0_102, %c1_103, %c0_104, %c0_105] : memref<1x3x32x64xf32, #tpu.memory_space<vmem>>, vector<1x1x32x64xf32>
    %204 = vector.shape_cast %203 : vector<1x1x32x64xf32> to vector<32x64xf32>
    %cst_106 = arith.constant dense<0.000000e+00> : vector<8x64xf32>
    %205 = tpu.matmul %202, %204, %cst_106 {dimension_numbers = #tpu.dot_dimension_numbers<[1], [0], [0], [1], [0, 0, 1, 1], [], []>} : vector<8x32xf32>, vector<32x64xf32>, vector<8x64xf32> -> vector<8x64xf32>
    %c0_107 = arith.constant 0 : index
    %c1_108 = arith.constant 1 : index
    %c0_109 = arith.constant 0 : index
    %c0_110 = arith.constant 0 : index
    %206 = vector.load %arg9[%c0_107, %c1_108, %c0_109, %c0_110] : memref<1x3x1x64xf32, #tpu.memory_space<vmem>>, vector<1x1x1x64xf32>
    %207 = vector.shape_cast %206 : vector<1x1x1x64xf32> to vector<1x64xf32>
    %208 = vector.broadcast %207 : vector<1x64xf32> to vector<8x64xf32>
    %209 = arith.addf %205, %208 : vector<8x64xf32>
    %cst_111 = arith.constant 0.000000e+00 : f32
    %210 = vector.broadcast %cst_111 : f32 to vector<8x64xf32>
    %211 = arith.maximumf %209, %210 : vector<8x64xf32>
    %c0_112 = arith.constant 0 : index
    %c1_113 = arith.constant 1 : index
    %c0_114 = arith.constant 0 : index
    %c0_115 = arith.constant 0 : index
    %212 = vector.load %arg10[%c0_112, %c1_113, %c0_114, %c0_115] : memref<1x3x64x32xf32, #tpu.memory_space<vmem>>, vector<1x1x64x32xf32>
    %213 = vector.shape_cast %212 : vector<1x1x64x32xf32> to vector<64x32xf32>
    %cst_116 = arith.constant dense<0.000000e+00> : vector<8x32xf32>
    %214 = tpu.matmul %211, %213, %cst_116 {dimension_numbers = #tpu.dot_dimension_numbers<[1], [0], [0], [1], [0, 0, 1, 1], [], []>} : vector<8x64xf32>, vector<64x32xf32>, vector<8x32xf32> -> vector<8x32xf32>
    %c0_117 = arith.constant 0 : index
    %c1_118 = arith.constant 1 : index
    %c0_119 = arith.constant 0 : index
    %c0_120 = arith.constant 0 : index
    %215 = vector.load %arg11[%c0_117, %c1_118, %c0_119, %c0_120] : memref<1x3x1x32xf32, #tpu.memory_space<vmem>>, vector<1x1x1x32xf32>
    %216 = vector.shape_cast %215 : vector<1x1x1x32xf32> to vector<1x32xf32>
    %217 = vector.broadcast %216 : vector<1x32xf32> to vector<8x32xf32>
    %218 = arith.addf %214, %217 : vector<8x32xf32>
    %219 = arith.addf %202, %218 : vector<8x32xf32>
    %220 = vector.extract_strided_slice %125 {offsets = [2, 0], sizes = [1, 32], strides = [1, 1]} : vector<4x32xf32> to vector<1x32xf32>
    %221 = vector.extract_strided_slice %125 {offsets = [3, 0], sizes = [1, 32], strides = [1, 1]} : vector<4x32xf32> to vector<1x32xf32>
    %cst_121 = arith.constant dense<0.000000e+00> : vector<8xf32>
    %222 = vector.multi_reduction <add>, %219, %cst_121 [1] : vector<8x32xf32> to vector<8xf32>
    %223 = vector.shape_cast %222 : vector<8xf32> to vector<8x1xf32>
    %cst_122 = arith.constant 3.200000e+01 : f32
    %224 = vector.broadcast %cst_122 : f32 to vector<8x1xf32>
    %225 = arith.divf %223, %224 : vector<8x1xf32>
    %226 = vector.broadcast %225 : vector<8x1xf32> to vector<8x32xf32>
    %227 = arith.subf %219, %226 : vector<8x32xf32>
    %228 = arith.mulf %227, %227 : vector<8x32xf32>
    %cst_123 = arith.constant dense<0.000000e+00> : vector<8xf32>
    %229 = vector.multi_reduction <add>, %228, %cst_123 [1] : vector<8x32xf32> to vector<8xf32>
    %230 = vector.shape_cast %229 : vector<8xf32> to vector<8x1xf32>
    %cst_124 = arith.constant 3.200000e+01 : f32
    %231 = vector.broadcast %cst_124 : f32 to vector<8x1xf32>
    %232 = arith.divf %230, %231 : vector<8x1xf32>
    %cst_125 = arith.constant 9.99999974E-6 : f32
    %233 = vector.broadcast %cst_125 : f32 to vector<8x1xf32>
    %234 = arith.addf %232, %233 : vector<8x1xf32>
    %235 = math.rsqrt %234 : vector<8x1xf32>
    %236 = vector.broadcast %235 : vector<8x1xf32> to vector<8x32xf32>
    %237 = arith.mulf %227, %236 : vector<8x32xf32>
    %238 = vector.broadcast %220 : vector<1x32xf32> to vector<8x32xf32>
    %239 = arith.mulf %237, %238 : vector<8x32xf32>
    %240 = vector.broadcast %221 : vector<1x32xf32> to vector<8x32xf32>
    %241 = arith.addf %239, %240 : vector<8x32xf32>
    %c0_126 = arith.constant 0 : index
    %c2 = arith.constant 2 : index
    %c0_127 = arith.constant 0 : index
    %c0_128 = arith.constant 0 : index
    %242 = vector.load %arg12[%c0_126, %c2, %c0_127, %c0_128] : memref<1x3x4x32xf32, #tpu.memory_space<vmem>>, vector<1x1x4x32xf32>
    %243 = vector.shape_cast %242 : vector<1x1x4x32xf32> to vector<4x32xf32>
    %c0_129 = arith.constant 0 : index
    %c2_130 = arith.constant 2 : index
    %c0_131 = arith.constant 0 : index
    %c0_132 = arith.constant 0 : index
    %244 = vector.load %arg4[%c0_129, %c2_130, %c0_131, %c0_132] : memref<1x3x32x96xf32, #tpu.memory_space<vmem>>, vector<1x1x32x96xf32>
    %245 = vector.shape_cast %244 : vector<1x1x32x96xf32> to vector<32x96xf32>
    %c0_133 = arith.constant 0 : index
    %c2_134 = arith.constant 2 : index
    %c0_135 = arith.constant 0 : index
    %c0_136 = arith.constant 0 : index
    %246 = vector.load %arg5[%c0_133, %c2_134, %c0_135, %c0_136] : memref<1x3x1x96xf32, #tpu.memory_space<vmem>>, vector<1x1x1x96xf32>
    %247 = vector.shape_cast %246 : vector<1x1x1x96xf32> to vector<1x96xf32>
    %c0_137 = arith.constant 0 : index
    %c2_138 = arith.constant 2 : index
    %c0_139 = arith.constant 0 : index
    %c0_140 = arith.constant 0 : index
    %248 = vector.load %arg6[%c0_137, %c2_138, %c0_139, %c0_140] : memref<1x3x32x32xf32, #tpu.memory_space<vmem>>, vector<1x1x32x32xf32>
    %249 = vector.shape_cast %248 : vector<1x1x32x32xf32> to vector<32x32xf32>
    %c0_141 = arith.constant 0 : index
    %c2_142 = arith.constant 2 : index
    %c0_143 = arith.constant 0 : index
    %c0_144 = arith.constant 0 : index
    %250 = vector.load %arg7[%c0_141, %c2_142, %c0_143, %c0_144] : memref<1x3x1x32xf32, #tpu.memory_space<vmem>>, vector<1x1x1x32xf32>
    %251 = vector.shape_cast %250 : vector<1x1x1x32xf32> to vector<1x32xf32>
    %cst_145 = arith.constant dense<0.000000e+00> : vector<8x96xf32>
    %252 = tpu.matmul %241, %245, %cst_145 {dimension_numbers = #tpu.dot_dimension_numbers<[1], [0], [0], [1], [0, 0, 1, 1], [], []>} : vector<8x32xf32>, vector<32x96xf32>, vector<8x96xf32> -> vector<8x96xf32>
    %253 = vector.broadcast %247 : vector<1x96xf32> to vector<8x96xf32>
    %254 = arith.addf %252, %253 : vector<8x96xf32>
    %255 = vector.extract_strided_slice %254 {offsets = [0, 0], sizes = [8, 32], strides = [1, 1]} : vector<8x96xf32> to vector<8x32xf32>
    %256 = vector.extract_strided_slice %254 {offsets = [0, 32], sizes = [8, 32], strides = [1, 1]} : vector<8x96xf32> to vector<8x32xf32>
    %257 = vector.extract_strided_slice %254 {offsets = [0, 64], sizes = [8, 32], strides = [1, 1]} : vector<8x96xf32> to vector<8x32xf32>
    %258 = vector.extract_strided_slice %255 {offsets = [0, 0], sizes = [8, 16], strides = [1, 1]} : vector<8x32xf32> to vector<8x16xf32>
    %259 = vector.extract_strided_slice %256 {offsets = [0, 0], sizes = [8, 16], strides = [1, 1]} : vector<8x32xf32> to vector<8x16xf32>
    %260 = tpu.transpose %259, [1, 0] : vector<8x16xf32> -> vector<16x8xf32>
    %cst_146 = arith.constant dense<0.000000e+00> : vector<8x8xf32>
    %261 = tpu.matmul %258, %260, %cst_146 {dimension_numbers = #tpu.dot_dimension_numbers<[1], [0], [0], [1], [0, 0, 1, 1], [], []>} : vector<8x16xf32>, vector<16x8xf32>, vector<8x8xf32> -> vector<8x8xf32>
    %cst_147 = arith.constant 2.500000e-01 : f32
    %262 = vector.broadcast %cst_147 : f32 to vector<8x8xf32>
    %263 = arith.mulf %261, %262 : vector<8x8xf32>
    %cst_148 = arith.constant dense<0xFF800000> : vector<8xf32>
    %264 = vector.multi_reduction <maximumf>, %263, %cst_148 [1] : vector<8x8xf32> to vector<8xf32>
    %265 = vector.shape_cast %264 : vector<8xf32> to vector<8x1xf32>
    %266 = vector.broadcast %265 : vector<8x1xf32> to vector<8x8xf32>
    %267 = arith.subf %263, %266 : vector<8x8xf32>
    %268 = math.exp %267 : vector<8x8xf32>
    %cst_149 = arith.constant dense<0.000000e+00> : vector<8xf32>
    %269 = vector.multi_reduction <add>, %268, %cst_149 [1] : vector<8x8xf32> to vector<8xf32>
    %270 = vector.shape_cast %269 : vector<8xf32> to vector<8x1xf32>
    %271 = tpu.reciprocal %270 {approx = true} : vector<8x1xf32> -> vector<8x1xf32>
    %272 = vector.broadcast %271 : vector<8x1xf32> to vector<8x8xf32>
    %273 = arith.mulf %268, %272 : vector<8x8xf32>
    %274 = vector.extract_strided_slice %257 {offsets = [0, 0], sizes = [8, 16], strides = [1, 1]} : vector<8x32xf32> to vector<8x16xf32>
    %cst_150 = arith.constant dense<0.000000e+00> : vector<8x16xf32>
    %275 = tpu.matmul %273, %274, %cst_150 {dimension_numbers = #tpu.dot_dimension_numbers<[1], [0], [0], [1], [0, 0, 1, 1], [], []>} : vector<8x8xf32>, vector<8x16xf32>, vector<8x16xf32> -> vector<8x16xf32>
    %276 = vector.extract_strided_slice %255 {offsets = [0, 16], sizes = [8, 16], strides = [1, 1]} : vector<8x32xf32> to vector<8x16xf32>
    %277 = vector.extract_strided_slice %256 {offsets = [0, 16], sizes = [8, 16], strides = [1, 1]} : vector<8x32xf32> to vector<8x16xf32>
    %278 = tpu.transpose %277, [1, 0] : vector<8x16xf32> -> vector<16x8xf32>
    %cst_151 = arith.constant dense<0.000000e+00> : vector<8x8xf32>
    %279 = tpu.matmul %276, %278, %cst_151 {dimension_numbers = #tpu.dot_dimension_numbers<[1], [0], [0], [1], [0, 0, 1, 1], [], []>} : vector<8x16xf32>, vector<16x8xf32>, vector<8x8xf32> -> vector<8x8xf32>
    %cst_152 = arith.constant 2.500000e-01 : f32
    %280 = vector.broadcast %cst_152 : f32 to vector<8x8xf32>
    %281 = arith.mulf %279, %280 : vector<8x8xf32>
    %cst_153 = arith.constant dense<0xFF800000> : vector<8xf32>
    %282 = vector.multi_reduction <maximumf>, %281, %cst_153 [1] : vector<8x8xf32> to vector<8xf32>
    %283 = vector.shape_cast %282 : vector<8xf32> to vector<8x1xf32>
    %284 = vector.broadcast %283 : vector<8x1xf32> to vector<8x8xf32>
    %285 = arith.subf %281, %284 : vector<8x8xf32>
    %286 = math.exp %285 : vector<8x8xf32>
    %cst_154 = arith.constant dense<0.000000e+00> : vector<8xf32>
    %287 = vector.multi_reduction <add>, %286, %cst_154 [1] : vector<8x8xf32> to vector<8xf32>
    %288 = vector.shape_cast %287 : vector<8xf32> to vector<8x1xf32>
    %289 = tpu.reciprocal %288 {approx = true} : vector<8x1xf32> -> vector<8x1xf32>
    %290 = vector.broadcast %289 : vector<8x1xf32> to vector<8x8xf32>
    %291 = arith.mulf %286, %290 : vector<8x8xf32>
    %292 = vector.extract_strided_slice %257 {offsets = [0, 16], sizes = [8, 16], strides = [1, 1]} : vector<8x32xf32> to vector<8x16xf32>
    %cst_155 = arith.constant dense<0.000000e+00> : vector<8x16xf32>
    %293 = tpu.matmul %291, %292, %cst_155 {dimension_numbers = #tpu.dot_dimension_numbers<[1], [0], [0], [1], [0, 0, 1, 1], [], []>} : vector<8x8xf32>, vector<8x16xf32>, vector<8x16xf32> -> vector<8x16xf32>
    %294 = tpu.concatenate %275, %293 in 1 : vector<8x16xf32>, vector<8x16xf32> -> vector<8x32xf32>
    %cst_156 = arith.constant dense<0.000000e+00> : vector<8x32xf32>
    %295 = tpu.matmul %294, %249, %cst_156 {dimension_numbers = #tpu.dot_dimension_numbers<[1], [0], [0], [1], [0, 0, 1, 1], [], []>} : vector<8x32xf32>, vector<32x32xf32>, vector<8x32xf32> -> vector<8x32xf32>
    %296 = vector.broadcast %251 : vector<1x32xf32> to vector<8x32xf32>
    %297 = arith.addf %295, %296 : vector<8x32xf32>
    %298 = arith.addf %241, %297 : vector<8x32xf32>
    %299 = vector.extract_strided_slice %243 {offsets = [0, 0], sizes = [1, 32], strides = [1, 1]} : vector<4x32xf32> to vector<1x32xf32>
    %300 = vector.extract_strided_slice %243 {offsets = [1, 0], sizes = [1, 32], strides = [1, 1]} : vector<4x32xf32> to vector<1x32xf32>
    %cst_157 = arith.constant dense<0.000000e+00> : vector<8xf32>
    %301 = vector.multi_reduction <add>, %298, %cst_157 [1] : vector<8x32xf32> to vector<8xf32>
    %302 = vector.shape_cast %301 : vector<8xf32> to vector<8x1xf32>
    %cst_158 = arith.constant 3.200000e+01 : f32
    %303 = vector.broadcast %cst_158 : f32 to vector<8x1xf32>
    %304 = arith.divf %302, %303 : vector<8x1xf32>
    %305 = vector.broadcast %304 : vector<8x1xf32> to vector<8x32xf32>
    %306 = arith.subf %298, %305 : vector<8x32xf32>
    %307 = arith.mulf %306, %306 : vector<8x32xf32>
    %cst_159 = arith.constant dense<0.000000e+00> : vector<8xf32>
    %308 = vector.multi_reduction <add>, %307, %cst_159 [1] : vector<8x32xf32> to vector<8xf32>
    %309 = vector.shape_cast %308 : vector<8xf32> to vector<8x1xf32>
    %cst_160 = arith.constant 3.200000e+01 : f32
    %310 = vector.broadcast %cst_160 : f32 to vector<8x1xf32>
    %311 = arith.divf %309, %310 : vector<8x1xf32>
    %cst_161 = arith.constant 9.99999974E-6 : f32
    %312 = vector.broadcast %cst_161 : f32 to vector<8x1xf32>
    %313 = arith.addf %311, %312 : vector<8x1xf32>
    %314 = math.rsqrt %313 : vector<8x1xf32>
    %315 = vector.broadcast %314 : vector<8x1xf32> to vector<8x32xf32>
    %316 = arith.mulf %306, %315 : vector<8x32xf32>
    %317 = vector.broadcast %299 : vector<1x32xf32> to vector<8x32xf32>
    %318 = arith.mulf %316, %317 : vector<8x32xf32>
    %319 = vector.broadcast %300 : vector<1x32xf32> to vector<8x32xf32>
    %320 = arith.addf %318, %319 : vector<8x32xf32>
    %c0_162 = arith.constant 0 : index
    %c2_163 = arith.constant 2 : index
    %c0_164 = arith.constant 0 : index
    %c0_165 = arith.constant 0 : index
    %321 = vector.load %arg8[%c0_162, %c2_163, %c0_164, %c0_165] : memref<1x3x32x64xf32, #tpu.memory_space<vmem>>, vector<1x1x32x64xf32>
    %322 = vector.shape_cast %321 : vector<1x1x32x64xf32> to vector<32x64xf32>
    %cst_166 = arith.constant dense<0.000000e+00> : vector<8x64xf32>
    %323 = tpu.matmul %320, %322, %cst_166 {dimension_numbers = #tpu.dot_dimension_numbers<[1], [0], [0], [1], [0, 0, 1, 1], [], []>} : vector<8x32xf32>, vector<32x64xf32>, vector<8x64xf32> -> vector<8x64xf32>
    %c0_167 = arith.constant 0 : index
    %c2_168 = arith.constant 2 : index
    %c0_169 = arith.constant 0 : index
    %c0_170 = arith.constant 0 : index
    %324 = vector.load %arg9[%c0_167, %c2_168, %c0_169, %c0_170] : memref<1x3x1x64xf32, #tpu.memory_space<vmem>>, vector<1x1x1x64xf32>
    %325 = vector.shape_cast %324 : vector<1x1x1x64xf32> to vector<1x64xf32>
    %326 = vector.broadcast %325 : vector<1x64xf32> to vector<8x64xf32>
    %327 = arith.addf %323, %326 : vector<8x64xf32>
    %cst_171 = arith.constant 0.000000e+00 : f32
    %328 = vector.broadcast %cst_171 : f32 to vector<8x64xf32>
    %329 = arith.maximumf %327, %328 : vector<8x64xf32>
    %c0_172 = arith.constant 0 : index
    %c2_173 = arith.constant 2 : index
    %c0_174 = arith.constant 0 : index
    %c0_175 = arith.constant 0 : index
    %330 = vector.load %arg10[%c0_172, %c2_173, %c0_174, %c0_175] : memref<1x3x64x32xf32, #tpu.memory_space<vmem>>, vector<1x1x64x32xf32>
    %331 = vector.shape_cast %330 : vector<1x1x64x32xf32> to vector<64x32xf32>
    %cst_176 = arith.constant dense<0.000000e+00> : vector<8x32xf32>
    %332 = tpu.matmul %329, %331, %cst_176 {dimension_numbers = #tpu.dot_dimension_numbers<[1], [0], [0], [1], [0, 0, 1, 1], [], []>} : vector<8x64xf32>, vector<64x32xf32>, vector<8x32xf32> -> vector<8x32xf32>
    %c0_177 = arith.constant 0 : index
    %c2_178 = arith.constant 2 : index
    %c0_179 = arith.constant 0 : index
    %c0_180 = arith.constant 0 : index
    %333 = vector.load %arg11[%c0_177, %c2_178, %c0_179, %c0_180] : memref<1x3x1x32xf32, #tpu.memory_space<vmem>>, vector<1x1x1x32xf32>
    %334 = vector.shape_cast %333 : vector<1x1x1x32xf32> to vector<1x32xf32>
    %335 = vector.broadcast %334 : vector<1x32xf32> to vector<8x32xf32>
    %336 = arith.addf %332, %335 : vector<8x32xf32>
    %337 = arith.addf %320, %336 : vector<8x32xf32>
    %338 = vector.extract_strided_slice %243 {offsets = [2, 0], sizes = [1, 32], strides = [1, 1]} : vector<4x32xf32> to vector<1x32xf32>
    %339 = vector.extract_strided_slice %243 {offsets = [3, 0], sizes = [1, 32], strides = [1, 1]} : vector<4x32xf32> to vector<1x32xf32>
    %cst_181 = arith.constant dense<0.000000e+00> : vector<8xf32>
    %340 = vector.multi_reduction <add>, %337, %cst_181 [1] : vector<8x32xf32> to vector<8xf32>
    %341 = vector.shape_cast %340 : vector<8xf32> to vector<8x1xf32>
    %cst_182 = arith.constant 3.200000e+01 : f32
    %342 = vector.broadcast %cst_182 : f32 to vector<8x1xf32>
    %343 = arith.divf %341, %342 : vector<8x1xf32>
    %344 = vector.broadcast %343 : vector<8x1xf32> to vector<8x32xf32>
    %345 = arith.subf %337, %344 : vector<8x32xf32>
    %346 = arith.mulf %345, %345 : vector<8x32xf32>
    %cst_183 = arith.constant dense<0.000000e+00> : vector<8xf32>
    %347 = vector.multi_reduction <add>, %346, %cst_183 [1] : vector<8x32xf32> to vector<8xf32>
    %348 = vector.shape_cast %347 : vector<8xf32> to vector<8x1xf32>
    %cst_184 = arith.constant 3.200000e+01 : f32
    %349 = vector.broadcast %cst_184 : f32 to vector<8x1xf32>
    %350 = arith.divf %348, %349 : vector<8x1xf32>
    %cst_185 = arith.constant 9.99999974E-6 : f32
    %351 = vector.broadcast %cst_185 : f32 to vector<8x1xf32>
    %352 = arith.addf %350, %351 : vector<8x1xf32>
    %353 = math.rsqrt %352 : vector<8x1xf32>
    %354 = vector.broadcast %353 : vector<8x1xf32> to vector<8x32xf32>
    %355 = arith.mulf %345, %354 : vector<8x32xf32>
    %356 = vector.broadcast %338 : vector<1x32xf32> to vector<8x32xf32>
    %357 = arith.mulf %355, %356 : vector<8x32xf32>
    %358 = vector.broadcast %339 : vector<1x32xf32> to vector<8x32xf32>
    %359 = arith.addf %357, %358 : vector<8x32xf32>
    %c0_186 = arith.constant 0 : index
    %c0_187 = arith.constant 0 : index
    %c0_188 = arith.constant 0 : index
    %360 = vector.load %arg26[%c0_186, %c0_187, %c0_188] : memref<1x4x32xf32, #tpu.memory_space<vmem>>, vector<1x4x32xf32>
    %361 = vector.shape_cast %360 : vector<1x4x32xf32> to vector<4x32xf32>
    %362 = vector.extract_strided_slice %361 {offsets = [0, 0], sizes = [1, 32], strides = [1, 1]} : vector<4x32xf32> to vector<1x32xf32>
    %363 = vector.extract_strided_slice %361 {offsets = [1, 0], sizes = [1, 32], strides = [1, 1]} : vector<4x32xf32> to vector<1x32xf32>
    %cst_189 = arith.constant dense<0.000000e+00> : vector<8xf32>
    %364 = vector.multi_reduction <add>, %359, %cst_189 [1] : vector<8x32xf32> to vector<8xf32>
    %365 = vector.shape_cast %364 : vector<8xf32> to vector<8x1xf32>
    %cst_190 = arith.constant 3.200000e+01 : f32
    %366 = vector.broadcast %cst_190 : f32 to vector<8x1xf32>
    %367 = arith.divf %365, %366 : vector<8x1xf32>
    %368 = vector.broadcast %367 : vector<8x1xf32> to vector<8x32xf32>
    %369 = arith.subf %359, %368 : vector<8x32xf32>
    %370 = arith.mulf %369, %369 : vector<8x32xf32>
    %cst_191 = arith.constant dense<0.000000e+00> : vector<8xf32>
    %371 = vector.multi_reduction <add>, %370, %cst_191 [1] : vector<8x32xf32> to vector<8xf32>
    %372 = vector.shape_cast %371 : vector<8xf32> to vector<8x1xf32>
    %cst_192 = arith.constant 3.200000e+01 : f32
    %373 = vector.broadcast %cst_192 : f32 to vector<8x1xf32>
    %374 = arith.divf %372, %373 : vector<8x1xf32>
    %cst_193 = arith.constant 9.99999974E-6 : f32
    %375 = vector.broadcast %cst_193 : f32 to vector<8x1xf32>
    %376 = arith.addf %374, %375 : vector<8x1xf32>
    %377 = math.rsqrt %376 : vector<8x1xf32>
    %378 = vector.broadcast %377 : vector<8x1xf32> to vector<8x32xf32>
    %379 = arith.mulf %369, %378 : vector<8x32xf32>
    %380 = vector.broadcast %362 : vector<1x32xf32> to vector<8x32xf32>
    %381 = arith.mulf %379, %380 : vector<8x32xf32>
    %382 = vector.broadcast %363 : vector<1x32xf32> to vector<8x32xf32>
    %383 = arith.addf %381, %382 : vector<8x32xf32>
    %cst_194 = arith.constant 1.000000e+00 : f32
    %384 = vector.broadcast %cst_194 : f32 to vector<1x32xf32>
    %c0_195 = arith.constant 0 : index
    %c0_196 = arith.constant 0 : index
    %c0_197 = arith.constant 0 : index
    %c0_198 = arith.constant 0 : index
    %385 = vector.load %arg25[%c0_195, %c0_196, %c0_197, %c0_198] : memref<1x3x6x32xf32, #tpu.memory_space<vmem>>, vector<1x1x6x32xf32>
    %386 = vector.shape_cast %385 : vector<1x1x6x32xf32> to vector<6x32xf32>
    %c0_199 = arith.constant 0 : index
    %c0_200 = arith.constant 0 : index
    %c0_201 = arith.constant 0 : index
    %c0_202 = arith.constant 0 : index
    %387 = vector.load %arg13[%c0_199, %c0_200, %c0_201, %c0_202] : memref<1x3x32x96xf32, #tpu.memory_space<vmem>>, vector<1x1x32x96xf32>
    %388 = vector.shape_cast %387 : vector<1x1x32x96xf32> to vector<32x96xf32>
    %c0_203 = arith.constant 0 : index
    %c0_204 = arith.constant 0 : index
    %c0_205 = arith.constant 0 : index
    %c0_206 = arith.constant 0 : index
    %389 = vector.load %arg14[%c0_203, %c0_204, %c0_205, %c0_206] : memref<1x3x1x96xf32, #tpu.memory_space<vmem>>, vector<1x1x1x96xf32>
    %390 = vector.shape_cast %389 : vector<1x1x1x96xf32> to vector<1x96xf32>
    %c0_207 = arith.constant 0 : index
    %c0_208 = arith.constant 0 : index
    %c0_209 = arith.constant 0 : index
    %c0_210 = arith.constant 0 : index
    %391 = vector.load %arg15[%c0_207, %c0_208, %c0_209, %c0_210] : memref<1x3x32x32xf32, #tpu.memory_space<vmem>>, vector<1x1x32x32xf32>
    %392 = vector.shape_cast %391 : vector<1x1x32x32xf32> to vector<32x32xf32>
    %c0_211 = arith.constant 0 : index
    %c0_212 = arith.constant 0 : index
    %c0_213 = arith.constant 0 : index
    %c0_214 = arith.constant 0 : index
    %393 = vector.load %arg16[%c0_211, %c0_212, %c0_213, %c0_214] : memref<1x3x1x32xf32, #tpu.memory_space<vmem>>, vector<1x1x1x32xf32>
    %394 = vector.shape_cast %393 : vector<1x1x1x32xf32> to vector<1x32xf32>
    %395 = vector.extract_strided_slice %388 {offsets = [0, 64], sizes = [32, 32], strides = [1, 1]} : vector<32x96xf32> to vector<32x32xf32>
    %cst_215 = arith.constant dense<0.000000e+00> : vector<1x32xf32>
    %396 = tpu.matmul %384, %395, %cst_215 {dimension_numbers = #tpu.dot_dimension_numbers<[1], [0], [0], [1], [0, 0, 1, 1], [], []>} : vector<1x32xf32>, vector<32x32xf32>, vector<1x32xf32> -> vector<1x32xf32>
    %397 = vector.extract_strided_slice %390 {offsets = [0, 64], sizes = [1, 32], strides = [1, 1]} : vector<1x96xf32> to vector<1x32xf32>
    %398 = arith.addf %396, %397 : vector<1x32xf32>
    %cst_216 = arith.constant dense<0.000000e+00> : vector<1x32xf32>
    %399 = tpu.matmul %398, %392, %cst_216 {dimension_numbers = #tpu.dot_dimension_numbers<[1], [0], [0], [1], [0, 0, 1, 1], [], []>} : vector<1x32xf32>, vector<32x32xf32>, vector<1x32xf32> -> vector<1x32xf32>
    %400 = arith.addf %399, %394 : vector<1x32xf32>
    %401 = arith.addf %384, %400 : vector<1x32xf32>
    %402 = vector.extract_strided_slice %386 {offsets = [0, 0], sizes = [1, 32], strides = [1, 1]} : vector<6x32xf32> to vector<1x32xf32>
    %403 = vector.extract_strided_slice %386 {offsets = [1, 0], sizes = [1, 32], strides = [1, 1]} : vector<6x32xf32> to vector<1x32xf32>
    %cst_217 = arith.constant dense<0.000000e+00> : vector<1xf32>
    %404 = vector.multi_reduction <add>, %401, %cst_217 [1] : vector<1x32xf32> to vector<1xf32>
    %405 = vector.shape_cast %404 : vector<1xf32> to vector<1x1xf32>
    %cst_218 = arith.constant 3.200000e+01 : f32
    %406 = vector.broadcast %cst_218 : f32 to vector<1x1xf32>
    %407 = arith.divf %405, %406 : vector<1x1xf32>
    %408 = vector.broadcast %407 : vector<1x1xf32> to vector<1x32xf32>
    %409 = arith.subf %401, %408 : vector<1x32xf32>
    %410 = arith.mulf %409, %409 : vector<1x32xf32>
    %cst_219 = arith.constant dense<0.000000e+00> : vector<1xf32>
    %411 = vector.multi_reduction <add>, %410, %cst_219 [1] : vector<1x32xf32> to vector<1xf32>
    %412 = vector.shape_cast %411 : vector<1xf32> to vector<1x1xf32>
    %cst_220 = arith.constant 3.200000e+01 : f32
    %413 = vector.broadcast %cst_220 : f32 to vector<1x1xf32>
    %414 = arith.divf %412, %413 : vector<1x1xf32>
    %cst_221 = arith.constant 9.99999974E-6 : f32
    %415 = vector.broadcast %cst_221 : f32 to vector<1x1xf32>
    %416 = arith.addf %414, %415 : vector<1x1xf32>
    %417 = math.rsqrt %416 : vector<1x1xf32>
    %418 = vector.broadcast %417 : vector<1x1xf32> to vector<1x32xf32>
    %419 = arith.mulf %409, %418 : vector<1x32xf32>
    %420 = arith.mulf %419, %402 : vector<1x32xf32>
    %421 = arith.addf %420, %403 : vector<1x32xf32>
    %c0_222 = arith.constant 0 : index
    %c0_223 = arith.constant 0 : index
    %c0_224 = arith.constant 0 : index
    %c0_225 = arith.constant 0 : index
    %422 = vector.load %arg17[%c0_222, %c0_223, %c0_224, %c0_225] : memref<1x3x32x96xf32, #tpu.memory_space<vmem>>, vector<1x1x32x96xf32>
    %423 = vector.shape_cast %422 : vector<1x1x32x96xf32> to vector<32x96xf32>
    %c0_226 = arith.constant 0 : index
    %c0_227 = arith.constant 0 : index
    %c0_228 = arith.constant 0 : index
    %c0_229 = arith.constant 0 : index
    %424 = vector.load %arg18[%c0_226, %c0_227, %c0_228, %c0_229] : memref<1x3x1x96xf32, #tpu.memory_space<vmem>>, vector<1x1x1x96xf32>
    %425 = vector.shape_cast %424 : vector<1x1x1x96xf32> to vector<1x96xf32>
    %c0_230 = arith.constant 0 : index
    %c0_231 = arith.constant 0 : index
    %c0_232 = arith.constant 0 : index
    %c0_233 = arith.constant 0 : index
    %426 = vector.load %arg19[%c0_230, %c0_231, %c0_232, %c0_233] : memref<1x3x32x32xf32, #tpu.memory_space<vmem>>, vector<1x1x32x32xf32>
    %427 = vector.shape_cast %426 : vector<1x1x32x32xf32> to vector<32x32xf32>
    %c0_234 = arith.constant 0 : index
    %c0_235 = arith.constant 0 : index
    %c0_236 = arith.constant 0 : index
    %c0_237 = arith.constant 0 : index
    %428 = vector.load %arg20[%c0_234, %c0_235, %c0_236, %c0_237] : memref<1x3x1x32xf32, #tpu.memory_space<vmem>>, vector<1x1x1x32xf32>
    %429 = vector.shape_cast %428 : vector<1x1x1x32xf32> to vector<1x32xf32>
    %430 = vector.extract_strided_slice %423 {offsets = [0, 0], sizes = [32, 32], strides = [1, 1]} : vector<32x96xf32> to vector<32x32xf32>
    %cst_238 = arith.constant dense<0.000000e+00> : vector<1x32xf32>
    %431 = tpu.matmul %421, %430, %cst_238 {dimension_numbers = #tpu.dot_dimension_numbers<[1], [0], [0], [1], [0, 0, 1, 1], [], []>} : vector<1x32xf32>, vector<32x32xf32>, vector<1x32xf32> -> vector<1x32xf32>
    %432 = vector.extract_strided_slice %425 {offsets = [0, 0], sizes = [1, 32], strides = [1, 1]} : vector<1x96xf32> to vector<1x32xf32>
    %433 = arith.addf %431, %432 : vector<1x32xf32>
    %434 = vector.extract_strided_slice %423 {offsets = [0, 32], sizes = [32, 64], strides = [1, 1]} : vector<32x96xf32> to vector<32x64xf32>
    %cst_239 = arith.constant dense<0.000000e+00> : vector<8x64xf32>
    %435 = tpu.matmul %383, %434, %cst_239 {dimension_numbers = #tpu.dot_dimension_numbers<[1], [0], [0], [1], [0, 0, 1, 1], [], []>} : vector<8x32xf32>, vector<32x64xf32>, vector<8x64xf32> -> vector<8x64xf32>
    %436 = vector.extract_strided_slice %425 {offsets = [0, 32], sizes = [1, 64], strides = [1, 1]} : vector<1x96xf32> to vector<1x64xf32>
    %437 = vector.broadcast %436 : vector<1x64xf32> to vector<8x64xf32>
    %438 = arith.addf %435, %437 : vector<8x64xf32>
    %439 = vector.extract_strided_slice %438 {offsets = [0, 0], sizes = [8, 32], strides = [1, 1]} : vector<8x64xf32> to vector<8x32xf32>
    %440 = vector.extract_strided_slice %438 {offsets = [0, 32], sizes = [8, 32], strides = [1, 1]} : vector<8x64xf32> to vector<8x32xf32>
    %441 = vector.extract_strided_slice %433 {offsets = [0, 0], sizes = [1, 16], strides = [1, 1]} : vector<1x32xf32> to vector<1x16xf32>
    %442 = vector.extract_strided_slice %439 {offsets = [0, 0], sizes = [8, 16], strides = [1, 1]} : vector<8x32xf32> to vector<8x16xf32>
    %443 = tpu.transpose %442, [1, 0] : vector<8x16xf32> -> vector<16x8xf32>
    %cst_240 = arith.constant dense<0.000000e+00> : vector<1x8xf32>
    %444 = tpu.matmul %441, %443, %cst_240 {dimension_numbers = #tpu.dot_dimension_numbers<[1], [0], [0], [1], [0, 0, 1, 1], [], []>} : vector<1x16xf32>, vector<16x8xf32>, vector<1x8xf32> -> vector<1x8xf32>
    %cst_241 = arith.constant 2.500000e-01 : f32
    %445 = vector.broadcast %cst_241 : f32 to vector<1x8xf32>
    %446 = arith.mulf %444, %445 : vector<1x8xf32>
    %cst_242 = arith.constant dense<0xFF800000> : vector<1xf32>
    %447 = vector.multi_reduction <maximumf>, %446, %cst_242 [1] : vector<1x8xf32> to vector<1xf32>
    %448 = vector.shape_cast %447 : vector<1xf32> to vector<1x1xf32>
    %449 = vector.broadcast %448 : vector<1x1xf32> to vector<1x8xf32>
    %450 = arith.subf %446, %449 : vector<1x8xf32>
    %451 = math.exp %450 : vector<1x8xf32>
    %cst_243 = arith.constant dense<0.000000e+00> : vector<1xf32>
    %452 = vector.multi_reduction <add>, %451, %cst_243 [1] : vector<1x8xf32> to vector<1xf32>
    %453 = vector.shape_cast %452 : vector<1xf32> to vector<1x1xf32>
    %454 = tpu.reciprocal %453 {approx = true} : vector<1x1xf32> -> vector<1x1xf32>
    %455 = vector.broadcast %454 : vector<1x1xf32> to vector<1x8xf32>
    %456 = arith.mulf %451, %455 : vector<1x8xf32>
    %457 = vector.extract_strided_slice %440 {offsets = [0, 0], sizes = [8, 16], strides = [1, 1]} : vector<8x32xf32> to vector<8x16xf32>
    %cst_244 = arith.constant dense<0.000000e+00> : vector<1x16xf32>
    %458 = tpu.matmul %456, %457, %cst_244 {dimension_numbers = #tpu.dot_dimension_numbers<[1], [0], [0], [1], [0, 0, 1, 1], [], []>} : vector<1x8xf32>, vector<8x16xf32>, vector<1x16xf32> -> vector<1x16xf32>
    %459 = vector.extract_strided_slice %433 {offsets = [0, 16], sizes = [1, 16], strides = [1, 1]} : vector<1x32xf32> to vector<1x16xf32>
    %460 = vector.extract_strided_slice %439 {offsets = [0, 16], sizes = [8, 16], strides = [1, 1]} : vector<8x32xf32> to vector<8x16xf32>
    %461 = tpu.transpose %460, [1, 0] : vector<8x16xf32> -> vector<16x8xf32>
    %cst_245 = arith.constant dense<0.000000e+00> : vector<1x8xf32>
    %462 = tpu.matmul %459, %461, %cst_245 {dimension_numbers = #tpu.dot_dimension_numbers<[1], [0], [0], [1], [0, 0, 1, 1], [], []>} : vector<1x16xf32>, vector<16x8xf32>, vector<1x8xf32> -> vector<1x8xf32>
    %cst_246 = arith.constant 2.500000e-01 : f32
    %463 = vector.broadcast %cst_246 : f32 to vector<1x8xf32>
    %464 = arith.mulf %462, %463 : vector<1x8xf32>
    %cst_247 = arith.constant dense<0xFF800000> : vector<1xf32>
    %465 = vector.multi_reduction <maximumf>, %464, %cst_247 [1] : vector<1x8xf32> to vector<1xf32>
    %466 = vector.shape_cast %465 : vector<1xf32> to vector<1x1xf32>
    %467 = vector.broadcast %466 : vector<1x1xf32> to vector<1x8xf32>
    %468 = arith.subf %464, %467 : vector<1x8xf32>
    %469 = math.exp %468 : vector<1x8xf32>
    %cst_248 = arith.constant dense<0.000000e+00> : vector<1xf32>
    %470 = vector.multi_reduction <add>, %469, %cst_248 [1] : vector<1x8xf32> to vector<1xf32>
    %471 = vector.shape_cast %470 : vector<1xf32> to vector<1x1xf32>
    %472 = tpu.reciprocal %471 {approx = true} : vector<1x1xf32> -> vector<1x1xf32>
    %473 = vector.broadcast %472 : vector<1x1xf32> to vector<1x8xf32>
    %474 = arith.mulf %469, %473 : vector<1x8xf32>
    %475 = vector.extract_strided_slice %440 {offsets = [0, 16], sizes = [8, 16], strides = [1, 1]} : vector<8x32xf32> to vector<8x16xf32>
    %cst_249 = arith.constant dense<0.000000e+00> : vector<1x16xf32>
    %476 = tpu.matmul %474, %475, %cst_249 {dimension_numbers = #tpu.dot_dimension_numbers<[1], [0], [0], [1], [0, 0, 1, 1], [], []>} : vector<1x8xf32>, vector<8x16xf32>, vector<1x16xf32> -> vector<1x16xf32>
    %477 = tpu.concatenate %458, %476 in 1 : vector<1x16xf32>, vector<1x16xf32> -> vector<1x32xf32>
    %cst_250 = arith.constant dense<0.000000e+00> : vector<1x32xf32>
    %478 = tpu.matmul %477, %427, %cst_250 {dimension_numbers = #tpu.dot_dimension_numbers<[1], [0], [0], [1], [0, 0, 1, 1], [], []>} : vector<1x32xf32>, vector<32x32xf32>, vector<1x32xf32> -> vector<1x32xf32>
    %479 = arith.addf %478, %429 : vector<1x32xf32>
    %480 = arith.addf %421, %479 : vector<1x32xf32>
    %481 = vector.extract_strided_slice %386 {offsets = [2, 0], sizes = [1, 32], strides = [1, 1]} : vector<6x32xf32> to vector<1x32xf32>
    %482 = vector.extract_strided_slice %386 {offsets = [3, 0], sizes = [1, 32], strides = [1, 1]} : vector<6x32xf32> to vector<1x32xf32>
    %cst_251 = arith.constant dense<0.000000e+00> : vector<1xf32>
    %483 = vector.multi_reduction <add>, %480, %cst_251 [1] : vector<1x32xf32> to vector<1xf32>
    %484 = vector.shape_cast %483 : vector<1xf32> to vector<1x1xf32>
    %cst_252 = arith.constant 3.200000e+01 : f32
    %485 = vector.broadcast %cst_252 : f32 to vector<1x1xf32>
    %486 = arith.divf %484, %485 : vector<1x1xf32>
    %487 = vector.broadcast %486 : vector<1x1xf32> to vector<1x32xf32>
    %488 = arith.subf %480, %487 : vector<1x32xf32>
    %489 = arith.mulf %488, %488 : vector<1x32xf32>
    %cst_253 = arith.constant dense<0.000000e+00> : vector<1xf32>
    %490 = vector.multi_reduction <add>, %489, %cst_253 [1] : vector<1x32xf32> to vector<1xf32>
    %491 = vector.shape_cast %490 : vector<1xf32> to vector<1x1xf32>
    %cst_254 = arith.constant 3.200000e+01 : f32
    %492 = vector.broadcast %cst_254 : f32 to vector<1x1xf32>
    %493 = arith.divf %491, %492 : vector<1x1xf32>
    %cst_255 = arith.constant 9.99999974E-6 : f32
    %494 = vector.broadcast %cst_255 : f32 to vector<1x1xf32>
    %495 = arith.addf %493, %494 : vector<1x1xf32>
    %496 = math.rsqrt %495 : vector<1x1xf32>
    %497 = vector.broadcast %496 : vector<1x1xf32> to vector<1x32xf32>
    %498 = arith.mulf %488, %497 : vector<1x32xf32>
    %499 = arith.mulf %498, %481 : vector<1x32xf32>
    %500 = arith.addf %499, %482 : vector<1x32xf32>
    %c0_256 = arith.constant 0 : index
    %c0_257 = arith.constant 0 : index
    %c0_258 = arith.constant 0 : index
    %c0_259 = arith.constant 0 : index
    %501 = vector.load %arg21[%c0_256, %c0_257, %c0_258, %c0_259] : memref<1x3x32x64xf32, #tpu.memory_space<vmem>>, vector<1x1x32x64xf32>
    %502 = vector.shape_cast %501 : vector<1x1x32x64xf32> to vector<32x64xf32>
    %cst_260 = arith.constant dense<0.000000e+00> : vector<1x64xf32>
    %503 = tpu.matmul %500, %502, %cst_260 {dimension_numbers = #tpu.dot_dimension_numbers<[1], [0], [0], [1], [0, 0, 1, 1], [], []>} : vector<1x32xf32>, vector<32x64xf32>, vector<1x64xf32> -> vector<1x64xf32>
    %c0_261 = arith.constant 0 : index
    %c0_262 = arith.constant 0 : index
    %c0_263 = arith.constant 0 : index
    %c0_264 = arith.constant 0 : index
    %504 = vector.load %arg22[%c0_261, %c0_262, %c0_263, %c0_264] : memref<1x3x1x64xf32, #tpu.memory_space<vmem>>, vector<1x1x1x64xf32>
    %505 = vector.shape_cast %504 : vector<1x1x1x64xf32> to vector<1x64xf32>
    %506 = arith.addf %503, %505 : vector<1x64xf32>
    %cst_265 = arith.constant 0.000000e+00 : f32
    %507 = vector.broadcast %cst_265 : f32 to vector<1x64xf32>
    %508 = arith.maximumf %506, %507 : vector<1x64xf32>
    %c0_266 = arith.constant 0 : index
    %c0_267 = arith.constant 0 : index
    %c0_268 = arith.constant 0 : index
    %c0_269 = arith.constant 0 : index
    %509 = vector.load %arg23[%c0_266, %c0_267, %c0_268, %c0_269] : memref<1x3x64x32xf32, #tpu.memory_space<vmem>>, vector<1x1x64x32xf32>
    %510 = vector.shape_cast %509 : vector<1x1x64x32xf32> to vector<64x32xf32>
    %cst_270 = arith.constant dense<0.000000e+00> : vector<1x32xf32>
    %511 = tpu.matmul %508, %510, %cst_270 {dimension_numbers = #tpu.dot_dimension_numbers<[1], [0], [0], [1], [0, 0, 1, 1], [], []>} : vector<1x64xf32>, vector<64x32xf32>, vector<1x32xf32> -> vector<1x32xf32>
    %c0_271 = arith.constant 0 : index
    %c0_272 = arith.constant 0 : index
    %c0_273 = arith.constant 0 : index
    %c0_274 = arith.constant 0 : index
    %512 = vector.load %arg24[%c0_271, %c0_272, %c0_273, %c0_274] : memref<1x3x1x32xf32, #tpu.memory_space<vmem>>, vector<1x1x1x32xf32>
    %513 = vector.shape_cast %512 : vector<1x1x1x32xf32> to vector<1x32xf32>
    %514 = arith.addf %511, %513 : vector<1x32xf32>
    %515 = arith.addf %500, %514 : vector<1x32xf32>
    %516 = vector.extract_strided_slice %386 {offsets = [4, 0], sizes = [1, 32], strides = [1, 1]} : vector<6x32xf32> to vector<1x32xf32>
    %517 = vector.extract_strided_slice %386 {offsets = [5, 0], sizes = [1, 32], strides = [1, 1]} : vector<6x32xf32> to vector<1x32xf32>
    %cst_275 = arith.constant dense<0.000000e+00> : vector<1xf32>
    %518 = vector.multi_reduction <add>, %515, %cst_275 [1] : vector<1x32xf32> to vector<1xf32>
    %519 = vector.shape_cast %518 : vector<1xf32> to vector<1x1xf32>
    %cst_276 = arith.constant 3.200000e+01 : f32
    %520 = vector.broadcast %cst_276 : f32 to vector<1x1xf32>
    %521 = arith.divf %519, %520 : vector<1x1xf32>
    %522 = vector.broadcast %521 : vector<1x1xf32> to vector<1x32xf32>
    %523 = arith.subf %515, %522 : vector<1x32xf32>
    %524 = arith.mulf %523, %523 : vector<1x32xf32>
    %cst_277 = arith.constant dense<0.000000e+00> : vector<1xf32>
    %525 = vector.multi_reduction <add>, %524, %cst_277 [1] : vector<1x32xf32> to vector<1xf32>
    %526 = vector.shape_cast %525 : vector<1xf32> to vector<1x1xf32>
    %cst_278 = arith.constant 3.200000e+01 : f32
    %527 = vector.broadcast %cst_278 : f32 to vector<1x1xf32>
    %528 = arith.divf %526, %527 : vector<1x1xf32>
    %cst_279 = arith.constant 9.99999974E-6 : f32
    %529 = vector.broadcast %cst_279 : f32 to vector<1x1xf32>
    %530 = arith.addf %528, %529 : vector<1x1xf32>
    %531 = math.rsqrt %530 : vector<1x1xf32>
    %532 = vector.broadcast %531 : vector<1x1xf32> to vector<1x32xf32>
    %533 = arith.mulf %523, %532 : vector<1x32xf32>
    %534 = arith.mulf %533, %516 : vector<1x32xf32>
    %535 = arith.addf %534, %517 : vector<1x32xf32>
    %c0_280 = arith.constant 0 : index
    %c1_281 = arith.constant 1 : index
    %c0_282 = arith.constant 0 : index
    %c0_283 = arith.constant 0 : index
    %536 = vector.load %arg25[%c0_280, %c1_281, %c0_282, %c0_283] : memref<1x3x6x32xf32, #tpu.memory_space<vmem>>, vector<1x1x6x32xf32>
    %537 = vector.shape_cast %536 : vector<1x1x6x32xf32> to vector<6x32xf32>
    %c0_284 = arith.constant 0 : index
    %c1_285 = arith.constant 1 : index
    %c0_286 = arith.constant 0 : index
    %c0_287 = arith.constant 0 : index
    %538 = vector.load %arg13[%c0_284, %c1_285, %c0_286, %c0_287] : memref<1x3x32x96xf32, #tpu.memory_space<vmem>>, vector<1x1x32x96xf32>
    %539 = vector.shape_cast %538 : vector<1x1x32x96xf32> to vector<32x96xf32>
    %c0_288 = arith.constant 0 : index
    %c1_289 = arith.constant 1 : index
    %c0_290 = arith.constant 0 : index
    %c0_291 = arith.constant 0 : index
    %540 = vector.load %arg14[%c0_288, %c1_289, %c0_290, %c0_291] : memref<1x3x1x96xf32, #tpu.memory_space<vmem>>, vector<1x1x1x96xf32>
    %541 = vector.shape_cast %540 : vector<1x1x1x96xf32> to vector<1x96xf32>
    %c0_292 = arith.constant 0 : index
    %c1_293 = arith.constant 1 : index
    %c0_294 = arith.constant 0 : index
    %c0_295 = arith.constant 0 : index
    %542 = vector.load %arg15[%c0_292, %c1_293, %c0_294, %c0_295] : memref<1x3x32x32xf32, #tpu.memory_space<vmem>>, vector<1x1x32x32xf32>
    %543 = vector.shape_cast %542 : vector<1x1x32x32xf32> to vector<32x32xf32>
    %c0_296 = arith.constant 0 : index
    %c1_297 = arith.constant 1 : index
    %c0_298 = arith.constant 0 : index
    %c0_299 = arith.constant 0 : index
    %544 = vector.load %arg16[%c0_296, %c1_297, %c0_298, %c0_299] : memref<1x3x1x32xf32, #tpu.memory_space<vmem>>, vector<1x1x1x32xf32>
    %545 = vector.shape_cast %544 : vector<1x1x1x32xf32> to vector<1x32xf32>
    %546 = vector.extract_strided_slice %539 {offsets = [0, 64], sizes = [32, 32], strides = [1, 1]} : vector<32x96xf32> to vector<32x32xf32>
    %cst_300 = arith.constant dense<0.000000e+00> : vector<1x32xf32>
    %547 = tpu.matmul %535, %546, %cst_300 {dimension_numbers = #tpu.dot_dimension_numbers<[1], [0], [0], [1], [0, 0, 1, 1], [], []>} : vector<1x32xf32>, vector<32x32xf32>, vector<1x32xf32> -> vector<1x32xf32>
    %548 = vector.extract_strided_slice %541 {offsets = [0, 64], sizes = [1, 32], strides = [1, 1]} : vector<1x96xf32> to vector<1x32xf32>
    %549 = arith.addf %547, %548 : vector<1x32xf32>
    %cst_301 = arith.constant dense<0.000000e+00> : vector<1x32xf32>
    %550 = tpu.matmul %549, %543, %cst_301 {dimension_numbers = #tpu.dot_dimension_numbers<[1], [0], [0], [1], [0, 0, 1, 1], [], []>} : vector<1x32xf32>, vector<32x32xf32>, vector<1x32xf32> -> vector<1x32xf32>
    %551 = arith.addf %550, %545 : vector<1x32xf32>
    %552 = arith.addf %535, %551 : vector<1x32xf32>
    %553 = vector.extract_strided_slice %537 {offsets = [0, 0], sizes = [1, 32], strides = [1, 1]} : vector<6x32xf32> to vector<1x32xf32>
    %554 = vector.extract_strided_slice %537 {offsets = [1, 0], sizes = [1, 32], strides = [1, 1]} : vector<6x32xf32> to vector<1x32xf32>
    %cst_302 = arith.constant dense<0.000000e+00> : vector<1xf32>
    %555 = vector.multi_reduction <add>, %552, %cst_302 [1] : vector<1x32xf32> to vector<1xf32>
    %556 = vector.shape_cast %555 : vector<1xf32> to vector<1x1xf32>
    %cst_303 = arith.constant 3.200000e+01 : f32
    %557 = vector.broadcast %cst_303 : f32 to vector<1x1xf32>
    %558 = arith.divf %556, %557 : vector<1x1xf32>
    %559 = vector.broadcast %558 : vector<1x1xf32> to vector<1x32xf32>
    %560 = arith.subf %552, %559 : vector<1x32xf32>
    %561 = arith.mulf %560, %560 : vector<1x32xf32>
    %cst_304 = arith.constant dense<0.000000e+00> : vector<1xf32>
    %562 = vector.multi_reduction <add>, %561, %cst_304 [1] : vector<1x32xf32> to vector<1xf32>
    %563 = vector.shape_cast %562 : vector<1xf32> to vector<1x1xf32>
    %cst_305 = arith.constant 3.200000e+01 : f32
    %564 = vector.broadcast %cst_305 : f32 to vector<1x1xf32>
    %565 = arith.divf %563, %564 : vector<1x1xf32>
    %cst_306 = arith.constant 9.99999974E-6 : f32
    %566 = vector.broadcast %cst_306 : f32 to vector<1x1xf32>
    %567 = arith.addf %565, %566 : vector<1x1xf32>
    %568 = math.rsqrt %567 : vector<1x1xf32>
    %569 = vector.broadcast %568 : vector<1x1xf32> to vector<1x32xf32>
    %570 = arith.mulf %560, %569 : vector<1x32xf32>
    %571 = arith.mulf %570, %553 : vector<1x32xf32>
    %572 = arith.addf %571, %554 : vector<1x32xf32>
    %c0_307 = arith.constant 0 : index
    %c1_308 = arith.constant 1 : index
    %c0_309 = arith.constant 0 : index
    %c0_310 = arith.constant 0 : index
    %573 = vector.load %arg17[%c0_307, %c1_308, %c0_309, %c0_310] : memref<1x3x32x96xf32, #tpu.memory_space<vmem>>, vector<1x1x32x96xf32>
    %574 = vector.shape_cast %573 : vector<1x1x32x96xf32> to vector<32x96xf32>
    %c0_311 = arith.constant 0 : index
    %c1_312 = arith.constant 1 : index
    %c0_313 = arith.constant 0 : index
    %c0_314 = arith.constant 0 : index
    %575 = vector.load %arg18[%c0_311, %c1_312, %c0_313, %c0_314] : memref<1x3x1x96xf32, #tpu.memory_space<vmem>>, vector<1x1x1x96xf32>
    %576 = vector.shape_cast %575 : vector<1x1x1x96xf32> to vector<1x96xf32>
    %c0_315 = arith.constant 0 : index
    %c1_316 = arith.constant 1 : index
    %c0_317 = arith.constant 0 : index
    %c0_318 = arith.constant 0 : index
    %577 = vector.load %arg19[%c0_315, %c1_316, %c0_317, %c0_318] : memref<1x3x32x32xf32, #tpu.memory_space<vmem>>, vector<1x1x32x32xf32>
    %578 = vector.shape_cast %577 : vector<1x1x32x32xf32> to vector<32x32xf32>
    %c0_319 = arith.constant 0 : index
    %c1_320 = arith.constant 1 : index
    %c0_321 = arith.constant 0 : index
    %c0_322 = arith.constant 0 : index
    %579 = vector.load %arg20[%c0_319, %c1_320, %c0_321, %c0_322] : memref<1x3x1x32xf32, #tpu.memory_space<vmem>>, vector<1x1x1x32xf32>
    %580 = vector.shape_cast %579 : vector<1x1x1x32xf32> to vector<1x32xf32>
    %581 = vector.extract_strided_slice %574 {offsets = [0, 0], sizes = [32, 32], strides = [1, 1]} : vector<32x96xf32> to vector<32x32xf32>
    %cst_323 = arith.constant dense<0.000000e+00> : vector<1x32xf32>
    %582 = tpu.matmul %572, %581, %cst_323 {dimension_numbers = #tpu.dot_dimension_numbers<[1], [0], [0], [1], [0, 0, 1, 1], [], []>} : vector<1x32xf32>, vector<32x32xf32>, vector<1x32xf32> -> vector<1x32xf32>
    %583 = vector.extract_strided_slice %576 {offsets = [0, 0], sizes = [1, 32], strides = [1, 1]} : vector<1x96xf32> to vector<1x32xf32>
    %584 = arith.addf %582, %583 : vector<1x32xf32>
    %585 = vector.extract_strided_slice %574 {offsets = [0, 32], sizes = [32, 64], strides = [1, 1]} : vector<32x96xf32> to vector<32x64xf32>
    %cst_324 = arith.constant dense<0.000000e+00> : vector<8x64xf32>
    %586 = tpu.matmul %383, %585, %cst_324 {dimension_numbers = #tpu.dot_dimension_numbers<[1], [0], [0], [1], [0, 0, 1, 1], [], []>} : vector<8x32xf32>, vector<32x64xf32>, vector<8x64xf32> -> vector<8x64xf32>
    %587 = vector.extract_strided_slice %576 {offsets = [0, 32], sizes = [1, 64], strides = [1, 1]} : vector<1x96xf32> to vector<1x64xf32>
    %588 = vector.broadcast %587 : vector<1x64xf32> to vector<8x64xf32>
    %589 = arith.addf %586, %588 : vector<8x64xf32>
    %590 = vector.extract_strided_slice %589 {offsets = [0, 0], sizes = [8, 32], strides = [1, 1]} : vector<8x64xf32> to vector<8x32xf32>
    %591 = vector.extract_strided_slice %589 {offsets = [0, 32], sizes = [8, 32], strides = [1, 1]} : vector<8x64xf32> to vector<8x32xf32>
    %592 = vector.extract_strided_slice %584 {offsets = [0, 0], sizes = [1, 16], strides = [1, 1]} : vector<1x32xf32> to vector<1x16xf32>
    %593 = vector.extract_strided_slice %590 {offsets = [0, 0], sizes = [8, 16], strides = [1, 1]} : vector<8x32xf32> to vector<8x16xf32>
    %594 = tpu.transpose %593, [1, 0] : vector<8x16xf32> -> vector<16x8xf32>
    %cst_325 = arith.constant dense<0.000000e+00> : vector<1x8xf32>
    %595 = tpu.matmul %592, %594, %cst_325 {dimension_numbers = #tpu.dot_dimension_numbers<[1], [0], [0], [1], [0, 0, 1, 1], [], []>} : vector<1x16xf32>, vector<16x8xf32>, vector<1x8xf32> -> vector<1x8xf32>
    %cst_326 = arith.constant 2.500000e-01 : f32
    %596 = vector.broadcast %cst_326 : f32 to vector<1x8xf32>
    %597 = arith.mulf %595, %596 : vector<1x8xf32>
    %cst_327 = arith.constant dense<0xFF800000> : vector<1xf32>
    %598 = vector.multi_reduction <maximumf>, %597, %cst_327 [1] : vector<1x8xf32> to vector<1xf32>
    %599 = vector.shape_cast %598 : vector<1xf32> to vector<1x1xf32>
    %600 = vector.broadcast %599 : vector<1x1xf32> to vector<1x8xf32>
    %601 = arith.subf %597, %600 : vector<1x8xf32>
    %602 = math.exp %601 : vector<1x8xf32>
    %cst_328 = arith.constant dense<0.000000e+00> : vector<1xf32>
    %603 = vector.multi_reduction <add>, %602, %cst_328 [1] : vector<1x8xf32> to vector<1xf32>
    %604 = vector.shape_cast %603 : vector<1xf32> to vector<1x1xf32>
    %605 = tpu.reciprocal %604 {approx = true} : vector<1x1xf32> -> vector<1x1xf32>
    %606 = vector.broadcast %605 : vector<1x1xf32> to vector<1x8xf32>
    %607 = arith.mulf %602, %606 : vector<1x8xf32>
    %608 = vector.extract_strided_slice %591 {offsets = [0, 0], sizes = [8, 16], strides = [1, 1]} : vector<8x32xf32> to vector<8x16xf32>
    %cst_329 = arith.constant dense<0.000000e+00> : vector<1x16xf32>
    %609 = tpu.matmul %607, %608, %cst_329 {dimension_numbers = #tpu.dot_dimension_numbers<[1], [0], [0], [1], [0, 0, 1, 1], [], []>} : vector<1x8xf32>, vector<8x16xf32>, vector<1x16xf32> -> vector<1x16xf32>
    %610 = vector.extract_strided_slice %584 {offsets = [0, 16], sizes = [1, 16], strides = [1, 1]} : vector<1x32xf32> to vector<1x16xf32>
    %611 = vector.extract_strided_slice %590 {offsets = [0, 16], sizes = [8, 16], strides = [1, 1]} : vector<8x32xf32> to vector<8x16xf32>
    %612 = tpu.transpose %611, [1, 0] : vector<8x16xf32> -> vector<16x8xf32>
    %cst_330 = arith.constant dense<0.000000e+00> : vector<1x8xf32>
    %613 = tpu.matmul %610, %612, %cst_330 {dimension_numbers = #tpu.dot_dimension_numbers<[1], [0], [0], [1], [0, 0, 1, 1], [], []>} : vector<1x16xf32>, vector<16x8xf32>, vector<1x8xf32> -> vector<1x8xf32>
    %cst_331 = arith.constant 2.500000e-01 : f32
    %614 = vector.broadcast %cst_331 : f32 to vector<1x8xf32>
    %615 = arith.mulf %613, %614 : vector<1x8xf32>
    %cst_332 = arith.constant dense<0xFF800000> : vector<1xf32>
    %616 = vector.multi_reduction <maximumf>, %615, %cst_332 [1] : vector<1x8xf32> to vector<1xf32>
    %617 = vector.shape_cast %616 : vector<1xf32> to vector<1x1xf32>
    %618 = vector.broadcast %617 : vector<1x1xf32> to vector<1x8xf32>
    %619 = arith.subf %615, %618 : vector<1x8xf32>
    %620 = math.exp %619 : vector<1x8xf32>
    %cst_333 = arith.constant dense<0.000000e+00> : vector<1xf32>
    %621 = vector.multi_reduction <add>, %620, %cst_333 [1] : vector<1x8xf32> to vector<1xf32>
    %622 = vector.shape_cast %621 : vector<1xf32> to vector<1x1xf32>
    %623 = tpu.reciprocal %622 {approx = true} : vector<1x1xf32> -> vector<1x1xf32>
    %624 = vector.broadcast %623 : vector<1x1xf32> to vector<1x8xf32>
    %625 = arith.mulf %620, %624 : vector<1x8xf32>
    %626 = vector.extract_strided_slice %591 {offsets = [0, 16], sizes = [8, 16], strides = [1, 1]} : vector<8x32xf32> to vector<8x16xf32>
    %cst_334 = arith.constant dense<0.000000e+00> : vector<1x16xf32>
    %627 = tpu.matmul %625, %626, %cst_334 {dimension_numbers = #tpu.dot_dimension_numbers<[1], [0], [0], [1], [0, 0, 1, 1], [], []>} : vector<1x8xf32>, vector<8x16xf32>, vector<1x16xf32> -> vector<1x16xf32>
    %628 = tpu.concatenate %609, %627 in 1 : vector<1x16xf32>, vector<1x16xf32> -> vector<1x32xf32>
    %cst_335 = arith.constant dense<0.000000e+00> : vector<1x32xf32>
    %629 = tpu.matmul %628, %578, %cst_335 {dimension_numbers = #tpu.dot_dimension_numbers<[1], [0], [0], [1], [0, 0, 1, 1], [], []>} : vector<1x32xf32>, vector<32x32xf32>, vector<1x32xf32> -> vector<1x32xf32>
    %630 = arith.addf %629, %580 : vector<1x32xf32>
    %631 = arith.addf %572, %630 : vector<1x32xf32>
    %632 = vector.extract_strided_slice %537 {offsets = [2, 0], sizes = [1, 32], strides = [1, 1]} : vector<6x32xf32> to vector<1x32xf32>
    %633 = vector.extract_strided_slice %537 {offsets = [3, 0], sizes = [1, 32], strides = [1, 1]} : vector<6x32xf32> to vector<1x32xf32>
    %cst_336 = arith.constant dense<0.000000e+00> : vector<1xf32>
    %634 = vector.multi_reduction <add>, %631, %cst_336 [1] : vector<1x32xf32> to vector<1xf32>
    %635 = vector.shape_cast %634 : vector<1xf32> to vector<1x1xf32>
    %cst_337 = arith.constant 3.200000e+01 : f32
    %636 = vector.broadcast %cst_337 : f32 to vector<1x1xf32>
    %637 = arith.divf %635, %636 : vector<1x1xf32>
    %638 = vector.broadcast %637 : vector<1x1xf32> to vector<1x32xf32>
    %639 = arith.subf %631, %638 : vector<1x32xf32>
    %640 = arith.mulf %639, %639 : vector<1x32xf32>
    %cst_338 = arith.constant dense<0.000000e+00> : vector<1xf32>
    %641 = vector.multi_reduction <add>, %640, %cst_338 [1] : vector<1x32xf32> to vector<1xf32>
    %642 = vector.shape_cast %641 : vector<1xf32> to vector<1x1xf32>
    %cst_339 = arith.constant 3.200000e+01 : f32
    %643 = vector.broadcast %cst_339 : f32 to vector<1x1xf32>
    %644 = arith.divf %642, %643 : vector<1x1xf32>
    %cst_340 = arith.constant 9.99999974E-6 : f32
    %645 = vector.broadcast %cst_340 : f32 to vector<1x1xf32>
    %646 = arith.addf %644, %645 : vector<1x1xf32>
    %647 = math.rsqrt %646 : vector<1x1xf32>
    %648 = vector.broadcast %647 : vector<1x1xf32> to vector<1x32xf32>
    %649 = arith.mulf %639, %648 : vector<1x32xf32>
    %650 = arith.mulf %649, %632 : vector<1x32xf32>
    %651 = arith.addf %650, %633 : vector<1x32xf32>
    %c0_341 = arith.constant 0 : index
    %c1_342 = arith.constant 1 : index
    %c0_343 = arith.constant 0 : index
    %c0_344 = arith.constant 0 : index
    %652 = vector.load %arg21[%c0_341, %c1_342, %c0_343, %c0_344] : memref<1x3x32x64xf32, #tpu.memory_space<vmem>>, vector<1x1x32x64xf32>
    %653 = vector.shape_cast %652 : vector<1x1x32x64xf32> to vector<32x64xf32>
    %cst_345 = arith.constant dense<0.000000e+00> : vector<1x64xf32>
    %654 = tpu.matmul %651, %653, %cst_345 {dimension_numbers = #tpu.dot_dimension_numbers<[1], [0], [0], [1], [0, 0, 1, 1], [], []>} : vector<1x32xf32>, vector<32x64xf32>, vector<1x64xf32> -> vector<1x64xf32>
    %c0_346 = arith.constant 0 : index
    %c1_347 = arith.constant 1 : index
    %c0_348 = arith.constant 0 : index
    %c0_349 = arith.constant 0 : index
    %655 = vector.load %arg22[%c0_346, %c1_347, %c0_348, %c0_349] : memref<1x3x1x64xf32, #tpu.memory_space<vmem>>, vector<1x1x1x64xf32>
    %656 = vector.shape_cast %655 : vector<1x1x1x64xf32> to vector<1x64xf32>
    %657 = arith.addf %654, %656 : vector<1x64xf32>
    %cst_350 = arith.constant 0.000000e+00 : f32
    %658 = vector.broadcast %cst_350 : f32 to vector<1x64xf32>
    %659 = arith.maximumf %657, %658 : vector<1x64xf32>
    %c0_351 = arith.constant 0 : index
    %c1_352 = arith.constant 1 : index
    %c0_353 = arith.constant 0 : index
    %c0_354 = arith.constant 0 : index
    %660 = vector.load %arg23[%c0_351, %c1_352, %c0_353, %c0_354] : memref<1x3x64x32xf32, #tpu.memory_space<vmem>>, vector<1x1x64x32xf32>
    %661 = vector.shape_cast %660 : vector<1x1x64x32xf32> to vector<64x32xf32>
    %cst_355 = arith.constant dense<0.000000e+00> : vector<1x32xf32>
    %662 = tpu.matmul %659, %661, %cst_355 {dimension_numbers = #tpu.dot_dimension_numbers<[1], [0], [0], [1], [0, 0, 1, 1], [], []>} : vector<1x64xf32>, vector<64x32xf32>, vector<1x32xf32> -> vector<1x32xf32>
    %c0_356 = arith.constant 0 : index
    %c1_357 = arith.constant 1 : index
    %c0_358 = arith.constant 0 : index
    %c0_359 = arith.constant 0 : index
    %663 = vector.load %arg24[%c0_356, %c1_357, %c0_358, %c0_359] : memref<1x3x1x32xf32, #tpu.memory_space<vmem>>, vector<1x1x1x32xf32>
    %664 = vector.shape_cast %663 : vector<1x1x1x32xf32> to vector<1x32xf32>
    %665 = arith.addf %662, %664 : vector<1x32xf32>
    %666 = arith.addf %651, %665 : vector<1x32xf32>
    %667 = vector.extract_strided_slice %537 {offsets = [4, 0], sizes = [1, 32], strides = [1, 1]} : vector<6x32xf32> to vector<1x32xf32>
    %668 = vector.extract_strided_slice %537 {offsets = [5, 0], sizes = [1, 32], strides = [1, 1]} : vector<6x32xf32> to vector<1x32xf32>
    %cst_360 = arith.constant dense<0.000000e+00> : vector<1xf32>
    %669 = vector.multi_reduction <add>, %666, %cst_360 [1] : vector<1x32xf32> to vector<1xf32>
    %670 = vector.shape_cast %669 : vector<1xf32> to vector<1x1xf32>
    %cst_361 = arith.constant 3.200000e+01 : f32
    %671 = vector.broadcast %cst_361 : f32 to vector<1x1xf32>
    %672 = arith.divf %670, %671 : vector<1x1xf32>
    %673 = vector.broadcast %672 : vector<1x1xf32> to vector<1x32xf32>
    %674 = arith.subf %666, %673 : vector<1x32xf32>
    %675 = arith.mulf %674, %674 : vector<1x32xf32>
    %cst_362 = arith.constant dense<0.000000e+00> : vector<1xf32>
    %676 = vector.multi_reduction <add>, %675, %cst_362 [1] : vector<1x32xf32> to vector<1xf32>
    %677 = vector.shape_cast %676 : vector<1xf32> to vector<1x1xf32>
    %cst_363 = arith.constant 3.200000e+01 : f32
    %678 = vector.broadcast %cst_363 : f32 to vector<1x1xf32>
    %679 = arith.divf %677, %678 : vector<1x1xf32>
    %cst_364 = arith.constant 9.99999974E-6 : f32
    %680 = vector.broadcast %cst_364 : f32 to vector<1x1xf32>
    %681 = arith.addf %679, %680 : vector<1x1xf32>
    %682 = math.rsqrt %681 : vector<1x1xf32>
    %683 = vector.broadcast %682 : vector<1x1xf32> to vector<1x32xf32>
    %684 = arith.mulf %674, %683 : vector<1x32xf32>
    %685 = arith.mulf %684, %667 : vector<1x32xf32>
    %686 = arith.addf %685, %668 : vector<1x32xf32>
    %c0_365 = arith.constant 0 : index
    %c2_366 = arith.constant 2 : index
    %c0_367 = arith.constant 0 : index
    %c0_368 = arith.constant 0 : index
    %687 = vector.load %arg25[%c0_365, %c2_366, %c0_367, %c0_368] : memref<1x3x6x32xf32, #tpu.memory_space<vmem>>, vector<1x1x6x32xf32>
    %688 = vector.shape_cast %687 : vector<1x1x6x32xf32> to vector<6x32xf32>
    %c0_369 = arith.constant 0 : index
    %c2_370 = arith.constant 2 : index
    %c0_371 = arith.constant 0 : index
    %c0_372 = arith.constant 0 : index
    %689 = vector.load %arg13[%c0_369, %c2_370, %c0_371, %c0_372] : memref<1x3x32x96xf32, #tpu.memory_space<vmem>>, vector<1x1x32x96xf32>
    %690 = vector.shape_cast %689 : vector<1x1x32x96xf32> to vector<32x96xf32>
    %c0_373 = arith.constant 0 : index
    %c2_374 = arith.constant 2 : index
    %c0_375 = arith.constant 0 : index
    %c0_376 = arith.constant 0 : index
    %691 = vector.load %arg14[%c0_373, %c2_374, %c0_375, %c0_376] : memref<1x3x1x96xf32, #tpu.memory_space<vmem>>, vector<1x1x1x96xf32>
    %692 = vector.shape_cast %691 : vector<1x1x1x96xf32> to vector<1x96xf32>
    %c0_377 = arith.constant 0 : index
    %c2_378 = arith.constant 2 : index
    %c0_379 = arith.constant 0 : index
    %c0_380 = arith.constant 0 : index
    %693 = vector.load %arg15[%c0_377, %c2_378, %c0_379, %c0_380] : memref<1x3x32x32xf32, #tpu.memory_space<vmem>>, vector<1x1x32x32xf32>
    %694 = vector.shape_cast %693 : vector<1x1x32x32xf32> to vector<32x32xf32>
    %c0_381 = arith.constant 0 : index
    %c2_382 = arith.constant 2 : index
    %c0_383 = arith.constant 0 : index
    %c0_384 = arith.constant 0 : index
    %695 = vector.load %arg16[%c0_381, %c2_382, %c0_383, %c0_384] : memref<1x3x1x32xf32, #tpu.memory_space<vmem>>, vector<1x1x1x32xf32>
    %696 = vector.shape_cast %695 : vector<1x1x1x32xf32> to vector<1x32xf32>
    %697 = vector.extract_strided_slice %690 {offsets = [0, 64], sizes = [32, 32], strides = [1, 1]} : vector<32x96xf32> to vector<32x32xf32>
    %cst_385 = arith.constant dense<0.000000e+00> : vector<1x32xf32>
    %698 = tpu.matmul %686, %697, %cst_385 {dimension_numbers = #tpu.dot_dimension_numbers<[1], [0], [0], [1], [0, 0, 1, 1], [], []>} : vector<1x32xf32>, vector<32x32xf32>, vector<1x32xf32> -> vector<1x32xf32>
    %699 = vector.extract_strided_slice %692 {offsets = [0, 64], sizes = [1, 32], strides = [1, 1]} : vector<1x96xf32> to vector<1x32xf32>
    %700 = arith.addf %698, %699 : vector<1x32xf32>
    %cst_386 = arith.constant dense<0.000000e+00> : vector<1x32xf32>
    %701 = tpu.matmul %700, %694, %cst_386 {dimension_numbers = #tpu.dot_dimension_numbers<[1], [0], [0], [1], [0, 0, 1, 1], [], []>} : vector<1x32xf32>, vector<32x32xf32>, vector<1x32xf32> -> vector<1x32xf32>
    %702 = arith.addf %701, %696 : vector<1x32xf32>
    %703 = arith.addf %686, %702 : vector<1x32xf32>
    %704 = vector.extract_strided_slice %688 {offsets = [0, 0], sizes = [1, 32], strides = [1, 1]} : vector<6x32xf32> to vector<1x32xf32>
    %705 = vector.extract_strided_slice %688 {offsets = [1, 0], sizes = [1, 32], strides = [1, 1]} : vector<6x32xf32> to vector<1x32xf32>
    %cst_387 = arith.constant dense<0.000000e+00> : vector<1xf32>
    %706 = vector.multi_reduction <add>, %703, %cst_387 [1] : vector<1x32xf32> to vector<1xf32>
    %707 = vector.shape_cast %706 : vector<1xf32> to vector<1x1xf32>
    %cst_388 = arith.constant 3.200000e+01 : f32
    %708 = vector.broadcast %cst_388 : f32 to vector<1x1xf32>
    %709 = arith.divf %707, %708 : vector<1x1xf32>
    %710 = vector.broadcast %709 : vector<1x1xf32> to vector<1x32xf32>
    %711 = arith.subf %703, %710 : vector<1x32xf32>
    %712 = arith.mulf %711, %711 : vector<1x32xf32>
    %cst_389 = arith.constant dense<0.000000e+00> : vector<1xf32>
    %713 = vector.multi_reduction <add>, %712, %cst_389 [1] : vector<1x32xf32> to vector<1xf32>
    %714 = vector.shape_cast %713 : vector<1xf32> to vector<1x1xf32>
    %cst_390 = arith.constant 3.200000e+01 : f32
    %715 = vector.broadcast %cst_390 : f32 to vector<1x1xf32>
    %716 = arith.divf %714, %715 : vector<1x1xf32>
    %cst_391 = arith.constant 9.99999974E-6 : f32
    %717 = vector.broadcast %cst_391 : f32 to vector<1x1xf32>
    %718 = arith.addf %716, %717 : vector<1x1xf32>
    %719 = math.rsqrt %718 : vector<1x1xf32>
    %720 = vector.broadcast %719 : vector<1x1xf32> to vector<1x32xf32>
    %721 = arith.mulf %711, %720 : vector<1x32xf32>
    %722 = arith.mulf %721, %704 : vector<1x32xf32>
    %723 = arith.addf %722, %705 : vector<1x32xf32>
    %c0_392 = arith.constant 0 : index
    %c2_393 = arith.constant 2 : index
    %c0_394 = arith.constant 0 : index
    %c0_395 = arith.constant 0 : index
    %724 = vector.load %arg17[%c0_392, %c2_393, %c0_394, %c0_395] : memref<1x3x32x96xf32, #tpu.memory_space<vmem>>, vector<1x1x32x96xf32>
    %725 = vector.shape_cast %724 : vector<1x1x32x96xf32> to vector<32x96xf32>
    %c0_396 = arith.constant 0 : index
    %c2_397 = arith.constant 2 : index
    %c0_398 = arith.constant 0 : index
    %c0_399 = arith.constant 0 : index
    %726 = vector.load %arg18[%c0_396, %c2_397, %c0_398, %c0_399] : memref<1x3x1x96xf32, #tpu.memory_space<vmem>>, vector<1x1x1x96xf32>
    %727 = vector.shape_cast %726 : vector<1x1x1x96xf32> to vector<1x96xf32>
    %c0_400 = arith.constant 0 : index
    %c2_401 = arith.constant 2 : index
    %c0_402 = arith.constant 0 : index
    %c0_403 = arith.constant 0 : index
    %728 = vector.load %arg19[%c0_400, %c2_401, %c0_402, %c0_403] : memref<1x3x32x32xf32, #tpu.memory_space<vmem>>, vector<1x1x32x32xf32>
    %729 = vector.shape_cast %728 : vector<1x1x32x32xf32> to vector<32x32xf32>
    %c0_404 = arith.constant 0 : index
    %c2_405 = arith.constant 2 : index
    %c0_406 = arith.constant 0 : index
    %c0_407 = arith.constant 0 : index
    %730 = vector.load %arg20[%c0_404, %c2_405, %c0_406, %c0_407] : memref<1x3x1x32xf32, #tpu.memory_space<vmem>>, vector<1x1x1x32xf32>
    %731 = vector.shape_cast %730 : vector<1x1x1x32xf32> to vector<1x32xf32>
    %732 = vector.extract_strided_slice %725 {offsets = [0, 0], sizes = [32, 32], strides = [1, 1]} : vector<32x96xf32> to vector<32x32xf32>
    %cst_408 = arith.constant dense<0.000000e+00> : vector<1x32xf32>
    %733 = tpu.matmul %723, %732, %cst_408 {dimension_numbers = #tpu.dot_dimension_numbers<[1], [0], [0], [1], [0, 0, 1, 1], [], []>} : vector<1x32xf32>, vector<32x32xf32>, vector<1x32xf32> -> vector<1x32xf32>
    %734 = vector.extract_strided_slice %727 {offsets = [0, 0], sizes = [1, 32], strides = [1, 1]} : vector<1x96xf32> to vector<1x32xf32>
    %735 = arith.addf %733, %734 : vector<1x32xf32>
    %736 = vector.extract_strided_slice %725 {offsets = [0, 32], sizes = [32, 64], strides = [1, 1]} : vector<32x96xf32> to vector<32x64xf32>
    %cst_409 = arith.constant dense<0.000000e+00> : vector<8x64xf32>
    %737 = tpu.matmul %383, %736, %cst_409 {dimension_numbers = #tpu.dot_dimension_numbers<[1], [0], [0], [1], [0, 0, 1, 1], [], []>} : vector<8x32xf32>, vector<32x64xf32>, vector<8x64xf32> -> vector<8x64xf32>
    %738 = vector.extract_strided_slice %727 {offsets = [0, 32], sizes = [1, 64], strides = [1, 1]} : vector<1x96xf32> to vector<1x64xf32>
    %739 = vector.broadcast %738 : vector<1x64xf32> to vector<8x64xf32>
    %740 = arith.addf %737, %739 : vector<8x64xf32>
    %741 = vector.extract_strided_slice %740 {offsets = [0, 0], sizes = [8, 32], strides = [1, 1]} : vector<8x64xf32> to vector<8x32xf32>
    %742 = vector.extract_strided_slice %740 {offsets = [0, 32], sizes = [8, 32], strides = [1, 1]} : vector<8x64xf32> to vector<8x32xf32>
    %743 = vector.extract_strided_slice %735 {offsets = [0, 0], sizes = [1, 16], strides = [1, 1]} : vector<1x32xf32> to vector<1x16xf32>
    %744 = vector.extract_strided_slice %741 {offsets = [0, 0], sizes = [8, 16], strides = [1, 1]} : vector<8x32xf32> to vector<8x16xf32>
    %745 = tpu.transpose %744, [1, 0] : vector<8x16xf32> -> vector<16x8xf32>
    %cst_410 = arith.constant dense<0.000000e+00> : vector<1x8xf32>
    %746 = tpu.matmul %743, %745, %cst_410 {dimension_numbers = #tpu.dot_dimension_numbers<[1], [0], [0], [1], [0, 0, 1, 1], [], []>} : vector<1x16xf32>, vector<16x8xf32>, vector<1x8xf32> -> vector<1x8xf32>
    %cst_411 = arith.constant 2.500000e-01 : f32
    %747 = vector.broadcast %cst_411 : f32 to vector<1x8xf32>
    %748 = arith.mulf %746, %747 : vector<1x8xf32>
    %cst_412 = arith.constant dense<0xFF800000> : vector<1xf32>
    %749 = vector.multi_reduction <maximumf>, %748, %cst_412 [1] : vector<1x8xf32> to vector<1xf32>
    %750 = vector.shape_cast %749 : vector<1xf32> to vector<1x1xf32>
    %751 = vector.broadcast %750 : vector<1x1xf32> to vector<1x8xf32>
    %752 = arith.subf %748, %751 : vector<1x8xf32>
    %753 = math.exp %752 : vector<1x8xf32>
    %cst_413 = arith.constant dense<0.000000e+00> : vector<1xf32>
    %754 = vector.multi_reduction <add>, %753, %cst_413 [1] : vector<1x8xf32> to vector<1xf32>
    %755 = vector.shape_cast %754 : vector<1xf32> to vector<1x1xf32>
    %756 = tpu.reciprocal %755 {approx = true} : vector<1x1xf32> -> vector<1x1xf32>
    %757 = vector.broadcast %756 : vector<1x1xf32> to vector<1x8xf32>
    %758 = arith.mulf %753, %757 : vector<1x8xf32>
    %759 = vector.extract_strided_slice %742 {offsets = [0, 0], sizes = [8, 16], strides = [1, 1]} : vector<8x32xf32> to vector<8x16xf32>
    %cst_414 = arith.constant dense<0.000000e+00> : vector<1x16xf32>
    %760 = tpu.matmul %758, %759, %cst_414 {dimension_numbers = #tpu.dot_dimension_numbers<[1], [0], [0], [1], [0, 0, 1, 1], [], []>} : vector<1x8xf32>, vector<8x16xf32>, vector<1x16xf32> -> vector<1x16xf32>
    %761 = vector.extract_strided_slice %735 {offsets = [0, 16], sizes = [1, 16], strides = [1, 1]} : vector<1x32xf32> to vector<1x16xf32>
    %762 = vector.extract_strided_slice %741 {offsets = [0, 16], sizes = [8, 16], strides = [1, 1]} : vector<8x32xf32> to vector<8x16xf32>
    %763 = tpu.transpose %762, [1, 0] : vector<8x16xf32> -> vector<16x8xf32>
    %cst_415 = arith.constant dense<0.000000e+00> : vector<1x8xf32>
    %764 = tpu.matmul %761, %763, %cst_415 {dimension_numbers = #tpu.dot_dimension_numbers<[1], [0], [0], [1], [0, 0, 1, 1], [], []>} : vector<1x16xf32>, vector<16x8xf32>, vector<1x8xf32> -> vector<1x8xf32>
    %cst_416 = arith.constant 2.500000e-01 : f32
    %765 = vector.broadcast %cst_416 : f32 to vector<1x8xf32>
    %766 = arith.mulf %764, %765 : vector<1x8xf32>
    %cst_417 = arith.constant dense<0xFF800000> : vector<1xf32>
    %767 = vector.multi_reduction <maximumf>, %766, %cst_417 [1] : vector<1x8xf32> to vector<1xf32>
    %768 = vector.shape_cast %767 : vector<1xf32> to vector<1x1xf32>
    %769 = vector.broadcast %768 : vector<1x1xf32> to vector<1x8xf32>
    %770 = arith.subf %766, %769 : vector<1x8xf32>
    %771 = math.exp %770 : vector<1x8xf32>
    %cst_418 = arith.constant dense<0.000000e+00> : vector<1xf32>
    %772 = vector.multi_reduction <add>, %771, %cst_418 [1] : vector<1x8xf32> to vector<1xf32>
    %773 = vector.shape_cast %772 : vector<1xf32> to vector<1x1xf32>
    %774 = tpu.reciprocal %773 {approx = true} : vector<1x1xf32> -> vector<1x1xf32>
    %775 = vector.broadcast %774 : vector<1x1xf32> to vector<1x8xf32>
    %776 = arith.mulf %771, %775 : vector<1x8xf32>
    %777 = vector.extract_strided_slice %742 {offsets = [0, 16], sizes = [8, 16], strides = [1, 1]} : vector<8x32xf32> to vector<8x16xf32>
    %cst_419 = arith.constant dense<0.000000e+00> : vector<1x16xf32>
    %778 = tpu.matmul %776, %777, %cst_419 {dimension_numbers = #tpu.dot_dimension_numbers<[1], [0], [0], [1], [0, 0, 1, 1], [], []>} : vector<1x8xf32>, vector<8x16xf32>, vector<1x16xf32> -> vector<1x16xf32>
    %779 = tpu.concatenate %760, %778 in 1 : vector<1x16xf32>, vector<1x16xf32> -> vector<1x32xf32>
    %cst_420 = arith.constant dense<0.000000e+00> : vector<1x32xf32>
    %780 = tpu.matmul %779, %729, %cst_420 {dimension_numbers = #tpu.dot_dimension_numbers<[1], [0], [0], [1], [0, 0, 1, 1], [], []>} : vector<1x32xf32>, vector<32x32xf32>, vector<1x32xf32> -> vector<1x32xf32>
    %781 = arith.addf %780, %731 : vector<1x32xf32>
    %782 = arith.addf %723, %781 : vector<1x32xf32>
    %783 = vector.extract_strided_slice %688 {offsets = [2, 0], sizes = [1, 32], strides = [1, 1]} : vector<6x32xf32> to vector<1x32xf32>
    %784 = vector.extract_strided_slice %688 {offsets = [3, 0], sizes = [1, 32], strides = [1, 1]} : vector<6x32xf32> to vector<1x32xf32>
    %cst_421 = arith.constant dense<0.000000e+00> : vector<1xf32>
    %785 = vector.multi_reduction <add>, %782, %cst_421 [1] : vector<1x32xf32> to vector<1xf32>
    %786 = vector.shape_cast %785 : vector<1xf32> to vector<1x1xf32>
    %cst_422 = arith.constant 3.200000e+01 : f32
    %787 = vector.broadcast %cst_422 : f32 to vector<1x1xf32>
    %788 = arith.divf %786, %787 : vector<1x1xf32>
    %789 = vector.broadcast %788 : vector<1x1xf32> to vector<1x32xf32>
    %790 = arith.subf %782, %789 : vector<1x32xf32>
    %791 = arith.mulf %790, %790 : vector<1x32xf32>
    %cst_423 = arith.constant dense<0.000000e+00> : vector<1xf32>
    %792 = vector.multi_reduction <add>, %791, %cst_423 [1] : vector<1x32xf32> to vector<1xf32>
    %793 = vector.shape_cast %792 : vector<1xf32> to vector<1x1xf32>
    %cst_424 = arith.constant 3.200000e+01 : f32
    %794 = vector.broadcast %cst_424 : f32 to vector<1x1xf32>
    %795 = arith.divf %793, %794 : vector<1x1xf32>
    %cst_425 = arith.constant 9.99999974E-6 : f32
    %796 = vector.broadcast %cst_425 : f32 to vector<1x1xf32>
    %797 = arith.addf %795, %796 : vector<1x1xf32>
    %798 = math.rsqrt %797 : vector<1x1xf32>
    %799 = vector.broadcast %798 : vector<1x1xf32> to vector<1x32xf32>
    %800 = arith.mulf %790, %799 : vector<1x32xf32>
    %801 = arith.mulf %800, %783 : vector<1x32xf32>
    %802 = arith.addf %801, %784 : vector<1x32xf32>
    %c0_426 = arith.constant 0 : index
    %c2_427 = arith.constant 2 : index
    %c0_428 = arith.constant 0 : index
    %c0_429 = arith.constant 0 : index
    %803 = vector.load %arg21[%c0_426, %c2_427, %c0_428, %c0_429] : memref<1x3x32x64xf32, #tpu.memory_space<vmem>>, vector<1x1x32x64xf32>
    %804 = vector.shape_cast %803 : vector<1x1x32x64xf32> to vector<32x64xf32>
    %cst_430 = arith.constant dense<0.000000e+00> : vector<1x64xf32>
    %805 = tpu.matmul %802, %804, %cst_430 {dimension_numbers = #tpu.dot_dimension_numbers<[1], [0], [0], [1], [0, 0, 1, 1], [], []>} : vector<1x32xf32>, vector<32x64xf32>, vector<1x64xf32> -> vector<1x64xf32>
    %c0_431 = arith.constant 0 : index
    %c2_432 = arith.constant 2 : index
    %c0_433 = arith.constant 0 : index
    %c0_434 = arith.constant 0 : index
    %806 = vector.load %arg22[%c0_431, %c2_432, %c0_433, %c0_434] : memref<1x3x1x64xf32, #tpu.memory_space<vmem>>, vector<1x1x1x64xf32>
    %807 = vector.shape_cast %806 : vector<1x1x1x64xf32> to vector<1x64xf32>
    %808 = arith.addf %805, %807 : vector<1x64xf32>
    %cst_435 = arith.constant 0.000000e+00 : f32
    %809 = vector.broadcast %cst_435 : f32 to vector<1x64xf32>
    %810 = arith.maximumf %808, %809 : vector<1x64xf32>
    %c0_436 = arith.constant 0 : index
    %c2_437 = arith.constant 2 : index
    %c0_438 = arith.constant 0 : index
    %c0_439 = arith.constant 0 : index
    %811 = vector.load %arg23[%c0_436, %c2_437, %c0_438, %c0_439] : memref<1x3x64x32xf32, #tpu.memory_space<vmem>>, vector<1x1x64x32xf32>
    %812 = vector.shape_cast %811 : vector<1x1x64x32xf32> to vector<64x32xf32>
    %cst_440 = arith.constant dense<0.000000e+00> : vector<1x32xf32>
    %813 = tpu.matmul %810, %812, %cst_440 {dimension_numbers = #tpu.dot_dimension_numbers<[1], [0], [0], [1], [0, 0, 1, 1], [], []>} : vector<1x64xf32>, vector<64x32xf32>, vector<1x32xf32> -> vector<1x32xf32>
    %c0_441 = arith.constant 0 : index
    %c2_442 = arith.constant 2 : index
    %c0_443 = arith.constant 0 : index
    %c0_444 = arith.constant 0 : index
    %814 = vector.load %arg24[%c0_441, %c2_442, %c0_443, %c0_444] : memref<1x3x1x32xf32, #tpu.memory_space<vmem>>, vector<1x1x1x32xf32>
    %815 = vector.shape_cast %814 : vector<1x1x1x32xf32> to vector<1x32xf32>
    %816 = arith.addf %813, %815 : vector<1x32xf32>
    %817 = arith.addf %802, %816 : vector<1x32xf32>
    %818 = vector.extract_strided_slice %688 {offsets = [4, 0], sizes = [1, 32], strides = [1, 1]} : vector<6x32xf32> to vector<1x32xf32>
    %819 = vector.extract_strided_slice %688 {offsets = [5, 0], sizes = [1, 32], strides = [1, 1]} : vector<6x32xf32> to vector<1x32xf32>
    %cst_445 = arith.constant dense<0.000000e+00> : vector<1xf32>
    %820 = vector.multi_reduction <add>, %817, %cst_445 [1] : vector<1x32xf32> to vector<1xf32>
    %821 = vector.shape_cast %820 : vector<1xf32> to vector<1x1xf32>
    %cst_446 = arith.constant 3.200000e+01 : f32
    %822 = vector.broadcast %cst_446 : f32 to vector<1x1xf32>
    %823 = arith.divf %821, %822 : vector<1x1xf32>
    %824 = vector.broadcast %823 : vector<1x1xf32> to vector<1x32xf32>
    %825 = arith.subf %817, %824 : vector<1x32xf32>
    %826 = arith.mulf %825, %825 : vector<1x32xf32>
    %cst_447 = arith.constant dense<0.000000e+00> : vector<1xf32>
    %827 = vector.multi_reduction <add>, %826, %cst_447 [1] : vector<1x32xf32> to vector<1xf32>
    %828 = vector.shape_cast %827 : vector<1xf32> to vector<1x1xf32>
    %cst_448 = arith.constant 3.200000e+01 : f32
    %829 = vector.broadcast %cst_448 : f32 to vector<1x1xf32>
    %830 = arith.divf %828, %829 : vector<1x1xf32>
    %cst_449 = arith.constant 9.99999974E-6 : f32
    %831 = vector.broadcast %cst_449 : f32 to vector<1x1xf32>
    %832 = arith.addf %830, %831 : vector<1x1xf32>
    %833 = math.rsqrt %832 : vector<1x1xf32>
    %834 = vector.broadcast %833 : vector<1x1xf32> to vector<1x32xf32>
    %835 = arith.mulf %825, %834 : vector<1x32xf32>
    %836 = arith.mulf %835, %818 : vector<1x32xf32>
    %837 = arith.addf %836, %819 : vector<1x32xf32>
    %838 = vector.extract_strided_slice %361 {offsets = [2, 0], sizes = [1, 32], strides = [1, 1]} : vector<4x32xf32> to vector<1x32xf32>
    %839 = vector.extract_strided_slice %361 {offsets = [3, 0], sizes = [1, 32], strides = [1, 1]} : vector<4x32xf32> to vector<1x32xf32>
    %cst_450 = arith.constant dense<0.000000e+00> : vector<1xf32>
    %840 = vector.multi_reduction <add>, %837, %cst_450 [1] : vector<1x32xf32> to vector<1xf32>
    %841 = vector.shape_cast %840 : vector<1xf32> to vector<1x1xf32>
    %cst_451 = arith.constant 3.200000e+01 : f32
    %842 = vector.broadcast %cst_451 : f32 to vector<1x1xf32>
    %843 = arith.divf %841, %842 : vector<1x1xf32>
    %844 = vector.broadcast %843 : vector<1x1xf32> to vector<1x32xf32>
    %845 = arith.subf %837, %844 : vector<1x32xf32>
    %846 = arith.mulf %845, %845 : vector<1x32xf32>
    %cst_452 = arith.constant dense<0.000000e+00> : vector<1xf32>
    %847 = vector.multi_reduction <add>, %846, %cst_452 [1] : vector<1x32xf32> to vector<1xf32>
    %848 = vector.shape_cast %847 : vector<1xf32> to vector<1x1xf32>
    %cst_453 = arith.constant 3.200000e+01 : f32
    %849 = vector.broadcast %cst_453 : f32 to vector<1x1xf32>
    %850 = arith.divf %848, %849 : vector<1x1xf32>
    %cst_454 = arith.constant 9.99999974E-6 : f32
    %851 = vector.broadcast %cst_454 : f32 to vector<1x1xf32>
    %852 = arith.addf %850, %851 : vector<1x1xf32>
    %853 = math.rsqrt %852 : vector<1x1xf32>
    %854 = vector.broadcast %853 : vector<1x1xf32> to vector<1x32xf32>
    %855 = arith.mulf %845, %854 : vector<1x32xf32>
    %856 = arith.mulf %855, %838 : vector<1x32xf32>
    %857 = arith.addf %856, %839 : vector<1x32xf32>
    %c0_455 = arith.constant 0 : index
    %c0_456 = arith.constant 0 : index
    %c0_457 = arith.constant 0 : index
    %858 = vector.load %arg27[%c0_455, %c0_456, %c0_457] : memref<1x32x36xf32, #tpu.memory_space<vmem>>, vector<1x32x36xf32>
    %859 = vector.shape_cast %858 : vector<1x32x36xf32> to vector<32x36xf32>
    %cst_458 = arith.constant dense<0.000000e+00> : vector<1x36xf32>
    %860 = tpu.matmul %857, %859, %cst_458 {dimension_numbers = #tpu.dot_dimension_numbers<[1], [0], [0], [1], [0, 0, 1, 1], [], []>} : vector<1x32xf32>, vector<32x36xf32>, vector<1x36xf32> -> vector<1x36xf32>
    %c0_459 = arith.constant 0 : index
    %c0_460 = arith.constant 0 : index
    %c0_461 = arith.constant 0 : index
    %861 = vector.load %arg28[%c0_459, %c0_460, %c0_461] : memref<1x1x36xf32, #tpu.memory_space<vmem>>, vector<1x1x36xf32>
    %862 = vector.shape_cast %861 : vector<1x1x36xf32> to vector<1x36xf32>
    %863 = arith.addf %860, %862 : vector<1x36xf32>
    %cst_462 = arith.constant 0.000000e+00 : f32
    %864 = vector.broadcast %cst_462 : f32 to vector<1x36xf32>
    %865 = arith.maximumf %863, %864 : vector<1x36xf32>
    %c0_463 = arith.constant 0 : index
    %c0_464 = arith.constant 0 : index
    %c0_465 = arith.constant 0 : index
    %866 = vector.load %arg29[%c0_463, %c0_464, %c0_465] : memref<1x1x36xf32, #tpu.memory_space<vmem>>, vector<1x1x36xf32>
    %867 = vector.shape_cast %866 : vector<1x1x36xf32> to vector<1x36xf32>
    %868 = vector.shape_cast %865 : vector<1x36xf32> to vector<1x1x36xf32>
    tpu.vector_store %arg29[%c0_463, %c0_464, %c0_465], %868 {strides = array<i32>} : memref<1x1x36xf32, #tpu.memory_space<vmem>>, vector<1x1x36xf32>,
    return
  }
  func.func @transform_0(%arg0: i32) -> (i32, i32) {
    %c0_i32 = arith.constant 0 : i32
    %c0_i32_0 = arith.constant 0 : i32
    %c0_i32_1 = arith.constant 0 : i32
    return %c0_i32, %c0_i32_0 : i32, i32
  }
  func.func @transform_1(%arg0: i32) -> (i32, i32) {
    %c0_i32 = arith.constant 0 : i32
    %c0_i32_0 = arith.constant 0 : i32
    %c0_i32_1 = arith.constant 0 : i32
    return %c0_i32, %c0_i32_0 : i32, i32
  }
  func.func @transform_2(%arg0: i32) -> (i32, i32) {
    %c0_i32 = arith.constant 0 : i32
    %c0_i32_0 = arith.constant 0 : i32
    %c0_i32_1 = arith.constant 0 : i32
    return %c0_i32, %c0_i32_0 : i32, i32
  }
  func.func @transform_3(%arg0: i32) -> (i32, i32, i32, i32) {
    %c0_i32 = arith.constant 0 : i32
    %c0_i32_0 = arith.constant 0 : i32
    %c0_i32_1 = arith.constant 0 : i32
    %c0_i32_2 = arith.constant 0 : i32
    return %arg0, %c0_i32, %c0_i32_0, %c0_i32_1 : i32, i32, i32, i32
  }
  func.func @transform_4(%arg0: i32) -> (i32, i32, i32, i32) {
    %c0_i32 = arith.constant 0 : i32
    %c0_i32_0 = arith.constant 0 : i32
    %c0_i32_1 = arith.constant 0 : i32
    %c0_i32_2 = arith.constant 0 : i32
    return %arg0, %c0_i32, %c0_i32_0, %c0_i32_1 : i32, i32, i32, i32
  }
  func.func @transform_5(%arg0: i32) -> (i32, i32, i32, i32) {
    %c0_i32 = arith.constant 0 : i32
    %c0_i32_0 = arith.constant 0 : i32
    %c0_i32_1 = arith.constant 0 : i32
    %c0_i32_2 = arith.constant 0 : i32
    return %arg0, %c0_i32, %c0_i32_0, %c0_i32_1 : i32, i32, i32, i32
  }
  func.func @transform_6(%arg0: i32) -> (i32, i32, i32, i32) {
    %c0_i32 = arith.constant 0 : i32
    %c0_i32_0 = arith.constant 0 : i32
    %c0_i32_1 = arith.constant 0 : i32
    %c0_i32_2 = arith.constant 0 : i32
    return %arg0, %c0_i32, %c0_i32_0, %c0_i32_1 : i32, i32, i32, i32
  }
  func.func @transform_7(%arg0: i32) -> (i32, i32, i32, i32) {
    %c0_i32 = arith.constant 0 : i32
    %c0_i32_0 = arith.constant 0 : i32
    %c0_i32_1 = arith.constant 0 : i32
    %c0_i32_2 = arith.constant 0 : i32
    return %arg0, %c0_i32, %c0_i32_0, %c0_i32_1 : i32, i32, i32, i32
  }
  func.func @transform_8(%arg0: i32) -> (i32, i32, i32, i32) {
    %c0_i32 = arith.constant 0 : i32
    %c0_i32_0 = arith.constant 0 : i32
    %c0_i32_1 = arith.constant 0 : i32
    %c0_i32_2 = arith.constant 0 : i32
    return %arg0, %c0_i32, %c0_i32_0, %c0_i32_1 : i32, i32, i32, i32
  }
  func.func @transform_9(%arg0: i32) -> (i32, i32, i32, i32) {
    %c0_i32 = arith.constant 0 : i32
    %c0_i32_0 = arith.constant 0 : i32
    %c0_i32_1 = arith.constant 0 : i32
    %c0_i32_2 = arith.constant 0 : i32
    return %arg0, %c0_i32, %c0_i32_0, %c0_i32_1 : i32, i32, i32, i32
  }
  func.func @transform_10(%arg0: i32) -> (i32, i32, i32, i32) {
    %c0_i32 = arith.constant 0 : i32
    %c0_i32_0 = arith.constant 0 : i32
    %c0_i32_1 = arith.constant 0 : i32
    %c0_i32_2 = arith.constant 0 : i32
    return %arg0, %c0_i32, %c0_i32_0, %c0_i32_1 : i32, i32, i32, i32
  }
  func.func @transform_11(%arg0: i32) -> (i32, i32, i32, i32) {
    %c0_i32 = arith.constant 0 : i32
    %c0_i32_0 = arith.constant 0 : i32
    %c0_i32_1 = arith.constant 0 : i32
    %c0_i32_2 = arith.constant 0 : i32
    return %arg0, %c0_i32, %c0_i32_0, %c0_i32_1 : i32, i32, i32, i32
  }
  func.func @transform_12(%arg0: i32) -> (i32, i32, i32, i32) {
    %c0_i32 = arith.constant 0 : i32
    %c0_i32_0 = arith.constant 0 : i32
    %c0_i32_1 = arith.constant 0 : i32
    %c0_i32_2 = arith.constant 0 : i32
    return %arg0, %c0_i32, %c0_i32_0, %c0_i32_1 : i32, i32, i32, i32
  }
  func.func @transform_13(%arg0: i32) -> (i32, i32, i32, i32) {
    %c0_i32 = arith.constant 0 : i32
    %c0_i32_0 = arith.constant 0 : i32
    %c0_i32_1 = arith.constant 0 : i32
    %c0_i32_2 = arith.constant 0 : i32
    return %arg0, %c0_i32, %c0_i32_0, %c0_i32_1 : i32, i32, i32, i32
  }
  func.func @transform_14(%arg0: i32) -> (i32, i32, i32, i32) {
    %c0_i32 = arith.constant 0 : i32
    %c0_i32_0 = arith.constant 0 : i32
    %c0_i32_1 = arith.constant 0 : i32
    %c0_i32_2 = arith.constant 0 : i32
    return %arg0, %c0_i32, %c0_i32_0, %c0_i32_1 : i32, i32, i32, i32
  }
  func.func @transform_15(%arg0: i32) -> (i32, i32, i32, i32) {
    %c0_i32 = arith.constant 0 : i32
    %c0_i32_0 = arith.constant 0 : i32
    %c0_i32_1 = arith.constant 0 : i32
    %c0_i32_2 = arith.constant 0 : i32
    return %arg0, %c0_i32, %c0_i32_0, %c0_i32_1 : i32, i32, i32, i32
  }
  func.func @transform_16(%arg0: i32) -> (i32, i32, i32, i32) {
    %c0_i32 = arith.constant 0 : i32
    %c0_i32_0 = arith.constant 0 : i32
    %c0_i32_1 = arith.constant 0 : i32
    %c0_i32_2 = arith.constant 0 : i32
    return %arg0, %c0_i32, %c0_i32_0, %c0_i32_1 : i32, i32, i32, i32
  }
  func.func @transform_17(%arg0: i32) -> (i32, i32, i32, i32) {
    %c0_i32 = arith.constant 0 : i32
    %c0_i32_0 = arith.constant 0 : i32
    %c0_i32_1 = arith.constant 0 : i32
    %c0_i32_2 = arith.constant 0 : i32
    return %arg0, %c0_i32, %c0_i32_0, %c0_i32_1 : i32, i32, i32, i32
  }
  func.func @transform_18(%arg0: i32) -> (i32, i32, i32, i32) {
    %c0_i32 = arith.constant 0 : i32
    %c0_i32_0 = arith.constant 0 : i32
    %c0_i32_1 = arith.constant 0 : i32
    %c0_i32_2 = arith.constant 0 : i32
    return %arg0, %c0_i32, %c0_i32_0, %c0_i32_1 : i32, i32, i32, i32
  }
  func.func @transform_19(%arg0: i32) -> (i32, i32, i32, i32) {
    %c0_i32 = arith.constant 0 : i32
    %c0_i32_0 = arith.constant 0 : i32
    %c0_i32_1 = arith.constant 0 : i32
    %c0_i32_2 = arith.constant 0 : i32
    return %arg0, %c0_i32, %c0_i32_0, %c0_i32_1 : i32, i32, i32, i32
  }
  func.func @transform_20(%arg0: i32) -> (i32, i32, i32, i32) {
    %c0_i32 = arith.constant 0 : i32
    %c0_i32_0 = arith.constant 0 : i32
    %c0_i32_1 = arith.constant 0 : i32
    %c0_i32_2 = arith.constant 0 : i32
    return %arg0, %c0_i32, %c0_i32_0, %c0_i32_1 : i32, i32, i32, i32
  }
  func.func @transform_21(%arg0: i32) -> (i32, i32, i32, i32) {
    %c0_i32 = arith.constant 0 : i32
    %c0_i32_0 = arith.constant 0 : i32
    %c0_i32_1 = arith.constant 0 : i32
    %c0_i32_2 = arith.constant 0 : i32
    return %arg0, %c0_i32, %c0_i32_0, %c0_i32_1 : i32, i32, i32, i32
  }
  func.func @transform_22(%arg0: i32) -> (i32, i32, i32, i32) {
    %c0_i32 = arith.constant 0 : i32
    %c0_i32_0 = arith.constant 0 : i32
    %c0_i32_1 = arith.constant 0 : i32
    %c0_i32_2 = arith.constant 0 : i32
    return %arg0, %c0_i32, %c0_i32_0, %c0_i32_1 : i32, i32, i32, i32
  }
  func.func @transform_23(%arg0: i32) -> (i32, i32, i32, i32) {
    %c0_i32 = arith.constant 0 : i32
    %c0_i32_0 = arith.constant 0 : i32
    %c0_i32_1 = arith.constant 0 : i32
    %c0_i32_2 = arith.constant 0 : i32
    return %arg0, %c0_i32, %c0_i32_0, %c0_i32_1 : i32, i32, i32, i32
  }
  func.func @transform_24(%arg0: i32) -> (i32, i32, i32, i32) {
    %c0_i32 = arith.constant 0 : i32
    %c0_i32_0 = arith.constant 0 : i32
    %c0_i32_1 = arith.constant 0 : i32
    %c0_i32_2 = arith.constant 0 : i32
    return %arg0, %c0_i32, %c0_i32_0, %c0_i32_1 : i32, i32, i32, i32
  }
  func.func @transform_25(%arg0: i32) -> (i32, i32, i32) {
    %c0_i32 = arith.constant 0 : i32
    %c0_i32_0 = arith.constant 0 : i32
    %c0_i32_1 = arith.constant 0 : i32
    return %arg0, %c0_i32, %c0_i32_0 : i32, i32, i32
  }
  func.func @transform_26(%arg0: i32) -> (i32, i32, i32) {
    %c0_i32 = arith.constant 0 : i32
    %c0_i32_0 = arith.constant 0 : i32
    %c0_i32_1 = arith.constant 0 : i32
    return %arg0, %c0_i32, %c0_i32_0 : i32, i32, i32
  }
  func.func @transform_27(%arg0: i32) -> (i32, i32, i32) {
    %c0_i32 = arith.constant 0 : i32
    %c0_i32_0 = arith.constant 0 : i32
    %c0_i32_1 = arith.constant 0 : i32
    return %arg0, %c0_i32, %c0_i32_0 : i32, i32, i32
  }
  func.func @transform_28(%arg0: i32) -> (i32, i32, i32) {
    %c0_i32 = arith.constant 0 : i32
    %c0_i32_0 = arith.constant 0 : i32
    %c0_i32_1 = arith.constant 0 : i32
    return %arg0, %c0_i32, %c0_i32_0 : i32, i32, i32
  }
}

</mosaic_0001>

<bundles_post_ra>
// kernel: transformer_tragger_seq_forward.1
= control target key start
LH: loop header
LB: loop body
LE: loop exit
PB: predicated region body
PF: predicated region fallthrough
CT: control target
= control target key end

     0   :  { %s6774_s0 = inlined_call_operand.vmem [shape: f32[8,159], index: 0, kind: input, shape index: {}]   ;;  %s6775_s1 = inlined_call_operand.vmem [shape: f32[159,32], index: 1, kind: input, shape index: {}]   ;;  %s6776_s2 = inlined_call_operand.vmem [shape: f32[1,32], index: 2, kind: input, shape index: {}]   ;;  %s6777_s3 = inlined_call_operand.vmem [shape: f32[2,3,32,96], index: 3, kind: input, shape index: {}]   ;;  %s6778_s4 = inlined_call_operand.hbm [shape: f32[2,3,1,96], index: 4, kind: input, shape index: {}]   ;;  %s6779_s5 = inlined_call_operand.vmem [shape: f32[2,3,32,32], index: 5, kind: input, shape index: {}]   ;;  %s6780_s6 = inlined_call_operand.hbm [shape: f32[2,3,1,32], index: 6, kind: input, shape index: {}]   ;;  %s6781_s7 = inlined_call_operand.vmem [shape: f32[2,3,32,64], index: 7, kind: input, shape index: {}]   ;;  %s6782_s8 = inlined_call_operand.hbm [shape: f32[2,3,1,64], index: 8, kind: input, shape index: {}]   ;;  %s6783_s9 = inlined_call_operand.vmem [shape: f32[2,3,64,32], index: 9, kind: input, shape index: {}]   ;;  %s6784_s10 = inlined_call_operand.hbm [shape: f32[2,3,1,32], index: 10, kind: input, shape index: {}]   ;;  %s6785_s11 = inlined_call_operand.vmem [shape: f32[2,3,4,32], index: 11, kind: input, shape index: {}]   ;;  %s6786_s12 = inlined_call_operand.vmem [shape: f32[2,3,32,96], index: 12, kind: input, shape index: {}]   ;;  %s6787_s13 = inlined_call_operand.hbm [shape: f32[2,3,1,96], index: 13, kind: input, shape index: {}]   ;;  %s6788_s14 = inlined_call_operand.vmem [shape: f32[2,3,32,32], index: 14, kind: input, shape index: {}]   ;;  %s6789_s15 = inlined_call_operand.hbm [shape: f32[2,3,1,32], index: 15, kind: input, shape index: {}]   ;;  %s6790_s16 = inlined_call_operand.hbm [shape: f32[2,3,32,96], index: 16, kind: input, shape index: {}]   ;;  %s6791_s17 = inlined_call_operand.hbm [shape: f32[2,3,1,96], index: 17, kind: input, shape index: {}]   ;;  %s6792_s18 = inlined_call_operand.hbm [shape: f32[2,3,32,32], index: 18, kind: input, shape index: {}]   ;;  %s6793_s19 = inlined_call_operand.hbm [shape: f32[2,3,1,32], index: 19, kind: input, shape index: {}]   ;;  %s6794_s20 = inlined_call_operand.hbm [shape: f32[2,3,32,64], index: 20, kind: input, shape index: {}]   ;;  %s6795_s21 = inlined_call_operand.hbm [shape: f32[2,3,1,64], index: 21, kind: input, shape index: {}]   ;;  %s6796_s22 = inlined_call_operand.vmem [shape: f32[2,3,64,32], index: 22, kind: input, shape index: {}]   ;;  %s6797_s23 = inlined_call_operand.hbm [shape: f32[2,3,1,32], index: 23, kind: input, shape index: {}]   ;;  %s6798_s24 = inlined_call_operand.vmem [shape: f32[2,3,6,32], index: 24, kind: input, shape index: {}]   ;;  %s6799_s25 = inlined_call_operand.hbm [shape: f32[2,4,32], index: 25, kind: input, shape index: {}]   ;;  %s6800_s26 = inlined_call_operand.vmem [shape: f32[2,32,36], index: 26, kind: input, shape index: {}]   ;;  %s6801_s27 = inlined_call_operand.vmem [shape: f32[2,1,36], index: 27, kind: input, shape index: {}]   ;;  %s6802_s28 = inlined_call_operand.vmem [shape: f32[2,1,36], index: 28, kind: output, shape index: {}]  }
   0x1   :  { %6844 = sst [smem:[#allocation38_spill]] %s6774_s0 }
   0x2   :  { %6845 = sst [smem:[#allocation39_spill]] %s6775_s1 }
   0x3   :  { %6846 = sst [smem:[#allocation40_spill]] %s6776_s2 }
   0x4   :  { %6847 = sst [smem:[#allocation41_spill]] %s6777_s3 }
   0x5   :  { %6848 = sst [smem:[#allocation42_spill]] %s6778_s4 }
   0x6   :  { %6849 = sst [smem:[#allocation43_spill]] %s6779_s5 }
   0x7   :  { %6850 = sst [smem:[#allocation44_spill]] %s6780_s6 }
   0x8   :  { %6851 = sst [smem:[#allocation45_spill]] %s6781_s7 }
   0x9   :  { %6852 = sst [smem:[#allocation46_spill]] %s6782_s8 }
   0xa   :  { %6853 = sst [smem:[#allocation47_spill]] %s6783_s9 }
   0xb   :  { %6854 = sst [smem:[#allocation48_spill]] %s6784_s10 }
   0xc   :  { %6855 = sst [smem:[#allocation49_spill]] %s6785_s11 }
   0xd   :  { %6856 = sst [smem:[#allocation50_spill]] %s6786_s12 }
   0xe   :  { %6857 = sst [smem:[#allocation51_spill]] %s6787_s13 }
   0xf   :  { %6858 = sst [smem:[#allocation52_spill]] %s6788_s14 }
  0x10   :  { %6859 = sst [smem:[#allocation53_spill]] %s6789_s15 }
  0x11   :  { %6860 = sst [smem:[#allocation54_spill]] %s6790_s16 }
  0x12   :  { %6861 = sst [smem:[#allocation55_spill]] %s6791_s17 }
  0x13   :  { %6862 = sst [smem:[#allocation56_spill]] %s6792_s18 }
  0x14   :  { %6863 = sst [smem:[#allocation57_spill]] %s6793_s19 }
  0x15   :  { %6864 = sst [smem:[#allocation58_spill]] %s6794_s20 }
  0x16   :  { %6865 = sst [smem:[#allocation59_spill]] %s6795_s21 }
  0x17   :  { %6866 = sst [smem:[#allocation60_spill]] %s6796_s22 }
  0x18   :  { %6867 = sst [smem:[#allocation61_spill]] %s6797_s23 }
  0x19   :  { %6868 = sst [smem:[#allocation62_spill]] %s6798_s24 }
  0x1a   :  { %6869 = sst [smem:[#allocation63_spill]] %s6799_s25 }
  0x1b   :  { %6870 = sst [smem:[#allocation64_spill]] %s6800_s26 }
  0x1c   :  { %6871 = sst [smem:[#allocation65_spill]] %s6801_s27 }
  0x1d   :  { %6872 = sst [smem:[#allocation66_spill]] %s6802_s28 }
  0x1e   :  { %33 = vsyncpa [#allocation3], 0 }
  0x1f   :  { %35 = vsyncpa [#allocation3 + $0x1], 0 }
  0x20   :  { %36 = vsyncpa [#allocation5], 0 }
  0x21   :  { %38 = vsyncpa [#allocation5 + $0x1], 0 }
  0x22   :  { %39 = vsyncpa [#allocation8], 0 }
  0x23   :  { %41 = vsyncpa [#allocation8 + $0x1], 0 }
  0x24   :  { %42 = vsyncpa [#allocation11], 0 }
  0x25   :  { %44 = vsyncpa [#allocation11 + $0x1], 0 }
  0x26   :  { %45 = vsyncpa [#allocation14], 0 }
  0x27   :  { %47 = vsyncpa [#allocation14 + $0x1], 0 }
  0x28   :  { %48 = vsyncpa [#allocation17], 0 }
  0x29   :  { %50 = vsyncpa [#allocation17 + $0x1], 0 }
  0x2a   :  { %51 = vsyncpa [#allocation20], 0 }
  0x2b   :  { %53 = vsyncpa [#allocation20 + $0x1], 0 }
  0x2c   :  { %54 = vsyncpa [#allocation23], 0 }
  0x2d   :  { %56 = vsyncpa [#allocation23 + $0x1], 0  ;;  %s5711_s8 = smov 0   ;;  %s5713_s5 = smov 0  }
  0x2e   :  { %s5715_s9 = smov 0   ;;  %s5717_s30 = smov 0  }
  0x2f LB: > { %6873 = sst [smem:[#allocation32_spill]] %s5544_s5  ;;  %s5730_s3 = sadd.s32 4294967295, %s5552_s30   ;;  %s5552_s30 = sphi %s5717_s30, %s6928_s30   ;;  %s5548_s9 = sphi %s5715_s9, %s6931_s9   ;;  %s5544_s5 = sphi %s5713_s5, %s6930_s5   ;;  %s5540_s8 = sphi %s5711_s8, %s6929_s8  }
  0x30   : > { %6874 = sst [smem:[#allocation33_spill]] %s5548_s9  ;;  %s5733_s6 = sadd.s32 1, %s5552_s30  }
  0x31   : > { %6875 = sst [smem:[#allocation34_spill]] %s5730_s3  ;;  %s155_s10 = ssub.s32 %s5552_s30, %s5733_s6 }
  0x32   : > { %6876 = sst [smem:[#allocation35_spill]] %s5733_s6  ;;  %s158_s0 = sadd.s32 1, %s5548_s9 }
  0x33   : > { %p156_p0 = scmp.eq.s32.totalorder %s155_s10, 0  ;;  %p165_p1 = scmp.ne.s32.totalorder %s5548_s9, %s5544_s5 }
  0x34   : > { %p166_p2 = scmp.eq.s32.totalorder %s5552_s30, 0  ;;  %p171_p3 = scmp.ne.s32.totalorder %s5544_s5, %s5540_s8 }
  0x35   : > { %s5743_s11 = scalar_select %p156_p0, %s5548_s9, %s158_s0  }
  0x36   : > { %p5745_p4 = por %p166_p2, %p165_p1  ;;  %p172_p5 = scmp.eq.s32.totalorder %s5730_s3, 0 }
  0x37   : > { %6877 = sst [smem:[#allocation36_spill]] %s5743_s11  ;;  %p4616_p7 = scmp.ge.s32.totalorder %s5552_s30, 2 }
  0x38   : > { %p5750_p6 = por %p172_p5, %p171_p3  ;;  %s5756_s7 = sand.u32 (!%p4616_p7), 1, %s5548_s9  }
  0x39   : > { %824 = sbr.rel (%p4616_p7) target bundleno = 340 (0x154), region = 28  ;;  %s5765_s4 = sand.u32 (!%p4616_p7), 1, %s5552_s30  }
  0x3a   : > { %s6879_s2 = scalar_select %p5750_p6, 1, 0 }
  0x3b   : > { %s5759_s12 = smul.u32 (!%p4616_p7), 3, %s5552_s30  ;;  %s6881_s0 = sld [smem:[#allocation44_spill]] (!%p4616_p7) }
  0x3c   : > { %6880 = sst [smem:[#allocation37_spill]] %s6879_s2  ;;  %s5762_s1 = smul.u32 (!%p4616_p7), 3, %s5756_s7 }
  0x3d   : > { %s6820_s9 = scalar_lea.sflag (!%p4616_p7), [#allocation5], %s5765_s4 }
  0x3e   : > { %s869_s6 = scalar_lea.vmem [#allocation4], %s5762_s1 }
  0x3f   : > { %s876_s28 = sshll.u32 %s869_s6, 4  ;;  %s877_s28 = int_to_ptr.vmem [resolvable:$true] %s876_s28 }
  0x41   : > { %s873_s11 = scalar_lea.hbm %s6881_s0, %s5759_s12  ;;  %s5104_s3 = scalar_lea.hbm %s6881_s0, 6 }
  0x42   : > { %s874_s27 = sshll.u32 %s873_s11, 4  ;;  %s875_s27 = int_to_ptr.hbm [resolvable:$true] %s874_s27 }
  0x43   : > { %s5098_s26 = sshra.s32 %s875_s27, 4  ;;  %s5099_s26 = int_to_ptr.hbm [resolvable:$true] %s5098_s26 }
  0x44   : > { %s5100_s22 = scalar_lea.hbm %s5099_s26, 3  ;;  %p5105_p11 = scmp.lt.s32.totalorder %s5099_s26, %s6881_s0 }
  0x45   : > { %p5101_p8 = scmp.ne.s32.totalorder %s5099_s26, %s5100_s22  ;;  %p5106_p12 = scmp.lt.s32.totalorder %s5104_s3, %s5100_s22 }
  0x47   : > { %p5102_p9 = pnand %p5101_p8, %p5745_p4  ;;  %p5107_p13 = por %p5106_p12, %p5105_p11 }
  0x49   : > { %p5103_p10 = pneg %p5102_p9 }
  0x4b   : > { %p5108_p0 = pnand %p5107_p13, %p5103_p10 }
  0x4d   : > { %5111 = shalt.err (!%p5108_p0)
}
  0x4e   : > { %s6826_s6 = smov 16   ;;  %s6827_s11 = smov 1  }
  0x4f   : > { %4863 = dma.hbm_to_vmem [thread:$0]  (%p5745_p4), %s875_s27, 48, %s877_s28, %s6820_s9, %s6826_s6, %s6826_s6, %s6827_s11  }
  0x50   : > { %s6882_s22 = sld [smem:[#allocation48_spill]]  ;;  %s927_s8 = scalar_lea.vmem [#allocation7], %s5762_s1 }
  0x51   : > { %s934_s10 = sshll.u32 %s927_s8, 4  ;;  %s6821_s0 = scalar_lea.sflag [#allocation8], %s5765_s4  ;;  %s935_s10 = int_to_ptr.vmem [resolvable:$true] %s934_s10 }
  0x56   : > { %s931_s26 = scalar_lea.hbm %s6882_s22, %s5759_s12  ;;  %s5132_s27 = scalar_lea.hbm %s6882_s22, 6 }
  0x57   : > { %s932_s3 = sshll.u32 %s931_s26, 4  ;;  %s933_s3 = int_to_ptr.hbm [resolvable:$true] %s932_s3 }
  0x58   : > { %s5126_s2 = sshra.s32 %s933_s3, 4  ;;  %s5127_s2 = int_to_ptr.hbm [resolvable:$true] %s5126_s2 }
  0x59   : > { %s5128_s5 = scalar_lea.hbm %s5127_s2, 3  ;;  %p5133_p5 = scmp.lt.s32.totalorder %s5127_s2, %s6882_s22 }
  0x5a   : > { %p5129_p1 = scmp.ne.s32.totalorder %s5127_s2, %s5128_s5  ;;  %p5134_p7 = scmp.lt.s32.totalorder %s5132_s27, %s5128_s5 }
  0x5c   : > { %p5130_p2 = pnand %p5129_p1, %p5745_p4  ;;  %p5135_p8 = por %p5134_p7, %p5133_p5 }
  0x5e   : > { %p5131_p3 = pneg %p5130_p2 }
  0x60   : > { %p5136_p9 = pnand %p5135_p8, %p5131_p3 }
  0x62   : > { %5139 = shalt.err (!%p5136_p9)
}
  0x63   : > { %4865 = dma.hbm_to_vmem [thread:$0]  (%p5745_p4), %s933_s3, 48, %s935_s10, %s6821_s0, %s6826_s6, %s6826_s6, %s6827_s11  }
  0x64   : > { %s6883_s15 = sld [smem:[#allocation53_spill]]  ;;  %s993_s5 = scalar_lea.vmem [#allocation10], %s5762_s1 }
  0x65   : > { %s1000_s24 = sshll.u32 %s993_s5, 4  ;;  %s6822_s8 = scalar_lea.sflag [#allocation11], %s5765_s4  ;;  %s1001_s24 = int_to_ptr.vmem [resolvable:$true] %s1000_s24 }
  0x6a   : > { %s997_s2 = scalar_lea.hbm %s6883_s15, %s5759_s12  ;;  %s5160_s3 = scalar_lea.hbm %s6883_s15, 6 }
  0x6b   : > { %s998_s26 = sshll.u32 %s997_s2, 4  ;;  %s999_s26 = int_to_ptr.hbm [resolvable:$true] %s998_s26 }
  0x6c   : > { %s5154_s27 = sshra.s32 %s999_s26, 4  ;;  %s5155_s27 = int_to_ptr.hbm [resolvable:$true] %s5154_s27 }
  0x6d   : > { %s5156_s28 = scalar_lea.hbm %s5155_s27, 3  ;;  %p5161_p13 = scmp.lt.s32.totalorder %s5155_s27, %s6883_s15 }
  0x6e   : > { %p5157_p10 = scmp.ne.s32.totalorder %s5155_s27, %s5156_s28  ;;  %p5162_p0 = scmp.lt.s32.totalorder %s5160_s3, %s5156_s28 }
  0x70   : > { %p5158_p11 = pnand %p5157_p10, %p5745_p4  ;;  %p5163_p1 = por %p5162_p0, %p5161_p13 }
  0x72   : > { %p5159_p12 = pneg %p5158_p11 }
  0x74   : > { %p5164_p2 = pnand %p5163_p1, %p5159_p12 }
  0x76   : > { %5167 = shalt.err (!%p5164_p2)
}
  0x77   : > { %4867 = dma.hbm_to_vmem [thread:$0]  (%p5745_p4), %s999_s26, 48, %s1001_s24, %s6822_s8, %s6826_s6, %s6826_s6, %s6827_s11  }
  0x78   : > { %s6884_s17 = sld [smem:[#allocation55_spill]]  ;;  %s1036_s27 = scalar_lea.vmem [#allocation13], %s5762_s1 }
  0x79   : > { %s1043_s28 = sshll.u32 %s1036_s27, 4  ;;  %s6823_s14 = scalar_lea.sflag [#allocation14], %s5765_s4  ;;  %s1044_s28 = int_to_ptr.vmem [resolvable:$true] %s1043_s28 }
  0x7e   : > { %s1040_s2 = scalar_lea.hbm %s6884_s17, %s5759_s12  ;;  %s5188_s24 = scalar_lea.hbm %s6884_s17, 6 }
  0x7f   : > { %s1041_s5 = sshll.u32 %s1040_s2, 4  ;;  %s1042_s5 = int_to_ptr.hbm [resolvable:$true] %s1041_s5 }
  0x80   : > { %s5182_s3 = sshra.s32 %s1042_s5, 4  ;;  %s5183_s3 = int_to_ptr.hbm [resolvable:$true] %s5182_s3 }
  0x81   : > { %s5184_s10 = scalar_lea.hbm %s5183_s3, 3  ;;  %p5189_p8 = scmp.lt.s32.totalorder %s5183_s3, %s6884_s17 }
  0x82   : > { %p5185_p3 = scmp.ne.s32.totalorder %s5183_s3, %s5184_s10  ;;  %p5190_p9 = scmp.lt.s32.totalorder %s5188_s24, %s5184_s10 }
  0x84   : > { %p5186_p5 = pnand %p5185_p3, %p5745_p4  ;;  %p5191_p10 = por %p5190_p9, %p5189_p8 }
  0x86   : > { %p5187_p7 = pneg %p5186_p5 }
  0x88   : > { %p5192_p11 = pnand %p5191_p10, %p5187_p7 }
  0x8a   : > { %5195 = shalt.err (!%p5192_p11)
}
  0x8b   : > { %4869 = dma.hbm_to_vmem [thread:$0]  (%p5745_p4), %s1042_s5, 48, %s1044_s28, %s6823_s14, %s6826_s6, %s6826_s6, %s6827_s11  }
  0x8c   : > { %s6885_s19 = sld [smem:[#allocation57_spill]]  ;;  %s1079_s27 = scalar_lea.vmem [#allocation16], %s5762_s1 }
  0x8d   : > { %s1086_s3 = sshll.u32 %s1079_s27, 4  ;;  %s6824_s23 = scalar_lea.sflag [#allocation17], %s5765_s4  ;;  %s1087_s3 = int_to_ptr.vmem [resolvable:$true] %s1086_s3 }
  0x92   : > { %s1083_s2 = scalar_lea.hbm %s6885_s19, %s5759_s12  ;;  %s5216_s5 = scalar_lea.hbm %s6885_s19, 6 }
  0x93   : > { %s1084_s10 = sshll.u32 %s1083_s2, 4  ;;  %s1085_s10 = int_to_ptr.hbm [resolvable:$true] %s1084_s10 }
  0x94   : > { %s5210_s24 = sshra.s32 %s1085_s10, 4  ;;  %s5211_s24 = int_to_ptr.hbm [resolvable:$true] %s5210_s24 }
  0x95   : > { %s5212_s26 = scalar_lea.hbm %s5211_s24, 3  ;;  %p5217_p1 = scmp.lt.s32.totalorder %s5211_s24, %s6885_s19 }
  0x96   : > { %p5213_p12 = scmp.ne.s32.totalorder %s5211_s24, %s5212_s26  ;;  %p5218_p2 = scmp.lt.s32.totalorder %s5216_s5, %s5212_s26 }
  0x98   : > { %p5214_p13 = pnand %p5213_p12, %p5745_p4  ;;  %p5219_p3 = por %p5218_p2, %p5217_p1 }
  0x9a   : > { %p5215_p0 = pneg %p5214_p13 }
  0x9c   : > { %p5220_p5 = pnand %p5219_p3, %p5215_p0 }
  0x9e   : > { %5223 = shalt.err (!%p5220_p5)
}
  0x9f   : > { %4871 = dma.hbm_to_vmem [thread:$0]  (%p5745_p4), %s1085_s10, 48, %s1087_s3, %s6824_s23, %s6826_s6, %s6826_s6, %s6827_s11  }
  0xa0   : > { %s6886_s21 = sld [smem:[#allocation59_spill]]  ;;  %s1122_s24 = scalar_lea.vmem [#allocation19], %s5762_s1 }
  0xa1   : > { %s1129_s26 = sshll.u32 %s1122_s24, 4  ;;  %s6825_s9 = scalar_lea.sflag [#allocation20], %s5765_s4  ;;  %s1130_s26 = int_to_ptr.vmem [resolvable:$true] %s1129_s26 }
  0xa6   : > { %s1126_s2 = scalar_lea.hbm %s6886_s21, %s5759_s12  ;;  %s5244_s3 = scalar_lea.hbm %s6886_s21, 6 }
  0xa7   : > { %s1127_s27 = sshll.u32 %s1126_s2, 4  ;;  %s1128_s27 = int_to_ptr.hbm [resolvable:$true] %s1127_s27 }
  0xa8   : > { %s5238_s5 = sshra.s32 %s1128_s27, 4  ;;  %s5239_s5 = int_to_ptr.hbm [resolvable:$true] %s5238_s5 }
  0xa9   : > { %s5240_s28 = scalar_lea.hbm %s5239_s5, 3  ;;  %p5245_p10 = scmp.lt.s32.totalorder %s5239_s5, %s6886_s21 }
  0xaa   : > { %p5241_p7 = scmp.ne.s32.totalorder %s5239_s5, %s5240_s28  ;;  %p5246_p11 = scmp.lt.s32.totalorder %s5244_s3, %s5240_s28 }
  0xac   : > { %p5242_p8 = pnand %p5241_p7, %p5745_p4  ;;  %p5247_p12 = por %p5246_p11, %p5245_p10 }
  0xae   : > { %p5243_p9 = pneg %p5242_p8 }
  0xb0   : > { %p5248_p13 = pnand %p5247_p12, %p5243_p9 }
  0xb2   : > { %5251 = shalt.err (!%p5248_p13)
}
  0xb3   : > { %4873 = dma.hbm_to_vmem [thread:$0]  (%p5745_p4), %s1128_s27, 48, %s1130_s26, %s6825_s9, %s6826_s6, %s6826_s6, %s6827_s11  }
  0xb4   : > { %s6887_s2 = sld [smem:[#allocation42_spill]]  ;;  %s840_s5 = scalar_lea.vmem [#allocation2], %s5762_s1 }
  0xb5   : > { %s847_s28 = sshll.u32 %s840_s5, 4  ;;  %s837_s3 = scalar_lea.sflag [#allocation3], %s5756_s7  ;;  %s848_s28 = int_to_ptr.vmem [resolvable:$true] %s847_s28 }
  0xba   : > { %s844_s24 = scalar_lea.hbm %s6887_s2, %s5759_s12  ;;  %s5272_s27 = scalar_lea.hbm %s6887_s2, 6 }
  0xbb   : > { %s845_s0 = sshll.u32 %s844_s24, 4  ;;  %s846_s0 = int_to_ptr.hbm [resolvable:$true] %s845_s0 }
  0xbc   : > { %s5266_s10 = sshra.s32 %s846_s0, 4  ;;  %s5267_s10 = int_to_ptr.hbm [resolvable:$true] %s5266_s10 }
  0xbd   : > { %s5268_s8 = scalar_lea.hbm %s5267_s10, 3  ;;  %p5273_p3 = scmp.lt.s32.totalorder %s5267_s10, %s6887_s2 }
  0xbe   : > { %p5269_p0 = scmp.ne.s32.totalorder %s5267_s10, %s5268_s8  ;;  %p5274_p5 = scmp.lt.s32.totalorder %s5272_s27, %s5268_s8 }
  0xc0   : > { %p5270_p1 = pnand %p5269_p0, %p5745_p4  ;;  %p5275_p7 = por %p5274_p5, %p5273_p3 }
  0xc2   : > { %p5271_p2 = pneg %p5270_p1 }
  0xc4   : > { %p5276_p8 = pnand %p5275_p7, %p5271_p2 }
  0xc6   : > { %5279 = shalt.err (!%p5276_p8)
}
  0xc7   : > { %4862 = dma.hbm_to_vmem [thread:$0]  (%p5745_p4), %s846_s0, 48, %s848_s28, %s837_s3, %s6826_s6, %s6826_s6, %s6827_s11  }
  0xc8   : > { %s6888_s23 = sld [smem:[#allocation46_spill]]  ;;  %s898_s5 = scalar_lea.vmem [#allocation6], %s5762_s1 }
  0xc9   : > { %s905_s26 = sshll.u32 %s898_s5, 4  ;;  %s906_s26 = int_to_ptr.vmem [resolvable:$true] %s905_s26 }
  0xce   : > { %s902_s24 = scalar_lea.hbm %s6888_s23, %s5759_s12  ;;  %s5300_s28 = scalar_lea.hbm %s6888_s23, 6 }
  0xcf   : > { %s903_s10 = sshll.u32 %s902_s24, 4  ;;  %s904_s10 = int_to_ptr.hbm [resolvable:$true] %s903_s10 }
  0xd0   : > { %s5294_s8 = sshra.s32 %s904_s10, 4  ;;  %s5295_s8 = int_to_ptr.hbm [resolvable:$true] %s5294_s8 }
  0xd1   : > { %s5296_s27 = scalar_lea.hbm %s5295_s8, 3  ;;  %p5301_p12 = scmp.lt.s32.totalorder %s5295_s8, %s6888_s23 }
  0xd2   : > { %p5297_p9 = scmp.ne.s32.totalorder %s5295_s8, %s5296_s27  ;;  %p5302_p13 = scmp.lt.s32.totalorder %s5300_s28, %s5296_s27 }
  0xd4   : > { %p5298_p10 = pnand %p5297_p9, %p5745_p4  ;;  %p5303_p0 = por %p5302_p13, %p5301_p12 }
  0xd6   : > { %p5299_p11 = pneg %p5298_p10 }
  0xd8   : > { %p5304_p1 = pnand %p5303_p0, %p5299_p11 }
  0xda   : > { %5307 = shalt.err (!%p5304_p1)
}
  0xdb   : > { %s6889_s25 = scalar_lea.sflag [#allocation5], %s5765_s4  ;;  %s6890_s13 = sld [smem:[#allocation51_spill]] }
  0xdc   : > { %4864 = dma.hbm_to_vmem [thread:$0]  (%p5745_p4), %s904_s10, 48, %s906_s26, %s6889_s25, %s6826_s6, %s6826_s6, %s6827_s11  }
  0xdd   : > { %s964_s5 = scalar_lea.vmem [#allocation9], %s5762_s1  ;;  %s5938_s14 = smul.u32 96, %s5756_s7 }
  0xde   : > { %s971_s8 = sshll.u32 %s964_s5, 4  ;;  %s972_s8 = int_to_ptr.vmem [resolvable:$true] %s971_s8 }
  0xe1   : > { %s968_s24 = scalar_lea.hbm %s6890_s13, %s5759_s12  ;;  %s5328_s10 = scalar_lea.hbm %s6890_s13, 6 }
  0xe2   : > { %s969_s27 = sshll.u32 %s968_s24, 4  ;;  %s970_s27 = int_to_ptr.hbm [resolvable:$true] %s969_s27 }
  0xe3   : > { %s5322_s28 = sshra.s32 %s970_s27, 4  ;;  %s5323_s28 = int_to_ptr.hbm [resolvable:$true] %s5322_s28 }
  0xe4   : > { %s5324_s0 = scalar_lea.hbm %s5323_s28, 3  ;;  %p5329_p7 = scmp.lt.s32.totalorder %s5323_s28, %s6890_s13 }
  0xe5   : > { %p5325_p2 = scmp.ne.s32.totalorder %s5323_s28, %s5324_s0  ;;  %p5330_p8 = scmp.lt.s32.totalorder %s5328_s10, %s5324_s0 }
  0xe7   : > { %p5326_p3 = pnand %p5325_p2, %p5745_p4  ;;  %p5331_p9 = por %p5330_p8, %p5329_p7 }
  0xe9   : > { %p5327_p5 = pneg %p5326_p3 }
  0xeb   : > { %p5332_p10 = pnand %p5331_p9, %p5327_p5 }
  0xed   : > { %5335 = shalt.err (!%p5332_p10)
}
  0xee   : > { %s6891_s15 = scalar_lea.sflag [#allocation8], %s5765_s4  ;;  %s5956_s24 = smul.u32 96, %s5552_s30 }
  0xef   : > { %4866 = dma.hbm_to_vmem [thread:$0]  (%p5745_p4), %s970_s27, 48, %s972_s8, %s6891_s15, %s6826_s6, %s6826_s6, %s6827_s11  }
  0xf0   : > { %s1014_s5 = scalar_lea.vmem [#allocation12], %s5938_s14  ;;  %s6892_s16 = sld [smem:[#allocation54_spill]] }
  0xf1   : > { %s1022_s28 = sshll.u32 %s1014_s5, 4  ;;  %s1023_s28 = int_to_ptr.vmem [resolvable:$true] %s1022_s28 }
  0xf6   : > { %s1019_s26 = scalar_lea.hbm %s6892_s16, %s5956_s24  ;;  %s5356_s15 = scalar_lea.hbm %s6892_s16, 192 }
  0xf7   : > { %s1020_s10 = sshll.u32 %s1019_s26, 4  ;;  %s1021_s10 = int_to_ptr.hbm [resolvable:$true] %s1020_s10 }
  0xf8   : > { %s5350_s25 = sshra.s32 %s1021_s10, 4  ;;  %s5351_s25 = int_to_ptr.hbm [resolvable:$true] %s5350_s25 }
  0xf9   : > { %s5352_s9 = scalar_lea.hbm %s5351_s25, 96  ;;  %p5357_p0 = scmp.lt.s32.totalorder %s5351_s25, %s6892_s16 }
  0xfa   : > { %p5353_p11 = scmp.ne.s32.totalorder %s5351_s25, %s5352_s9  ;;  %p5358_p1 = scmp.lt.s32.totalorder %s5356_s15, %s5352_s9 }
  0xfc   : > { %p5354_p12 = pnand %p5353_p11, %p5745_p4  ;;  %p5359_p2 = por %p5358_p1, %p5357_p0 }
  0xfe   : > { %p5355_p13 = pneg %p5354_p12 }
 0x100   : > { %p5360_p3 = pnand %p5359_p2, %p5355_p13 }
 0x102   : > { %5363 = shalt.err (!%p5360_p3)
}
 0x103   : > { %s5556_s0 = smov 128   ;;  %s5557_s3 = smov 8  }
 0x104   : > { %s6893_s26 = scalar_lea.sflag [#allocation11], %s5765_s4  ;;  %s6894_s18 = sld [smem:[#allocation56_spill]] }
 0x105   : > { %4868 = dma.hbm_to_vmem [thread:$0]  (%p5745_p4), %s1021_s10, 1536, %s1023_s28, %s6893_s26, %s5556_s0, %s5556_s0, %s5557_s3  }
 0x106   : > { %s1057_s9 = scalar_lea.vmem [#allocation15], %s5938_s14 }
 0x107   : > { %s1065_s27 = sshll.u32 %s1057_s9, 4  ;;  %s1066_s27 = int_to_ptr.vmem [resolvable:$true] %s1065_s27 }
 0x10a   : > { %s1062_s25 = scalar_lea.hbm %s6894_s18, %s5956_s24  ;;  %s5384_s28 = scalar_lea.hbm %s6894_s18, 192 }
 0x10b   : > { %s1063_s15 = sshll.u32 %s1062_s25, 4  ;;  %s1064_s15 = int_to_ptr.hbm [resolvable:$true] %s1063_s15 }
 0x10c   : > { %s5378_s5 = sshra.s32 %s1064_s15, 4  ;;  %s5379_s5 = int_to_ptr.hbm [resolvable:$true] %s5378_s5 }
 0x10d   : > { %s5380_s11 = scalar_lea.hbm %s5379_s5, 96  ;;  %p5385_p9 = scmp.lt.s32.totalorder %s5379_s5, %s6894_s18 }
 0x10e   : > { %p5381_p5 = scmp.ne.s32.totalorder %s5379_s5, %s5380_s11  ;;  %p5386_p10 = scmp.lt.s32.totalorder %s5384_s28, %s5380_s11 }
 0x110   : > { %p5382_p7 = pnand %p5381_p5, %p5745_p4  ;;  %p5387_p11 = por %p5386_p10, %p5385_p9 }
 0x112   : > { %p5383_p8 = pneg %p5382_p7 }
 0x114   : > { %p5388_p12 = pnand %p5387_p11, %p5383_p8 }
 0x116   : > { %5391 = shalt.err (!%p5388_p12)
}
 0x117   : > { %s6895_s8 = scalar_lea.sflag [#allocation14], %s5765_s4  ;;  %s6896_s20 = sld [smem:[#allocation58_spill]] }
 0x118   : > { %4870 = dma.hbm_to_vmem [thread:$0]  (%p5745_p4), %s1064_s15, 1536, %s1066_s27, %s6895_s8, %s5556_s0, %s5556_s0, %s5557_s3  }
 0x119   : > { %s1100_s25 = scalar_lea.vmem [#allocation18], %s5938_s14 }
 0x11a   : > { %s1108_s11 = sshll.u32 %s1100_s25, 4  ;;  %s1109_s11 = int_to_ptr.vmem [resolvable:$true] %s1108_s11 }
 0x11d   : > { %s1105_s6 = scalar_lea.hbm %s6896_s20, %s5956_s24  ;;  %s5412_s27 = scalar_lea.hbm %s6896_s20, 192 }
 0x11e   : > { %s1106_s9 = sshll.u32 %s1105_s6, 4  ;;  %s1107_s9 = int_to_ptr.hbm [resolvable:$true] %s1106_s9 }
 0x11f   : > { %s5406_s5 = sshra.s32 %s1107_s9, 4  ;;  %s5407_s5 = int_to_ptr.hbm [resolvable:$true] %s5406_s5 }
 0x120   : > { %s5408_s28 = scalar_lea.hbm %s5407_s5, 96  ;;  %p5413_p2 = scmp.lt.s32.totalorder %s5407_s5, %s6896_s20 }
 0x121   : > { %p5409_p13 = scmp.ne.s32.totalorder %s5407_s5, %s5408_s28  ;;  %p5414_p3 = scmp.lt.s32.totalorder %s5412_s27, %s5408_s28 }
 0x123   : > { %p5410_p0 = pnand %p5409_p13, %p5745_p4  ;;  %p5415_p5 = por %p5414_p3, %p5413_p2 }
 0x125   : > { %p5411_p1 = pneg %p5410_p0 }
 0x127   : > { %p5416_p7 = pnand %p5415_p5, %p5411_p1 }
 0x129   : > { %5419 = shalt.err (!%p5416_p7)
}
 0x12a   : > { %s6897_s14 = scalar_lea.sflag [#allocation17], %s5765_s4  ;;  %s6898_s2 = sld [smem:[#allocation61_spill]] }
 0x12b   : > { %4872 = dma.hbm_to_vmem [thread:$0]  (%p5745_p4), %s1107_s9, 1536, %s1109_s11, %s6897_s14, %s5556_s0, %s5556_s0, %s5557_s3  }
 0x12c   : > { %s1151_s25 = scalar_lea.vmem [#allocation21], %s5762_s1 }
 0x12d   : > { %s1158_s5 = sshll.u32 %s1151_s25, 4  ;;  %s1159_s5 = int_to_ptr.vmem [resolvable:$true] %s1158_s5 }
 0x130   : > { %s1155_s6 = scalar_lea.hbm %s6898_s2, %s5759_s12  ;;  %s5440_s0 = scalar_lea.hbm %s6898_s2, 6 }
 0x131   : > { %s1156_s28 = sshll.u32 %s1155_s6, 4  ;;  %s1157_s28 = int_to_ptr.hbm [resolvable:$true] %s1156_s28 }
 0x132   : > { %s5434_s10 = sshra.s32 %s1157_s28, 4  ;;  %s5435_s10 = int_to_ptr.hbm [resolvable:$true] %s5434_s10 }
 0x133   : > { %s5436_s26 = scalar_lea.hbm %s5435_s10, 3  ;;  %p5441_p11 = scmp.lt.s32.totalorder %s5435_s10, %s6898_s2 }
 0x134   : > { %p5437_p8 = scmp.ne.s32.totalorder %s5435_s10, %s5436_s26  ;;  %p5442_p12 = scmp.lt.s32.totalorder %s5440_s0, %s5436_s26 }
 0x136   : > { %p5438_p9 = pnand %p5437_p8, %p5745_p4  ;;  %p5443_p13 = por %p5442_p12, %p5441_p11 }
 0x138   : > { %p5439_p10 = pneg %p5438_p9 }
 0x13a   : > { %p5444_p0 = pnand %p5443_p13, %p5439_p10 }
 0x13c   : > { %5447 = shalt.err (!%p5444_p0)
}
 0x13d   : > { %s6899_s12 = smov 1   ;;  %s6900_s1 = smov 16  }
 0x13e   : > { %s6901_s9 = scalar_lea.sflag [#allocation20], %s5765_s4  ;;  %s4620_s8 = sshll.u32 %s5756_s7, 2 }
 0x13f   : > { %4874 = dma.hbm_to_vmem [thread:$0]  (%p5745_p4), %s1157_s28, 48, %s1159_s5, %s6901_s9, %s6900_s1, %s6900_s1, %s6899_s12  }
 0x140   : > { %s4621_s14 = sshll.u32 %s5552_s30, 2  ;;  %s6902_s6 = sld [smem:[#allocation63_spill]] }
 0x141   : > { %s1180_s26 = scalar_lea.vmem [#allocation22], %s4620_s8  ;;  %s1177_s15 = scalar_lea.sflag [#allocation23], %s5756_s7 }
 0x142   : > { %s1188_s27 = sshll.u32 %s1180_s26, 4  ;;  %s1189_s27 = int_to_ptr.vmem [resolvable:$true] %s1188_s27 }
 0x146   : > { %s1184_s25 = scalar_lea.hbm %s6902_s6, %s4621_s14  ;;  %s5468_s3 = scalar_lea.hbm %s6902_s6, 8 }
 0x147   : > { %s1186_s10 = sshll.u32 %s1184_s25, 4  ;;  %s1187_s10 = int_to_ptr.hbm [resolvable:$true] %s1186_s10 }
 0x148   : > { %s5462_s0 = sshra.s32 %s1187_s10, 4  ;;  %s5463_s0 = int_to_ptr.hbm [resolvable:$true] %s5462_s0 }
 0x149   : > { %s5464_s4 = scalar_lea.hbm %s5463_s0, 4  ;;  %p5469_p5 = scmp.lt.s32.totalorder %s5463_s0, %s6902_s6 }
 0x14a   : > { %p5465_p1 = scmp.ne.s32.totalorder %s5463_s0, %s5464_s4  ;;  %p5470_p7 = scmp.lt.s32.totalorder %s5468_s3, %s5464_s4 }
 0x14c   : > { %p5466_p2 = pnand %p5465_p1, %p5745_p4  ;;  %p5471_p8 = por %p5470_p7, %p5469_p5 }
 0x14e   : > { %p5467_p3 = pneg %p5466_p2 }
 0x150   : > { %p5472_p9 = pnand %p5471_p8, %p5467_p3 }
 0x152   : > { %5475 = shalt.err (!%p5472_p9)
}
 0x153   : > { %4875 = dma.hbm_to_vmem [thread:$0]  (%p5745_p4), %s1187_s10, 64, %s1189_s27, %s1177_s15  }
 0x154 PF: > { %p4622_p10 = scmp.ge.s32.totalorder %s5552_s30, 1  ;;  %p1207_p11 = scmp.lt.s32.totalorder %s5552_s30, 3 }
 0x156   : > { %p1208_p12 = pnand %p4622_p10, %p1207_p11 }
 0x157   : > { %s6903_s7 = sld [smem:[#allocation32_spill]] (!%p1208_p12) }
 0x158   : > { %1211 = sbr.rel (%p1208_p12) target bundleno = 13532 (0x34dc), region = 132 }
 0x15d   : > { %s6057_s9 = sand.u32 1, %s6903_s7  }
 0x15e   : > { %s6060_s8 = smul.u32 3, %s6057_s9  ;;  %s1214_s14 = scalar_lea.sflag [#allocation3], %s6057_s9 }
 0x160   : > { %s6064_s24 = scalar_lea.vmem [#allocation2], %s6060_s8 }
 0x161   : > { %5507 = dma.done.wait (%p5750_p6), %s1214_s14, 48  }
 0x162   : > { %5509 = vsyncadd (%p5750_p6), %s1214_s14, 4294967248  ;;  %s6905_s30 = sld [smem:[#allocation34_spill]]  ;;  %s6075_s25 = scalar_lea.vmem [#allocation4], %s6060_s8 }
 0x168   : > { %s6071_s29 = sand.u32 1, %s6905_s30  }
 0x169   : > { %s1224_s13 = scalar_lea.sflag [#allocation5], %s6071_s29 }
 0x16a   : > { %5511 = dma.done.wait (%p5750_p6), %s1224_s13, 96  }
 0x16b   : > { %5513 = vsyncadd (%p5750_p6), %s1224_s13, 4294967200  ;;  %s6082_s10 = scalar_lea.vmem [#allocation6], %s6060_s8  ;;  %s1244_s26 = scalar_lea.sflag [#allocation8], %s6071_s29 }
 0x16c   : > { %s6086_s27 = scalar_lea.vmem [#allocation7], %s6060_s8 }
 0x16d   : > { %5515 = dma.done.wait (%p5750_p6), %s1244_s26, 96  }
 0x16e   : > { %5517 = vsyncadd (%p5750_p6), %s1244_s26, 4294967200  ;;  %s6093_s15 = scalar_lea.vmem [#allocation9], %s6060_s8  ;;  %s1264_s0 = scalar_lea.sflag [#allocation11], %s6071_s29 }
 0x16f   : > { %s6097_s4 = scalar_lea.vmem [#allocation10], %s6060_s8 }
 0x170   : > { %5519 = dma.done.wait (%p5750_p6), %s1264_s0, 1584  }
 0x171   : > { %5521 = vsyncadd (%p5750_p6), %s1264_s0, 4294965712  ;;  %s4857_s5 = smul.u32 96, %s6057_s9  ;;  %s1284_s3 = scalar_lea.sflag [#allocation14], %s6071_s29 }
 0x172   : > { %s6108_s11 = scalar_lea.vmem [#allocation13], %s6060_s8 }
 0x173   : > { %s6104_s28 = scalar_lea.vmem [#allocation12], %s4857_s5 }
 0x174   : > { %5523 = dma.done.wait (%p5750_p6), %s1284_s3, 1584  }
 0x175   : > { %5525 = vsyncadd (%p5750_p6), %s1284_s3, 4294965712  ;;  %s6114_s12 = scalar_lea.vmem [#allocation15], %s4857_s5  ;;  %s1304_s7 = scalar_lea.sflag [#allocation17], %s6071_s29 }
 0x176   : > { %s6118_s14 = scalar_lea.vmem [#allocation16], %s6060_s8 }
 0x177   : > { %5527 = dma.done.wait (%p5750_p6), %s1304_s7, 1584  }
 0x178   : > { %5529 = vsyncadd (%p5750_p6), %s1304_s7, 4294965712  ;;  %s6124_s13 = scalar_lea.vmem [#allocation18], %s4857_s5  ;;  %s1324_s26 = scalar_lea.sflag [#allocation20], %s6071_s29 }
 0x179   : > { %s6128_s0 = scalar_lea.vmem [#allocation19], %s6060_s8 }
 0x17a   : > { %5531 = dma.done.wait (%p5750_p6), %s1324_s26, 96  }
 0x17b   : > { %5533 = vsyncadd (%p5750_p6), %s1324_s26, 4294967200  ;;  %s4623_s3 = sshll.u32 %s6057_s9, 2  ;;  %s6136_s2 = scalar_lea.vmem [#allocation21], %s6060_s8 }
 0x17c   : > { %s1344_s7 = scalar_lea.sflag [#allocation23], %s6057_s9  ;;  %s6139_s6 = scalar_lea.vmem [#allocation22], %s4623_s3 }
 0x17d   : > { %5535 = dma.done.wait (%p5750_p6), %s1344_s7, 64  }
 0x17e   : > { %5537 = vsyncadd (%p5750_p6), %s1344_s7, 4294967232  ;;  %p1537_p4 = scmp.lt.s32.totalorder %s6905_s30, 1  ;;  %s6906_s26 = sld [smem:[#allocation39_spill]]  ;;  %vm1623_vm0 = vcmask 1046528   ;;  %vm1619_vm1 = vcmask 252928   ;;  %vm1681_vm2 = vcmask 261120  }
 0x17f   : > { %s6907_s18 = sld [smem:[#allocation41_spill]]  ;;  %v4995_v31 = vld [vmem:[%s6064_s24] ss:$0 sm:$0xff]  ;;  %s6839_s5 = smov 80   ;;  %vm1708_vm3 = vcmask 130048   ;;  %vm1734_vm4 = vcmask 64512  }
 0x180   : > { %s6933_s30 = smov (!%p1537_p4, %s6905_s30), 1  ;;  %s6908_s3 = sld [smem:[#allocation38_spill]]  ;;  %vm1947_vm9 = vcmask 523264  }
 0x181   : > { %s6156_s9 = smul.u32 96, %s6933_s30  ;;  %s6909_s29 = sld [smem:[#allocation40_spill]] }
 0x182   : > { %s6841_s16 = smov 112   ;;  %s6837_s8 = smov 48  }
 0x183   : > { %s6833_s1 = smov 64   ;;  %s6910_s17 = sld [smem:[#allocation43_spill]] }
 0x184   : > { %v1610_v0 = vld [vmem:[%s6906_s26 + $0x78] sm:$0xff]  ;;  %v1609_v1 = vld [vmem:[%s6906_s26 + $0x70] sm:$0xff]  ;;  %v1608_v2 = vld [vmem:[%s6906_s26 + $0x68] sm:$0xff]  ;;  %s6913_s20 = sld [smem:[#allocation49_spill]] }
 0x185   : > { %1627 = vmatpush.msra.mxu0 %v1610_v0  ;;  %v1607_v3 = vld [vmem:[%s6906_s26 + $0x60] sm:$0xff]  ;;  %v1614_v4 = vld [vmem:[%s6906_s26 + $0x98] sm:$0x7f]  ;;  %s6171_s19 = scalar_lea.vmem %s6907_s18, %s6156_s9  ;;  %v1613_v5 = vld [vmem:[%s6906_s26 + $0x90] sm:$0xff]  ;;  %s6835_s18 = smov 96  }
 0x186   : > { %4635 = vmatpush.msk.msra.mxu1 %vm1623_vm0, %v1614_v4  ;;  %v1606_v6 = vld [vmem:[%s6906_s26 + $0x58] sm:$0xff]  ;;  %v1605_v7 = vld [vmem:[%s6906_s26 + $0x50] sm:$0xff]  ;;  %v1612_v8 = vld [vmem:[%s6906_s26 + $0x88] sm:$0xff] }
 0x187   : > { %1628 = vmatpush.msra.mxu0 %v1609_v1  ;;  %v1611_v9 = vld [vmem:[%s6906_s26 + $0x80] sm:$0xff]  ;;  %v1671_v10 = vld [vmem:[%s6171_s19 + $0x18] sm:$0xff]  ;;  %v1604_v11 = vld [vmem:[%s6906_s26 + $0x48] sm:$0xff] }
 0x188   : > { %1660 = vmatpush.msra.mxu1 %v1613_v5  ;;  %v1594_v12 = vld [vmem:[%s6908_s3 + $0x8] sm:$0xff]  ;;  %1697 = vmatpush.msra.mxu2 %v1671_v10  ;;  %v1603_v13 = vld [vmem:[%s6906_s26 + $0x40] sm:$0xff]  ;;  %v1602_v14 = vld [vmem:[%s6906_s26 + $0x38] sm:$0xff]  ;;  %v5564_v10 = vmov 32.0  }
 0x189   : > { %1629 = vmatpush.msra.mxu0 %v1608_v2  ;;  %v1601_v15 = vld [vmem:[%s6906_s26 + $0x30] sm:$0xff]  ;;  %v1600_v16 = vld [vmem:[%s6906_s26 + $0x28] sm:$0xff]  ;;  %v1599_v17 = vld [vmem:[%s6906_s26 + $0x20] sm:$0xff]  ;;  %s6255_s7 = scalar_lea.vmem %s6910_s17, %s6156_s9  ;;  %s6911_s17 = sld [smem:[#allocation45_spill]] }
 0x18a   : > { %1661 = vmatpush.msra.mxu1 %v1612_v8  ;;  %v1598_v18 = vld [vmem:[%s6906_s26 + $0x18] sm:$0xff]  ;;  %v1597_v19 = vld [vmem:[%s6906_s26 + $0x10] sm:$0xff]  ;;  %v1596_v20 = vld [vmem:[%s6906_s26 + $0x8] sm:$0xff] }
 0x18b   : > { %1630 = vmatpush.msra.mxu0 %v1607_v3  ;;  %v1595_v21 = vld [vmem:[%s6906_s26] sm:$0xff]  ;;  %v1670_v23 = vld [vmem:[%s6171_s19 + $0x10] sm:$0xff]  ;;  %v1669_v24 = vld [vmem:[%s6171_s19 + $0x8] sm:$0xff] }
 0x18c   : > { %1662 = vmatpush.msra.mxu1 %v1611_v9  ;;  %v1593_v22 = vld [vmem:[%s6908_s3] sm:$0xff]  ;;  %1698 = vmatpush.msra.mxu2 %v1670_v23  ;;  %v1676_v62 = vld [vmem:[%s6255_s7 + $0x18] sm:$0xff]  ;;  %v1675_v63 = vld [vmem:[%s6255_s7 + $0x10] sm:$0xff] }
 0x18d   : > { %1631 = vmatpush.msra.mxu0 %v1606_v6  ;;  %4636 = vmatmul.msk.f32.vlgmr.msra.gmra.mxu1 %vm1619_vm1, %v1594_v12  ;;  %v1668_v25 = vld [vmem:[%s6171_s19] sm:$0xff]  ;;  %v1674_v0 = vld [vmem:[%s6255_s7 + $0x8] sm:$0xff] }
 0x18e   : > { %1699 = vmatpush.msra.mxu2 %v1669_v24  ;;  %v4994_v26 = vld [vmem:[%s6909_s29] ss:$0 sm:$0xff]  ;;  %s6831_s29 = smov 16   ;;  %v4996_v5 = vld [vmem:[%s6075_s25] ss:$0 sm:$0xff] }
 0x18f   : > { %1632 = vmatpush.msra.mxu0 %v1605_v7  ;;  %v1673_v2 = vld [vmem:[%s6255_s7] sm:$0xff] }
 0x190   : > { %1700 = vmatpush.msra.mxu2 %v1668_v25 }
 0x191   : > { %1633 = vmatpush.msra.mxu0 %v1604_v11 }
 0x193   : > { %1634 = vmatpush.msra.mxu0 %v1603_v13 }
 0x195   : > { %1635 = vmatpush.msra.mxu0 %v1602_v14 }
 0x197   : > { %1636 = vmatpush.msra.mxu0 %v1601_v15 }
 0x199   : > { %1637 = vmatpush.msra.mxu0 %v1600_v16 }
 0x19b   : > { %1638 = vmatpush.msra.mxu0 %v1599_v17 }
 0x19d   : > { %1639 = vmatpush.msra.mxu0 %v1598_v18 }
 0x19f   : > { %1640 = vmatpush.msra.mxu0 %v1597_v19 }
 0x1a1   : > { %1641 = vmatpush.msra.mxu0 %v1596_v20 }
 0x1a3   : > { %1642 = vmatpush.msra.mxu0 %v1595_v21 }
 0x1a4   : > { %1643 = vmatmul.f32.vlgmr.msra.gmra.mxu0 %v1593_v22 }
 0x20a   : > { %v1664_v28 = vpop.f32.mrf.mxu1 }
 0x221   : > { %v1644_v27 = vpop.f32.mrf.mxu0 }
 0x222   : > { %v1645_v29 = vadd.f32 %v4994_v26, %v1644_v27 }
 0x224   : > { %v6231_v30 = vadd.f32 %v1664_v28, %v1645_v29 }
 0x226   : > { %4637 = vmatmul.msk.f32.vlgmr.msra.gmra.mxu2 %vm1681_vm2, %v6231_v30 }
 0x2a9   : > { %v1702_v32 = vpop.f32.mrf.mxu2 }
 0x2aa   : > { %v1703_v33 = vadd.f32 %v4995_v31, %v1702_v32 }
 0x2ac   : > { %1774 = vrot.lane.b32.xlu2 %v1703_v33, %s6839_s5  ;;  %1706 = vrot.lane.b32.xlu0 %v1703_v33, %s6835_s18  ;;  %s6912_s5 = sld [smem:[#allocation47_spill]]  ;;  %s6916_s18 = smov 48  }
 0x2b4   : > { %1772 = vrot.lane.b32.xlu2 %v1703_v33, %s6841_s16 }
 0x306   : > { %v1775_v46 = vpop.permute.xlu2 %1774 }
 0x30e   : > { %v1773_v49 = vpop.permute.xlu2 %1772 }
 0x31e   : > { %v1707_v34 = vpop.permute.xlu0 %1706 }
 0x31f   : > { %4638 = vmatpush.xpose.msk.msra.mxu3 %vm1708_vm3, %v1707_v34 }
 0x322   : > { %4639 = vmatmul.msk.f32.vlgmr.msra.gmra.mxu3 %vm1708_vm3, %v1703_v33 }
 0x3a5   : > { %v1730_v35 = vpop.f32.mrf.mxu3 }
 0x3a6   : > { %v1733_v36 = vmul.f32 0.25, %v1730_v35 }
 0x3a8   : > { %v1735_v37 = vsel %vm1734_vm4, %v1733_v36, -inf }
 0x3a9   : > { %1736 = vmax.xlane.f32.xlu0 %v1735_v37 }
 0x3bd   : > { %1812 = vrot.lane.b32.xlu0 %v1703_v33, %s6837_s8  ;;  %s6917_s8 = smov 96  }
 0x41c   : > { %v1737_v38 = vpop.xlane.xlu0 %1736 }
 0x41d   : > { %v1738_v39 = vsub.f32 %v1733_v36, %v1737_v38 }
 0x41f   : > { %v1739_v40 = vmul.f32 1.442695, %v1738_v39 }
 0x421   : > { %5013 = vpow2.f32 %v1739_v40 }
 0x427   : > { %v5014_v41 = vpop.eup %5013 }
 0x428   : > { %v1741_v42 = vsel %vm1734_vm4, %v5014_v41, 0.0 }
 0x429   : > { %1742 = vadd.xlane.f32.xlu1 %v1741_v42 }
 0x42f   : > { %v1813_v43 = vpop.permute.xlu0 %1812 }
 0x430   : > { %1833 = vmatpush.msrb.mxu2 %v1813_v43 }
 0x442   : > { %1746 = vrot.lane.b32.xlu1 %v1703_v33, %s6833_s1  ;;  %s6843_s1 = smul.u32 192, %s6933_s30 }
 0x444   : > { %s6286_s16 = scalar_lea.vmem %s6912_s5, %s6843_s1  ;;  %s4860_s5 = smul.u32 12, %s6933_s30 }
 0x445   : > { %v1942_v26 = vld [vmem:[%s6286_s16 + $0x38] sm:$0xff]  ;;  %v1941_v27 = vld [vmem:[%s6286_s16 + $0x30] sm:$0xff]  ;;  %v1940_v28 = vld [vmem:[%s6286_s16 + $0x28] sm:$0xff]  ;;  %s6919_s1 = smov 16  }
 0x446   : > { %1959 = vmatpush.msra.mxu2 %v1942_v26  ;;  %v1939_v31 = vld [vmem:[%s6286_s16 + $0x20] sm:$0xff]  ;;  %v1938_v33 = vld [vmem:[%s6286_s16 + $0x18] sm:$0xff]  ;;  %s6299_s21 = scalar_lea.vmem %s6913_s20, %s4860_s5  ;;  %s6915_s5 = smov 80  }
 0x447   : > { %v1667_v39 = vld [vmem:[%s6299_s21] sm:$0xf]  ;;  %s6918_s20 = smov 64  }
 0x448   : > { %1960 = vmatpush.msra.mxu2 %v1941_v27 }
 0x44a   : > { %1961 = vmatpush.msra.mxu2 %v1940_v28 }
 0x44c   : > { %1962 = vmatpush.msra.mxu2 %v1939_v31 }
 0x44e   : > { %1963 = vmatpush.msra.mxu2 %v1938_v33 }
 0x49c   : > { %v1743_v44 = vpop.xlane.xlu1 %1742 }
 0x49d   : > { %5015 = vrcp.f32 %v1743_v44  ;;  %v1901_v44 = vperm.slane %v1667_v39, 1 }
 0x4a3   : > { %v5016_v45 = vpop.eup %5015 }
 0x4a4   : > { %v1745_v48 = vmul.f32 %v5016_v45, %v5014_v41  ;;  %v1899_v41 = vperm.slane %v1667_v39, 0 }
 0x4b4   : > { %v1747_v47 = vpop.permute.xlu1 %1746 }
 0x4b5   : > { %1767 = vmatpush.msrb.mxu3 %v1747_v47  ;;  %v1937_v47 = vld [vmem:[%s6286_s16 + $0x10] sm:$0xff] }
 0x4b6   : > { %4640 = vmatmul.msk.f32.vlgmr.msrb.gmra.mxu3 %vm1734_vm4, %v1745_v48  ;;  %1964 = vmatpush.msra.mxu2 %v1937_v47  ;;  %v1936_v48 = vld [vmem:[%s6286_s16 + $0x8] sm:$0xff] }
 0x4b7   : > { %4641 = vmatpush.xpose.msk.msra.mxu3 %vm1708_vm3, %v1775_v46 }
 0x4b8   : > { %1965 = vmatpush.msra.mxu2 %v1936_v48 }
 0x4bb   : > { %1861 = vmatpush.msrb.mxu3 %v1676_v62 }
 0x4bd   : > { %1862 = vmatpush.msrb.mxu3 %v1675_v63 }
 0x4be   : > { %4642 = vmatmul.msk.f32.vlgmr.msra.gmra.mxu3 %vm1708_vm3, %v1773_v49  ;;  %v1935_v49 = vld [vmem:[%s6286_s16] sm:$0xff] }
 0x4bf   : > { %1863 = vmatpush.msrb.mxu3 %v1674_v0  ;;  %1966 = vmatpush.msra.mxu2 %v1935_v49  ;;  %v4651_v0 = vld [vmem:[%s6171_s19 + $0x38] sm:$0xff] }
 0x4c1   : > { %1864 = vmatpush.msrb.mxu3 %v1673_v2  ;;  %v4649_v2 = vld [vmem:[%s6171_s19 + $0x28] sm:$0xff] }
 0x4c3   : > { %2032 = vmatpush.msra.mxu3 %v4651_v0 }
 0x539   : > { %v1769_v50 = vpop.f32.mrf.mxu3 }
 0x541   : > { %v1797_v51 = vpop.f32.mrf.mxu3 }
 0x542   : > { %v1800_v52 = vmul.f32 0.25, %v1797_v51 }
 0x544   : > { %v1801_v53 = vsel %vm1734_vm4, %v1800_v52, -inf }
 0x545   : > { %1802 = vmax.xlane.f32.xlu2 %v1801_v53 }
 0x5b8   : > { %v1803_v54 = vpop.xlane.xlu2 %1802 }
 0x5b9   : > { %v1804_v55 = vsub.f32 %v1800_v52, %v1803_v54  ;;  %v4998_v54 = vld [vmem:[%s6086_s27] ss:$0 sm:$0xff] }
 0x5bb   : > { %v1805_v56 = vmul.f32 1.442695, %v1804_v55 }
 0x5bd   : > { %5017 = vpow2.f32 %v1805_v56 }
 0x5c3   : > { %v5018_v57 = vpop.eup %5017 }
 0x5c4   : > { %v1807_v58 = vsel %vm1734_vm4, %v5018_v57, 0.0 }
 0x5c5   : > { %1808 = vadd.xlane.f32.xlu1 %v1807_v58 }
 0x638   : > { %v1809_v59 = vpop.xlane.xlu1 %1808 }
 0x639   : > { %5019 = vrcp.f32 %v1809_v59 }
 0x63a   : > { %5021 = vrcp.f32 %v5564_v10 }
 0x63f   : > { %v5020_v60 = vpop.eup %5019 }
 0x640   : > { %v1811_v61 = vmul.f32 %v5020_v60, %v5018_v57  ;;  %v5022_v11 = vpop.eup %5021 }
 0x641   : > { %v1874_v12 = vmul.f32 32.0, %v5022_v11  ;;  %vm1878_vm5 = vweird.f32 %v5022_v11 }
 0x642   : > { %4643 = vmatmul.msk.f32.vlgmr.msrb.gmra.mxu2 %vm1734_vm4, %v1811_v61 }
 0x643   : > { %v1875_v13 = vsub.f32 1.0, %v1874_v12 }
 0x645   : > { %v1876_v14 = vmul.f32 %v5022_v11, %v1875_v13  ;;  %v1994_v13 = vperm.slane %v1667_v39, 2 }
 0x647   : > { %v1877_v15 = vadd.f32 %v5022_v11, %v1876_v14 }
 0x649   : > { %v6267_v16 = vsel %vm1878_vm5, %v5022_v11, %v1877_v15 }
 0x6c5   : > { %v1835_v1 = vpop.f32.mrf.mxu2 }
 0x6c6   : > { %1839 = vrot.lane.b32.xlu2 %v1835_v1, %s6831_s29  ;;  %s6275_s29 = scalar_lea.vmem %s6911_s17, %s6156_s9  ;;  %v4650_v1 = vld [vmem:[%s6171_s19 + $0x30] sm:$0xff]  ;;  %s6914_s17 = smov 112  }
 0x6c7   : > { %v1906_v22 = vld [vmem:[%s6275_s29 + $0x18] sm:$0xff]  ;;  %v1905_v23 = vld [vmem:[%s6275_s29 + $0x10] sm:$0xff]  ;;  %v1904_v24 = vld [vmem:[%s6275_s29 + $0x8] sm:$0xff]  ;;  %2033 = vmatpush.msra.mxu3 %v4650_v1 }
 0x6c8   : > { %1926 = vmatpush.msrb.mxu1 %v1906_v22  ;;  %v1903_v25 = vld [vmem:[%s6275_s29] sm:$0xff] }
 0x6c9   : > { %2034 = vmatpush.msra.mxu3 %v4649_v2 }
 0x6ca   : > { %1927 = vmatpush.msrb.mxu1 %v1905_v23 }
 0x6cc   : > { %1928 = vmatpush.msrb.mxu1 %v1904_v24 }
 0x6ce   : > { %1929 = vmatpush.msrb.mxu1 %v1903_v25 }
 0x720   : > { %v1840_v3 = vpop.permute.xlu2 %1839 }
 0x721   : > { %v1842_v4 = vsel %vm1708_vm3, %v1769_v50, %v1840_v3  ;;  %v4997_v50 = vld [vmem:[%s6082_s10] ss:$0 sm:$0xff]  ;;  %v4648_v3 = vld [vmem:[%s6171_s19 + $0x20] sm:$0xff] }
 0x722   : > { %4644 = vmatmul.msk.f32.vlgmr.msrb.gmra.mxu3 %vm1681_vm2, %v1842_v4 }
 0x723   : > { %2035 = vmatpush.msra.mxu3 %v4648_v3 }
 0x7a5   : > { %v1866_v6 = vpop.f32.mrf.mxu3 }
 0x7a6   : > { %v1867_v7 = vadd.f32 %v4996_v5, %v1866_v6 }
 0x7a8   : > { %v1869_v8 = vadd.f32 %v1867_v7, %v6231_v30 }
 0x7aa   : > { %v1870_v9 = vsel %vm1681_vm2, %v1869_v8, 0.0 }
 0x7ab   : > { %1871 = vadd.xlane.f32.xlu0 %v1870_v9 }
 0x81e   : > { %v1872_v17 = vpop.xlane.xlu0 %1871 }
 0x81f   : > { %v1880_v18 = vmul.f32 %v6267_v16, %v1872_v17  ;;  %v1996_v17 = vperm.slane %v1667_v39, 3 }
 0x821   : > { %v1881_v19 = vsub.f32 %v1869_v8, %v1880_v18 }
 0x823   : > { %v1882_v20 = vmul.f32 %v1881_v19, %v1881_v19 }
 0x825   : > { %v1883_v21 = vsel %vm1681_vm2, %v1882_v20, 0.0  ;;  %v4999_v20 = vld [vmem:[%s6064_s24 + $0x1] ss:$0 sm:$0xff] }
 0x826   : > { %1884 = vadd.xlane.f32.xlu1 %v1883_v21 }
 0x899   : > { %v1885_v29 = vpop.xlane.xlu1 %1884 }
 0x89a   : > { %v1886_v30 = vmul.f32 %v1885_v29, %v6267_v16 }
 0x89c   : > { %v1887_v32 = vadd.f32 1e-05, %v1886_v30 }
 0x89e   : > { %5023 = vrsqrt.f32 %v1887_v32  ;;  %vm1894_vm7 = vweird.f32 %v1887_v32 }
 0x8a4   : > { %v5024_v34 = vpop.eup %5023 }
 0x8a5   : > { %v1889_v35 = vmul.f32 %v5024_v34, %v1887_v32  ;;  %vm1895_vm6 = vweird.f32 %v5024_v34 }
 0x8a6   : > { %vm1896_vm8 = vmor %vm1894_vm7, %vm1895_vm6 }
 0x8a7   : > { %v1890_v36 = vmul.f32 %v5024_v34, %v1889_v35 }
 0x8a9   : > { %v1891_v37 = vmul.f32 0.5, %v1890_v36 }
 0x8ab   : > { %v1892_v38 = vsub.f32 1.5, %v1891_v37 }
 0x8ad   : > { %v1893_v40 = vmul.f32 %v5024_v34, %v1892_v38 }
 0x8af   : > { %v1897_v42 = vsel %vm1896_vm8, %v5024_v34, %v1893_v40 }
 0x8b0   : > { %v1898_v43 = vmul.f32 %v1897_v42, %v1881_v19 }
 0x8b2   : > { %v1900_v45 = vmul.f32 %v1899_v41, %v1898_v43 }
 0x8b4   : > { %v1902_v46 = vadd.f32 %v1901_v44, %v1900_v45 }
 0x8b6   : > { %4645 = vmatmul.msk.f32.vlgmr.msrb.gmra.mxu1 %vm1681_vm2, %v1902_v46 }
 0x933   : > { %v1931_v51 = vpop.f32.mrf.mxu1 }
 0x934   : > { %v1932_v52 = vadd.f32 %v4997_v50, %v1931_v51  ;;  %v4656_v50 = vld [vmem:[%s6255_s7 + $0x38] sm:$0xff]  ;;  %v4655_v51 = vld [vmem:[%s6255_s7 + $0x30] sm:$0xff] }
 0x935   : > { %2194 = vmatpush.msrb.mxu2 %v4656_v50  ;;  %v4683_v50 = vld [vmem:[%s6171_s19 + $0x40] sm:$0xff] }
 0x936   : > { %v1934_v53 = vmax.f32 %v1932_v52, 0.0  ;;  %v4654_v52 = vld [vmem:[%s6255_s7 + $0x28] sm:$0xff] }
 0x937   : > { %2195 = vmatpush.msrb.mxu2 %v4655_v51 }
 0x938   : > { %4646 = vmatmul.msk.f32.vlgmr.msra.gmra.mxu2 %vm1947_vm9, %v1934_v53 }
 0x939   : > { %2196 = vmatpush.msrb.mxu2 %v4654_v52 }
 0x9bb   : > { %v1968_v55 = vpop.f32.mrf.mxu2 }
 0x9bc   : > { %v1969_v56 = vadd.f32 %v4998_v54, %v1968_v55  ;;  %v4653_v54 = vld [vmem:[%s6255_s7 + $0x20] sm:$0xff] }
 0x9bd   : > { %2197 = vmatpush.msrb.mxu2 %v4653_v54 }
 0x9be   : > { %v1971_v57 = vadd.f32 %v1969_v56, %v1902_v46 }
 0x9c0   : > { %v1972_v58 = vsel %vm1681_vm2, %v1971_v57, 0.0 }
 0x9c1   : > { %1973 = vadd.xlane.f32.xlu2 %v1972_v58  ;;  %v5000_v58 = vld [vmem:[%s6075_s25 + $0x1] ss:$0 sm:$0xff] }
 0xa34   : > { %v1974_v59 = vpop.xlane.xlu2 %1973 }
 0xa35   : > { %v1975_v60 = vmul.f32 %v1974_v59, %v6267_v16 }
 0xa37   : > { %v1976_v61 = vsub.f32 %v1971_v57, %v1975_v60 }
 0xa39   : > { %v1977_v62 = vmul.f32 %v1976_v61, %v1976_v61 }
 0xa3b   : > { %v1978_v63 = vsel %vm1681_vm2, %v1977_v62, 0.0 }
 0xa3c   : > { %1979 = vadd.xlane.f32.xlu1 %v1978_v63 }
 0xaaf   : > { %v1980_v4 = vpop.xlane.xlu1 %1979 }
 0xab0   : > { %v1981_v5 = vmul.f32 %v1980_v4, %v6267_v16  ;;  %v4669_v4 = vld [vmem:[%s6275_s29 + $0x38] sm:$0xff] }
 0xab2   : > { %v1982_v6 = vadd.f32 1e-05, %v1981_v5  ;;  %v4668_v5 = vld [vmem:[%s6275_s29 + $0x30] sm:$0xff] }
 0xab4   : > { %5025 = vrsqrt.f32 %v1982_v6  ;;  %vm1989_vm11 = vweird.f32 %v1982_v6 }
 0xaba   : > { %v5026_v7 = vpop.eup %5025 }
 0xabb   : > { %v1984_v8 = vmul.f32 %v5026_v7, %v1982_v6  ;;  %vm1990_vm10 = vweird.f32 %v5026_v7  ;;  %v4667_v6 = vld [vmem:[%s6275_s29 + $0x28] sm:$0xff] }
 0xabc   : > { %vm1991_vm12 = vmor %vm1989_vm11, %vm1990_vm10  ;;  %vm2762_vm10 = vcmask 253952  }
 0xabd   : > { %v1985_v9 = vmul.f32 %v5026_v7, %v1984_v8  ;;  %v4679_v8 = vld [vmem:[%s6286_s16 + $0x78] sm:$0xff] }
 0xabf   : > { %v1986_v10 = vmul.f32 0.5, %v1985_v9  ;;  %v4678_v9 = vld [vmem:[%s6286_s16 + $0x70] sm:$0xff] }
 0xac1   : > { %v1987_v11 = vsub.f32 1.5, %v1986_v10  ;;  %v4677_v10 = vld [vmem:[%s6286_s16 + $0x68] sm:$0xff] }
 0xac3   : > { %v1988_v12 = vmul.f32 %v5026_v7, %v1987_v11 }
 0xac5   : > { %v1992_v14 = vsel %vm1991_vm12, %v5026_v7, %v1988_v12  ;;  %v4666_v7 = vld [vmem:[%s6275_s29 + $0x20] sm:$0xff] }
 0xac6   : > { %v1993_v15 = vmul.f32 %v1992_v14, %v1976_v61 }
 0xac8   : > { %v1995_v18 = vmul.f32 %v1994_v13, %v1993_v15  ;;  %v4676_v13 = vld [vmem:[%s6286_s16 + $0x60] sm:$0xff]  ;;  %v4675_v15 = vld [vmem:[%s6286_s16 + $0x58] sm:$0xff] }
 0xaca   : > { %v6317_v19 = vadd.f32 %v1996_v17, %v1995_v18 }
 0xacc   : > { %4658 = vmatmul.msk.f32.vlgmr.msra.gmra.mxu3 %vm1681_vm2, %v6317_v19 }
 0xb4f   : > { %v2037_v21 = vpop.f32.mrf.mxu3 }
 0xb50   : > { %v2038_v22 = vadd.f32 %v4999_v20, %v2037_v21  ;;  %v6360_v21 = vld [vmem:[%s6299_s21 + $0x4] sm:$0xf] }
 0xb52   : > { %2105 = vrot.lane.b32.xlu0 %v2038_v22, %s6914_s17  ;;  %2107 = vrot.lane.b32.xlu1 %v2038_v22, %s6915_s5 }
 0xb5a   : > { %2145 = vrot.lane.b32.xlu0 %v2038_v22, %s6916_s18  ;;  %2041 = vrot.lane.b32.xlu1 %v2038_v22, %s6917_s8 }
 0xb62   : > { %2079 = vrot.lane.b32.xlu0 %v2038_v22, %s6918_s20 }
 0xbc4   : > { %v2106_v23 = vpop.permute.xlu0 %2105  ;;  %v2108_v24 = vpop.permute.xlu1 %2107 }
 0xbc5   : > { %4662 = vmatpush.xpose.msk.msrb.mxu0 %vm1708_vm3, %v2108_v24  ;;  %v2225_v24 = vperm.slane %v6360_v21, 0 }
 0xbc8   : > { %4663 = vmatmul.msk.f32.vlgmr.msrb.gmra.mxu0 %vm1708_vm3, %v2106_v23 }
 0xbc9   : > { %2288 = vmatpush.msra.mxu0 %v4679_v8 }
 0xbcb   : > { %2289 = vmatpush.msra.mxu0 %v4678_v9 }
 0xbcc   : > { %v2146_v25 = vpop.permute.xlu0 %2145  ;;  %v2042_v26 = vpop.permute.xlu1 %2041 }
 0xbcd   : > { %4659 = vmatpush.xpose.msk.msra.mxu1 %vm1708_vm3, %v2042_v26  ;;  %2290 = vmatpush.msra.mxu0 %v4677_v10 }
 0xbcf   : > { %2291 = vmatpush.msra.mxu0 %v4676_v13 }
 0xbd0   : > { %4660 = vmatmul.msk.f32.vlgmr.msra.gmra.mxu1 %vm1708_vm3, %v2038_v22 }
 0xbd1   : > { %2166 = vmatpush.msrb.mxu1 %v2146_v25  ;;  %2292 = vmatpush.msra.mxu0 %v4675_v15 }
 0xbd4   : > { %v2080_v27 = vpop.permute.xlu0 %2079 }
 0xbd5   : > { %2100 = vmatpush.msrb.mxu3 %v2080_v27  ;;  %v2227_v27 = vperm.slane %v6360_v21, 1 }
 0xbd7   : > { %2254 = vmatpush.msra.mxu3 %v4669_v4 }
 0xbd9   : > { %2255 = vmatpush.msra.mxu3 %v4668_v5 }
 0xbdb   : > { %2256 = vmatpush.msra.mxu3 %v4667_v6 }
 0xbdd   : > { %2257 = vmatpush.msra.mxu3 %v4666_v7 }
 0xc45   : > { %v2130_v28 = vpop.f32.mrf.mxu0 }
 0xc46   : > { %v2133_v29 = vmul.f32 0.25, %v2130_v28 }
 0xc48   : > { %v2134_v30 = vsel %vm1734_vm4, %v2133_v29, -inf }
 0xc49   : > { %2135 = vmax.xlane.f32.xlu2 %v2134_v30  ;;  %v4674_v30 = vld [vmem:[%s6286_s16 + $0x50] sm:$0xff] }
 0xc4a   : > { %2293 = vmatpush.msra.mxu0 %v4674_v30 }
 0xc4d   : > { %v2064_v31 = vpop.f32.mrf.mxu1 }
 0xc4e   : > { %v2067_v32 = vmul.f32 0.25, %v2064_v31  ;;  %v4673_v31 = vld [vmem:[%s6286_s16 + $0x48] sm:$0xff] }
 0xc4f   : > { %2294 = vmatpush.msra.mxu0 %v4673_v31 }
 0xc50   : > { %v2068_v33 = vsel %vm1734_vm4, %v2067_v32, -inf }
 0xc51   : > { %2069 = vmax.xlane.f32.xlu1 %v2068_v33  ;;  %v5001_v33 = vld [vmem:[%s6082_s10 + $0x1] ss:$0 sm:$0xff] }
 0xcbc   : > { %v2136_v34 = vpop.xlane.xlu2 %2135 }
 0xcbd   : > { %v2137_v35 = vsub.f32 %v2133_v29, %v2136_v34 }
 0xcbf   : > { %v2138_v36 = vmul.f32 1.442695, %v2137_v35 }
 0xcc1   : > { %5027 = vpow2.f32 %v2138_v36 }
 0xcc4   : > { %v2070_v37 = vpop.xlane.xlu1 %2069 }
 0xcc5   : > { %v2071_v38 = vsub.f32 %v2067_v32, %v2070_v37  ;;  %v4672_v32 = vld [vmem:[%s6286_s16 + $0x40] sm:$0xff]  ;;  %v5002_v37 = vld [vmem:[%s6086_s27 + $0x1] ss:$0 sm:$0xff] }
 0xcc6   : > { %2295 = vmatpush.msra.mxu0 %v4672_v32 }
 0xcc7   : > { %v5028_v39 = vpop.eup %5027  ;;  %v2072_v40 = vmul.f32 1.442695, %v2071_v38 }
 0xcc8   : > { %v2140_v41 = vsel %vm1734_vm4, %v5028_v39, 0.0 }
 0xcc9   : > { %5029 = vpow2.f32 %v2072_v40  ;;  %2141 = vadd.xlane.f32.xlu2 %v2140_v41 }
 0xccf   : > { %v5030_v42 = vpop.eup %5029 }
 0xcd0   : > { %v2074_v43 = vsel %vm1734_vm4, %v5030_v42, 0.0 }
 0xcd1   : > { %2075 = vadd.xlane.f32.xlu2 %v2074_v43 }
 0xd3c   : > { %v2142_v44 = vpop.xlane.xlu2 %2141 }
 0xd3d   : > { %5031 = vrcp.f32 %v2142_v44 }
 0xd43   : > { %v5032_v45 = vpop.eup %5031 }
 0xd44   : > { %v2144_v46 = vmul.f32 %v5032_v45, %v5028_v39  ;;  %v2076_v47 = vpop.xlane.xlu2 %2075 }
 0xd45   : > { %5033 = vrcp.f32 %v2076_v47  ;;  %v4686_v47 = vld [vmem:[%s6171_s19 + $0x58] sm:$0xff] }
 0xd46   : > { %4664 = vmatmul.msk.f32.vlgmr.msrb.gmra.mxu1 %vm1734_vm4, %v2144_v46 }
 0xd47   : > { %2361 = vmatpush.msra.mxu1 %v4686_v47 }
 0xd4b   : > { %v5034_v48 = vpop.eup %5033 }
 0xd4c   : > { %v2078_v49 = vmul.f32 %v5034_v48, %v5030_v42  ;;  %v4685_v48 = vld [vmem:[%s6171_s19 + $0x50] sm:$0xff] }
 0xd4d   : > { %2362 = vmatpush.msra.mxu1 %v4685_v48 }
 0xd4e   : > { %4661 = vmatmul.msk.f32.vlgmr.msrb.gmra.mxu3 %vm1734_vm4, %v2078_v49  ;;  %v4684_v49 = vld [vmem:[%s6171_s19 + $0x48] sm:$0xff] }
 0xd4f   : > { %2363 = vmatpush.msra.mxu1 %v4684_v49 }
 0xd51   : > { %2364 = vmatpush.msra.mxu1 %v4683_v50 }
 0xdc3   : > { %v2168_v53 = vpop.f32.mrf.mxu1 }
 0xdc4   : > { %2172 = vrot.lane.b32.xlu2 %v2168_v53, %s6919_s1 }
 0xdd1   : > { %v2102_v55 = vpop.f32.mrf.mxu3 }
 0xe1e   : > { %v2173_v56 = vpop.permute.xlu2 %2172 }
 0xe1f   : > { %v2175_v57 = vsel %vm1708_vm3, %v2102_v55, %v2173_v56 }
 0xe20   : > { %4665 = vmatmul.msk.f32.vlgmr.msrb.gmra.mxu2 %vm1681_vm2, %v2175_v57 }
 0xea3   : > { %v2199_v59 = vpop.f32.mrf.mxu2 }
 0xea4   : > { %v2200_v60 = vadd.f32 %v5000_v58, %v2199_v59 }
 0xea6   : > { %v2202_v61 = vadd.f32 %v2200_v60, %v6317_v19  ;;  %v2323_v60 = vperm.slane %v6360_v21, 2 }
 0xea8   : > { %v2203_v62 = vsel %vm1681_vm2, %v2202_v61, 0.0 }
 0xea9   : > { %2204 = vadd.xlane.f32.xlu0 %v2203_v62 }
 0xf1c   : > { %v2205_v63 = vpop.xlane.xlu0 %2204 }
 0xf1d   : > { %v2206_v0 = vmul.f32 %v2205_v63, %v6267_v16  ;;  %v2325_v63 = vperm.slane %v6360_v21, 3 }
 0xf1f   : > { %v2207_v1 = vsub.f32 %v2202_v61, %v2206_v0 }
 0xf21   : > { %v2208_v2 = vmul.f32 %v2207_v1, %v2207_v1 }
 0xf23   : > { %v2209_v3 = vsel %vm1681_vm2, %v2208_v2, 0.0  ;;  %v5003_v2 = vld [vmem:[%s6064_s24 + $0x2] ss:$0 sm:$0xff] }
 0xf24   : > { %2210 = vadd.xlane.f32.xlu1 %v2209_v3 }
 0xf97   : > { %v2211_v11 = vpop.xlane.xlu1 %2210 }
 0xf98   : > { %v2212_v12 = vmul.f32 %v2211_v11, %v6267_v16 }
 0xf9a   : > { %v2213_v14 = vadd.f32 1e-05, %v2212_v12 }
 0xf9c   : > { %5035 = vrsqrt.f32 %v2213_v14  ;;  %vm2220_vm14 = vweird.f32 %v2213_v14 }
 0xfa2   : > { %v5036_v17 = vpop.eup %5035 }
 0xfa3   : > { %v2215_v18 = vmul.f32 %v5036_v17, %v2213_v14  ;;  %vm2221_vm13 = vweird.f32 %v5036_v17 }
 0xfa4   : > { %vm2222_vm15 = vmor %vm2220_vm14, %vm2221_vm13 }
 0xfa5   : > { %v2216_v19 = vmul.f32 %v5036_v17, %v2215_v18 }
 0xfa7   : > { %v2217_v20 = vmul.f32 0.5, %v2216_v19 }
 0xfa9   : > { %v2218_v22 = vsub.f32 1.5, %v2217_v20 }
 0xfab   : > { %v2219_v23 = vmul.f32 %v5036_v17, %v2218_v22 }
 0xfad   : > { %v2223_v25 = vsel %vm2222_vm15, %v5036_v17, %v2219_v23 }
 0xfae   : > { %v2224_v26 = vmul.f32 %v2223_v25, %v2207_v1 }
 0xfb0   : > { %v2226_v28 = vmul.f32 %v2225_v24, %v2224_v26 }
 0xfb2   : > { %v2228_v29 = vadd.f32 %v2227_v27, %v2226_v28 }
 0xfb4   : > { %4671 = vmatmul.msk.f32.vlgmr.msra.gmra.mxu3 %vm1681_vm2, %v2228_v29 }
0x1037   : > { %v2259_v34 = vpop.f32.mrf.mxu3 }
0x1038   : > { %v2260_v35 = vadd.f32 %v5001_v33, %v2259_v34  ;;  %v4691_v33 = vld [vmem:[%s6255_s7 + $0x58] sm:$0xff]  ;;  %v4690_v34 = vld [vmem:[%s6255_s7 + $0x50] sm:$0xff] }
0x103a   : > { %v2262_v36 = vmax.f32 %v2260_v35, 0.0  ;;  %v4689_v35 = vld [vmem:[%s6255_s7 + $0x48] sm:$0xff] }
0x103c   : > { %4681 = vmatmul.msk.f32.vlgmr.msra.gmra.mxu0 %vm1947_vm9, %v2262_v36 }
0x10b9   : > { %v2297_v38 = vpop.f32.mrf.mxu0 }
0x10ba   : > { %v2298_v39 = vadd.f32 %v5002_v37, %v2297_v38  ;;  %v4688_v37 = vld [vmem:[%s6255_s7 + $0x40] sm:$0xff] }
0x10bc   : > { %v2300_v40 = vadd.f32 %v2298_v39, %v2228_v29 }
0x10be   : > { %v2301_v41 = vsel %vm1681_vm2, %v2300_v40, 0.0 }
0x10bf   : > { %2302 = vadd.xlane.f32.xlu2 %v2301_v41  ;;  %v5004_v41 = vld [vmem:[%s6075_s25 + $0x2] ss:$0 sm:$0xff]  ;;  %s6920_s25 = sld [smem:[#allocation50_spill]] }
0x10c5   : > { %s6421_s7 = scalar_lea.vmem %s6920_s25, %s6156_s9  ;;  %s6923_s25 = smul.u32 192, %s6933_s30 }
0x1132   : > { %v2303_v42 = vpop.xlane.xlu2 %2302 }
0x1133   : > { %v2304_v43 = vmul.f32 %v2303_v42, %v6267_v16 }
0x1135   : > { %v2305_v44 = vsub.f32 %v2300_v40, %v2304_v43 }
0x1137   : > { %v2306_v45 = vmul.f32 %v2305_v44, %v2305_v44 }
0x1139   : > { %v2307_v46 = vsel %vm1681_vm2, %v2306_v45, 0.0 }
0x113a   : > { %2308 = vadd.xlane.f32.xlu1 %v2307_v46 }
0x11ad   : > { %v2309_v51 = vpop.xlane.xlu1 %2308 }
0x11ae   : > { %v2310_v52 = vmul.f32 %v2309_v51, %v6267_v16  ;;  %v4704_v51 = vld [vmem:[%s6275_s29 + $0x58] sm:$0xff] }
0x11af   : > { %2583 = vmatpush.msrb.mxu0 %v4704_v51 }
0x11b0   : > { %v2311_v53 = vadd.f32 1e-05, %v2310_v52  ;;  %v4703_v52 = vld [vmem:[%s6275_s29 + $0x50] sm:$0xff] }
0x11b1   : > { %2584 = vmatpush.msrb.mxu0 %v4703_v52 }
0x11b2   : > { %5037 = vrsqrt.f32 %v2311_v53  ;;  %vm2318_vm1 = vweird.f32 %v2311_v53 }
0x11b8   : > { %v5038_v54 = vpop.eup %5037 }
0x11b9   : > { %v2313_v55 = vmul.f32 %v5038_v54, %v2311_v53  ;;  %vm2319_vm0 = vweird.f32 %v5038_v54  ;;  %v4702_v53 = vld [vmem:[%s6275_s29 + $0x48] sm:$0xff] }
0x11ba   : > { %vm2320_vm5 = vmor %vm2318_vm1, %vm2319_vm0  ;;  %2585 = vmatpush.msrb.mxu0 %v4702_v53 }
0x11bb   : > { %v2314_v56 = vmul.f32 %v5038_v54, %v2313_v55  ;;  %v2686_v55 = vld [vmem:[%s6421_s7 + $0x10] sm:$0xff] }
0x11bd   : > { %v2315_v57 = vmul.f32 0.5, %v2314_v56  ;;  %v2687_v56 = vld [vmem:[%s6421_s7 + $0x18] sm:$0xff] }
0x11bf   : > { %v2316_v58 = vsub.f32 1.5, %v2315_v57  ;;  %v4934_v57 = vpack.i.bf16 %v2686_v55, %v2687_v56 }
0x11c1   : > { %v2317_v59 = vmul.f32 %v5038_v54, %v2316_v58  ;;  %v4714_v58 = vld [vmem:[%s6286_s16 + $0xb8] sm:$0xff] }
0x11c3   : > { %v2321_v61 = vsel %vm2320_vm5, %v5038_v54, %v2317_v59  ;;  %v4701_v54 = vld [vmem:[%s6275_s29 + $0x40] sm:$0xff]  ;;  %v4713_v59 = vld [vmem:[%s6286_s16 + $0xb0] sm:$0xff] }
0x11c4   : > { %v2322_v62 = vmul.f32 %v2321_v61, %v2305_v44  ;;  %2586 = vmatpush.msrb.mxu0 %v4701_v54 }
0x11c6   : > { %v2324_v0 = vmul.f32 %v2323_v60, %v2322_v62  ;;  %v2684_v62 = vld [vmem:[%s6421_s7] sm:$0xff] }
0x11c8   : > { %v6381_v1 = vadd.f32 %v2325_v63, %v2324_v0  ;;  %v2685_v63 = vld [vmem:[%s6421_s7 + $0x8] sm:$0xff] }
0x11ca   : > { %4693 = vmatmul.msk.f32.vlgmr.msra.gmra.mxu1 %vm1681_vm2, %v6381_v1 }
0x1247   : > { %v2366_v3 = vpop.f32.mrf.mxu1 }
0x1248   : > { %v2367_v4 = vadd.f32 %v5003_v2, %v2366_v3 }
0x124a   : > { %2434 = vrot.lane.b32.xlu0 %v2367_v4, %s6914_s17  ;;  %2436 = vrot.lane.b32.xlu1 %v2367_v4, %s6915_s5 }
0x1252   : > { %2370 = vrot.lane.b32.xlu1 %v2367_v4, %s6917_s8 }
0x12bc   : > { %v2437_v5 = vpop.permute.xlu1 %2436  ;;  %v2435_v6 = vpop.permute.xlu0 %2434 }
0x12bd   : > { %4697 = vmatpush.xpose.msk.msrb.mxu1 %vm1708_vm3, %v2437_v5 }
0x12c0   : > { %4698 = vmatmul.msk.f32.vlgmr.msrb.gmra.mxu1 %vm1708_vm3, %v2435_v6  ;;  %v6433_v6 = vld [vmem:[%s6299_s21 + $0x8] sm:$0xf] }
0x12c1   : > { %2617 = vmatpush.msra.mxu1 %v4714_v58 }
0x12c3   : > { %2618 = vmatpush.msra.mxu1 %v4713_v59 }
0x12c4   : > { %v2371_v7 = vpop.permute.xlu1 %2370 }
0x12c5   : > { %4694 = vmatpush.xpose.msk.msra.mxu2 %vm1708_vm3, %v2371_v7 }
0x12c8   : > { %4695 = vmatmul.msk.f32.vlgmr.msra.gmra.mxu2 %vm1708_vm3, %v2367_v4 }
0x133d   : > { %v2459_v8 = vpop.f32.mrf.mxu1 }
0x133e   : > { %v2462_v9 = vmul.f32 0.25, %v2459_v8 }
0x1340   : > { %v2463_v10 = vsel %vm1734_vm4, %v2462_v9, -inf }
0x1341   : > { %2464 = vmax.xlane.f32.xlu0 %v2463_v10 }
0x134b   : > { %v2393_v11 = vpop.f32.mrf.mxu2 }
0x134c   : > { %v2396_v12 = vmul.f32 0.25, %v2393_v11 }
0x134e   : > { %v2397_v13 = vsel %vm1734_vm4, %v2396_v12, -inf }
0x134f   : > { %2398 = vmax.xlane.f32.xlu2 %v2397_v13 }
0x1355   : > { %2408 = vrot.lane.b32.xlu0 %v2367_v4, %s6918_s20 }
0x1367   : > { %2474 = vrot.lane.b32.xlu2 %v2367_v4, %s6916_s18  ;;  %s6921_s18 = sld [smem:[#allocation52_spill]] }
0x136d   : > { %s6453_s19 = scalar_lea.vmem %s6921_s18, %s6156_s9  ;;  %s6924_s18 = sld [smem:[#allocation60_spill]] }
0x13b4   : > { %v2465_v14 = vpop.xlane.xlu0 %2464 }
0x13b5   : > { %v2466_v15 = vsub.f32 %v2462_v9, %v2465_v14  ;;  %v2554_v9 = vperm.slane %v6433_v6, 0 }
0x13b7   : > { %v2467_v17 = vmul.f32 1.442695, %v2466_v15  ;;  %v4712_v15 = vld [vmem:[%s6286_s16 + $0xa8] sm:$0xff] }
0x13b8   : > { %2619 = vmatpush.msra.mxu1 %v4712_v15  ;;  %v2792_v15 = vld [vmem:[%s6104_s28 + $0x10] sm:$0xff] }
0x13b9   : > { %5039 = vpow2.f32 %v2467_v17  ;;  %v4711_v17 = vld [vmem:[%s6286_s16 + $0xa0] sm:$0xff] }
0x13ba   : > { %2620 = vmatpush.msra.mxu1 %v4711_v17 }
0x13bf   : > { %v5040_v18 = vpop.eup %5039 }
0x13c0   : > { %v2469_v19 = vsel %vm1734_vm4, %v5040_v18, 0.0 }
0x13c1   : > { %2470 = vadd.xlane.f32.xlu1 %v2469_v19  ;;  %v4709_v19 = vld [vmem:[%s6286_s16 + $0x90] sm:$0xff] }
0x13c2   : > { %v2399_v20 = vpop.xlane.xlu2 %2398 }
0x13c3   : > { %v2400_v21 = vsub.f32 %v2396_v12, %v2399_v20  ;;  %v2556_v12 = vperm.slane %v6433_v6, 1 }
0x13c5   : > { %v2401_v22 = vmul.f32 1.442695, %v2400_v21 }
0x13c7   : > { %5041 = vpow2.f32 %v2401_v22  ;;  %v2409_v23 = vpop.permute.xlu0 %2408 }
0x13c8   : > { %2429 = vmatpush.msrb.mxu3 %v2409_v23 }
0x13ca   : > { %v2475_v24 = vpop.permute.xlu2 %2474  ;;  %2523 = vmatpush.msra.mxu3 %v4691_v33 }
0x13cb   : > { %2495 = vmatpush.msrb.mxu2 %v2475_v24 }
0x13cc   : > { %2524 = vmatpush.msra.mxu3 %v4690_v34  ;;  %v2692_v34 = vld [vmem:[%s6453_s19 + $0x18] sm:$0xff] }
0x13cd   : > { %v5042_v25 = vpop.eup %5041 }
0x13ce   : > { %v2403_v26 = vsel %vm1734_vm4, %v5042_v25, 0.0  ;;  %2525 = vmatpush.msra.mxu3 %v4689_v35  ;;  %v2691_v35 = vld [vmem:[%s6453_s19 + $0x10] sm:$0xff] }
0x13cf   : > { %2404 = vadd.xlane.f32.xlu2 %v2403_v26  ;;  %v4708_v26 = vld [vmem:[%s6286_s16 + $0x88] sm:$0xff] }
0x13d0   : > { %2526 = vmatpush.msra.mxu3 %v4688_v37 }
0x13e7   : > { %4935 = vrot.lane.b32.xlu2 %v4934_v57, %s6918_s20 }
0x1434   : > { %v2471_v27 = vpop.xlane.xlu1 %2470 }
0x1435   : > { %5043 = vrcp.f32 %v2471_v27  ;;  %v4707_v27 = vld [vmem:[%s6286_s16 + $0x80] sm:$0xff] }
0x143b   : > { %v5044_v28 = vpop.eup %5043 }
0x143c   : > { %v2473_v29 = vmul.f32 %v5044_v28, %v5040_v18  ;;  %v4710_v18 = vld [vmem:[%s6286_s16 + $0x98] sm:$0xff]  ;;  %s6922_s16 = sld [smem:[#allocation62_spill]] }
0x143d   : > { %2621 = vmatpush.msra.mxu1 %v4710_v18  ;;  %v5006_v28 = vld [vmem:[%s6093_s15] ss:$0 sm:$0xff]  ;;  %v2791_v18 = vld [vmem:[%s6104_s28 + $0x8] sm:$0xff] }
0x143e   : > { %4699 = vmatmul.msk.f32.vlgmr.msrb.gmra.mxu2 %vm1734_vm4, %v2473_v29  ;;  %v5565_v29 = vmov 1.0  }
0x143f   : > { %2622 = vmatpush.msra.mxu1 %v4709_v19  ;;  %v2790_v19 = vld [vmem:[%s6104_s28] sm:$0xff] }
0x1441   : > { %2623 = vmatpush.msra.mxu1 %v4708_v26 }
0x1442   : > { %v2405_v30 = vpop.xlane.xlu2 %2404 }
0x1443   : > { %5045 = vrcp.f32 %v2405_v30  ;;  %2624 = vmatpush.msra.mxu1 %v4707_v27  ;;  %v5005_v30 = vld [vmem:[%s6082_s10 + $0x2] ss:$0 sm:$0xff]  ;;  %s4861_s10 = smul.u32 24, %s6933_s30 }
0x1445   : > { %s6484_s24 = scalar_lea.vmem %s6922_s16, %s4861_s10  ;;  %s6539_s10 = scalar_lea.vmem %s6924_s18, %s6923_s25 }
0x1449   : > { %v5046_v31 = vpop.eup %5045 }
0x144a   : > { %v2407_v32 = vmul.f32 %v5046_v31, %v5042_v25  ;;  %v4936_v20 = vpop.permute.xlu2 %4935 }
0x144b   : > { %v4938_v21 = vunpack.i.h.bf16 %v4936_v20  ;;  %v4937_v22 = vunpack.i.l.bf16 %v4936_v20  ;;  %v4949_v20 = vpack.i.bf16 %v2790_v19, %v2791_v18 }
0x144c   : > { %4696 = vmatmul.msk.f32.vlgmr.msrb.gmra.mxu3 %vm1734_vm4, %v2407_v32 }
0x144d   : > { %2730 = vmatpush.msra.mxu2 %v4937_v22  ;;  %2753 = vmatpush.msrb.mxu3 %v2692_v34 }
0x144f   : > { %2731 = vmatpush.msra.mxu2 %v4938_v21  ;;  %2754 = vmatpush.msrb.mxu3 %v2691_v35 }
0x14c1   : > { %v2497_v36 = vpop.f32.mrf.mxu2 }
0x14c2   : > { %2501 = vrot.lane.b32.xlu1 %v2497_v36, %s6919_s1  ;;  %v2690_v36 = vld [vmem:[%s6453_s19 + $0x8] sm:$0xff] }
0x14c3   : > { %2755 = vmatpush.msrb.mxu3 %v2690_v36 }
0x14cf   : > { %v2431_v38 = vpop.f32.mrf.mxu3 }
0x1534   : > { %v2502_v39 = vpop.permute.xlu1 %2501 }
0x1535   : > { %v2504_v40 = vsel %vm1708_vm3, %v2431_v38, %v2502_v39  ;;  %v2689_v38 = vld [vmem:[%s6453_s19] sm:$0xff] }
0x1536   : > { %4700 = vmatmul.msk.f32.vlgmr.msra.gmra.mxu3 %vm1681_vm2, %v2504_v40 }
0x1537   : > { %2756 = vmatpush.msrb.mxu3 %v2689_v38 }
0x15b9   : > { %v2528_v42 = vpop.f32.mrf.mxu3 }
0x15ba   : > { %v2529_v43 = vadd.f32 %v5004_v41, %v2528_v42  ;;  %v5007_v41 = vld [vmem:[%s6086_s27 + $0x2] ss:$0 sm:$0xff] }
0x15bc   : > { %v2531_v44 = vadd.f32 %v2529_v43, %v6381_v1  ;;  %v4939_v1 = vpack.i.bf16 %v2684_v62, %v2685_v63 }
0x15be   : > { %v2532_v45 = vsel %vm1681_vm2, %v2531_v44, 0.0  ;;  %4940 = vrot.lane.b32.xlu2 %v4939_v1, %s6918_s20  ;;  %v2652_v1 = vperm.slane %v6433_v6, 2 }
0x15bf   : > { %2533 = vadd.xlane.f32.xlu0 %v2532_v45 }
0x15d3   : > { %2712 = vrot.lane.b32.xlu0 %v5006_v28, %s6918_s20 }
0x1618   : > { %v4941_v23 = vpop.permute.xlu2 %4940 }
0x1619   : > { %v4943_v24 = vunpack.i.h.bf16 %v4941_v23  ;;  %v4942_v25 = vunpack.i.l.bf16 %v4941_v23 }
0x161b   : > { %2732 = vmatpush.msra.mxu2 %v4942_v25 }
0x161d   : > { %2733 = vmatpush.msra.mxu2 %v4943_v24 }
0x161e   : > { %4717 = vmatmul.msk.f32.vlgmr.msra.gmra.mxu2 %vm1681_vm2, %v5565_v29 }
0x1632   : > { %v2534_v46 = vpop.xlane.xlu0 %2533 }
0x1633   : > { %v2535_v47 = vmul.f32 %v2534_v46, %v6267_v16  ;;  %v2693_v46 = vld [vmem:[%s6097_s4] sm:$0x1] }
0x1635   : > { %v2536_v48 = vsub.f32 %v2531_v44, %v2535_v47 }
0x1637   : > { %v2537_v49 = vmul.f32 %v2536_v48, %v2536_v48 }
0x1639   : > { %v2538_v50 = vsel %vm1681_vm2, %v2537_v49, 0.0 }
0x163a   : > { %2539 = vadd.xlane.f32.xlu1 %v2538_v50 }
0x1645   : > { %v2713_v37 = vpop.permute.xlu0 %2712 }
0x16a1   : > { %v2735_v39 = vpop.f32.mrf.mxu2 }
0x16a2   : > { %v2736_v40 = vadd.f32 %v2735_v39, %v2713_v37 }
0x16a4   : > { %4718 = vmatmul.msk.f32.vlgmr.msrb.gmra.mxu3 %vm1681_vm2, %v2736_v40 }
0x16ad   : > { %v2540_v60 = vpop.xlane.xlu1 %2539 }
0x16ae   : > { %v2541_v61 = vmul.f32 %v2540_v60, %v6267_v16 }
0x16b0   : > { %v2542_v0 = vadd.f32 1e-05, %v2541_v61 }
0x16b2   : > { %5047 = vrsqrt.f32 %v2542_v0  ;;  %vm2549_vm7 = vweird.f32 %v2542_v0 }
0x16b8   : > { %v5048_v2 = vpop.eup %5047 }
0x16b9   : > { %v2544_v3 = vmul.f32 %v5048_v2, %v2542_v0  ;;  %vm2550_vm6 = vweird.f32 %v5048_v2 }
0x16ba   : > { %vm2551_vm8 = vmor %vm2549_vm7, %vm2550_vm6  ;;  %vm2894_vm7 = vcmask 57344  }
0x16bb   : > { %v2545_v4 = vmul.f32 %v5048_v2, %v2544_v3 }
0x16bd   : > { %v2546_v5 = vmul.f32 0.5, %v2545_v4 }
0x16bf   : > { %v2547_v7 = vsub.f32 1.5, %v2546_v5  ;;  %v2654_v5 = vperm.slane %v6433_v6, 3 }
0x16c1   : > { %v2548_v8 = vmul.f32 %v5048_v2, %v2547_v7 }
0x16c3   : > { %v2552_v10 = vsel %vm2551_vm8, %v5048_v2, %v2548_v8 }
0x16c4   : > { %v2553_v11 = vmul.f32 %v2552_v10, %v2536_v48 }
0x16c6   : > { %v2555_v13 = vmul.f32 %v2554_v9, %v2553_v11 }
0x16c8   : > { %v2557_v14 = vadd.f32 %v2556_v12, %v2555_v13 }
0x16ca   : > { %4706 = vmatmul.msk.f32.vlgmr.msrb.gmra.mxu0 %vm1681_vm2, %v2557_v14 }
0x1727   : > { %v2758_v47 = vpop.f32.mrf.mxu3 }
0x1728   : > { %v2759_v48 = vadd.f32 %v2758_v47, %v2693_v46 }
0x172a   : > { %v2761_v49 = vadd.f32 1.0, %v2759_v48 }
0x172c   : > { %v2763_v50 = vsel %vm2762_vm10, %v2761_v49, 0.0 }
0x172d   : > { %2764 = vadd.xlane.f32.xlu0 %v2763_v50  ;;  %v2656_v50 = vld [vmem:[%s6139_s6] sm:$0xf] }
0x1747   : > { %v2588_v31 = vpop.f32.mrf.mxu0 }
0x1748   : > { %v2589_v32 = vadd.f32 %v5005_v30, %v2588_v31 }
0x174a   : > { %v2591_v33 = vmax.f32 %v2589_v32, 0.0  ;;  %v6487_v32 = vld [vmem:[%s6484_s24] sm:$0x3f] }
0x174b   : > { %v2787_v37 = vrot.slane %v6487_v32, 1 }
0x174c   : > { %4716 = vmatmul.msk.f32.vlgmr.msra.gmra.mxu1 %vm1947_vm9, %v2591_v33 }
0x17a0   : > { %v2765_v2 = vpop.xlane.xlu0 %2764 }
0x17a1   : > { %v2766_v7 = vmul.f32 %v2765_v2, %v6267_v16 }
0x17a3   : > { %v2767_v10 = vsub.f32 %v2761_v49, %v2766_v7 }
0x17a5   : > { %v2768_v12 = vmul.f32 %v2767_v10, %v2767_v10 }
0x17a7   : > { %v2769_v13 = vsel %vm2762_vm10, %v2768_v12, 0.0 }
0x17c9   : > { %v2626_v42 = vpop.f32.mrf.mxu1 }
0x17ca   : > { %v2627_v43 = vadd.f32 %v5007_v41, %v2626_v42 }
0x17cc   : > { %v2629_v44 = vadd.f32 %v2627_v43, %v2557_v14  ;;  %v2793_v14 = vld [vmem:[%s6104_s28 + $0x18] sm:$0xff]  ;;  %v5008_v43 = vld [vmem:[%s6108_s11] ss:$0 sm:$0xff] }
0x17cd   : > { %2815 = vmatpush.msra.mxu0 %v2793_v14  ;;  %v4944_v34 = vpack.i.bf16 %v2792_v15, %v2793_v14  ;;  %2841 = vrot.lane.b32.xlu0 %v5008_v43, %s6917_s8 }
0x17ce   : > { %v2630_v45 = vsel %vm1681_vm2, %v2629_v44, 0.0 }
0x17cf   : > { %2631 = vadd.xlane.f32.xlu2 %v2630_v45  ;;  %2816 = vmatpush.msra.mxu0 %v2792_v15 }
0x17d1   : > { %2817 = vmatpush.msra.mxu0 %v2791_v18 }
0x17d3   : > { %2818 = vmatpush.msra.mxu0 %v2790_v19 }
0x17e7   : > { %4950 = vrot.lane.b32.xlu2 %v4949_v20, %s6917_s8 }
0x183f   : > { %v2842_v2 = vpop.permute.xlu0 %2841 }
0x1842   : > { %v2632_v51 = vpop.xlane.xlu2 %2631 }
0x1843   : > { %v2633_v52 = vmul.f32 %v2632_v51, %v6267_v16 }
0x1845   : > { %v2634_v53 = vsub.f32 %v2629_v44, %v2633_v52  ;;  %v2679_v52 = vperm.slane %v2656_v50, 0 }
0x1847   : > { %v2635_v54 = vmul.f32 %v2634_v53, %v2634_v53 }
0x1849   : > { %v2636_v55 = vsel %vm1681_vm2, %v2635_v54, 0.0 }
0x184a   : > { %2637 = vadd.xlane.f32.xlu1 %v2636_v55  ;;  %v4951_v55 = vpop.permute.xlu2 %4950 }
0x18bd   : > { %v2638_v56 = vpop.xlane.xlu1 %2637 }
0x18be   : > { %v2639_v57 = vmul.f32 %v2638_v56, %v6267_v16 }
0x18c0   : > { %v2640_v58 = vadd.f32 1e-05, %v2639_v57 }
0x18c2   : > { %5049 = vrsqrt.f32 %v2640_v58  ;;  %vm2647_vm12 = vweird.f32 %v2640_v58 }
0x18c8   : > { %v5050_v59 = vpop.eup %5049 }
0x18c9   : > { %v2642_v60 = vmul.f32 %v5050_v59, %v2640_v58  ;;  %vm2648_vm11 = vweird.f32 %v5050_v59  ;;  %v4952_v58 = vunpack.i.l.bf16 %v4951_v55 }
0x18ca   : > { %vm2649_vm13 = vmor %vm2647_vm12, %vm2648_vm11 }
0x18cb   : > { %v2643_v61 = vmul.f32 %v5050_v59, %v2642_v60  ;;  %v2681_v60 = vperm.slane %v2656_v50, 1 }
0x18cd   : > { %v2644_v62 = vmul.f32 0.5, %v2643_v61  ;;  %v4953_v61 = vunpack.i.h.bf16 %v4951_v55  ;;  %v3091_v55 = vld [vmem:[%s6539_s10 + $0x38] sm:$0xff] }
0x18cf   : > { %v2645_v63 = vsub.f32 1.5, %v2644_v62 }
0x18d1   : > { %v2646_v0 = vmul.f32 %v5050_v59, %v2645_v63  ;;  %v2794_v63 = vld [vmem:[%s6108_s11] sm:$0x1] }
0x18d3   : > { %v2650_v3 = vsel %vm2649_vm13, %v5050_v59, %v2646_v0 }
0x18d4   : > { %v2651_v4 = vmul.f32 %v2650_v3, %v2634_v53 }
0x18d6   : > { %v2653_v8 = vmul.f32 %v2652_v1, %v2651_v4 }
0x18d8   : > { %v2655_v9 = vadd.f32 %v2654_v5, %v2653_v8 }
0x18da   : > { %v2657_v11 = vsel %vm1681_vm2, %v2655_v9, 0.0 }
0x18db   : > { %2658 = vadd.xlane.f32.xlu1 %v2657_v11 }
0x18e3   : > { %2770 = vadd.xlane.f32.xlu1 %v2769_v13 }
0x194e   : > { %v2659_v17 = vpop.xlane.xlu1 %2658 }
0x194f   : > { %v2660_v6 = vmul.f32 %v2659_v17, %v6267_v16 }
0x1951   : > { %v2661_v21 = vsub.f32 %v2655_v9, %v2660_v6 }
0x1953   : > { %v2662_v22 = vmul.f32 %v2661_v21, %v2661_v21 }
0x1955   : > { %v2663_v23 = vsel %vm1681_vm2, %v2662_v22, 0.0 }
0x1956   : > { %2664 = vadd.xlane.f32.xlu1 %v2663_v23  ;;  %v2771_v24 = vpop.xlane.xlu1 %2770 }
0x1957   : > { %v2772_v25 = vmul.f32 %v2771_v24, %v6267_v16 }
0x1959   : > { %v2773_v26 = vadd.f32 1e-05, %v2772_v25 }
0x195b   : > { %5051 = vrsqrt.f32 %v2773_v26  ;;  %vm2780_vm15 = vweird.f32 %v2773_v26 }
0x1961   : > { %v5052_v27 = vpop.eup %5051 }
0x1962   : > { %v2775_v28 = vmul.f32 %v5052_v27, %v2773_v26  ;;  %vm2781_vm14 = vweird.f32 %v5052_v27 }
0x1963   : > { %vm2782_vm0 = vmor %vm2780_vm15, %vm2781_vm14 }
0x1964   : > { %v2776_v29 = vmul.f32 %v5052_v27, %v2775_v28 }
0x1966   : > { %v2777_v30 = vmul.f32 0.5, %v2776_v29 }
0x1968   : > { %v2778_v31 = vsub.f32 1.5, %v2777_v30 }
0x196a   : > { %v2779_v33 = vmul.f32 %v5052_v27, %v2778_v31 }
0x196c   : > { %v2783_v35 = vsel %vm2782_vm0, %v5052_v27, %v2779_v33  ;;  %v2798_v33 = vld [vmem:[%s6114_s12 + $0x18] sm:$0xff] }
0x196d   : > { %v2784_v36 = vmul.f32 %v2783_v35, %v2767_v10  ;;  %v2796_v35 = vld [vmem:[%s6114_s12 + $0x8] sm:$0xff] }
0x196f   : > { %v2785_v38 = vmul.f32 %v2784_v36, %v6487_v32  ;;  %4945 = vrot.lane.b32.xlu1 %v4944_v34, %s6917_s8  ;;  %v2797_v34 = vld [vmem:[%s6114_s12 + $0x10] sm:$0xff] }
0x1971   : > { %v6492_v39 = vadd.f32 %v2787_v37, %v2785_v38  ;;  %v2795_v37 = vld [vmem:[%s6114_s12] sm:$0xff] }
0x1973   : > { %4719 = vmatmul.msk.f32.vlgmr.msra.gmra.mxu0 %vm1681_vm2, %v6492_v39 }
0x19c9   : > { %v2665_v40 = vpop.xlane.xlu1 %2664 }
0x19ca   : > { %v2666_v41 = vmul.f32 %v2665_v40, %v6267_v16 }
0x19cc   : > { %v2667_v42 = vadd.f32 1e-05, %v2666_v41 }
0x19ce   : > { %5053 = vrsqrt.f32 %v2667_v42  ;;  %vm2674_vm5 = vweird.f32 %v2667_v42 }
0x19d4   : > { %v5054_v44 = vpop.eup %5053 }
0x19d5   : > { %v2669_v45 = vmul.f32 %v5054_v44, %v2667_v42  ;;  %vm2675_vm1 = vweird.f32 %v5054_v44  ;;  %v2799_v42 = vld [vmem:[%s6118_s14] sm:$0x1] }
0x19d6   : > { %vm2676_vm6 = vmor %vm2674_vm5, %vm2675_vm1 }
0x19d7   : > { %v2670_v46 = vmul.f32 %v5054_v44, %v2669_v45 }
0x19d9   : > { %v2671_v47 = vmul.f32 0.5, %v2670_v46 }
0x19db   : > { %v2672_v48 = vsub.f32 1.5, %v2671_v47 }
0x19dd   : > { %v2673_v49 = vmul.f32 %v5054_v44, %v2672_v48 }
0x19df   : > { %v2677_v51 = vsel %vm2676_vm6, %v5054_v44, %v2673_v49 }
0x19e0   : > { %v2678_v53 = vmul.f32 %v2677_v51, %v2661_v21 }
0x19e1   : > { %v4946_v54 = vpop.permute.xlu1 %4945 }
0x19e2   : > { %v4947_v56 = vunpack.i.l.bf16 %v4946_v54  ;;  %v4948_v57 = vunpack.i.h.bf16 %v4946_v54  ;;  %v2680_v59 = vmul.f32 %v2679_v52, %v2678_v53  ;;  %v3058_v52 = vld [vmem:[%s6124_s13 + $0x18] sm:$0xff]  ;;  %v3057_v53 = vld [vmem:[%s6124_s13 + $0x10] sm:$0xff]  ;;  %v3056_v54 = vld [vmem:[%s6124_s13 + $0x8] sm:$0xff] }
0x19e4   : > { %2859 = vmatpush.msrb.mxu2 %v4947_v56  ;;  %v6500_v62 = vadd.f32 %v2681_v60, %v2680_v59  ;;  %v3090_v56 = vld [vmem:[%s6539_s10 + $0x30] sm:$0xff]  ;;  %v3088_v60 = vld [vmem:[%s6539_s10 + $0x20] sm:$0xff] }
0x19e6   : > { %2860 = vmatpush.msrb.mxu2 %v4948_v57  ;;  %v3089_v57 = vld [vmem:[%s6539_s10 + $0x28] sm:$0xff] }
0x19e8   : > { %2861 = vmatpush.msrb.mxu2 %v4952_v58 }
0x19ea   : > { %2862 = vmatpush.msrb.mxu2 %v4953_v61 }
0x19eb   : > { %4720 = vmatmul.msk.f32.vlgmr.msrb.gmra.mxu2 %vm1681_vm2, %v6500_v62 }
0x19f0   : > { %v2820_v0 = vpop.f32.mrf.mxu0 }
0x19f1   : > { %v2821_v1 = vadd.f32 %v2820_v0, %v2794_v63  ;;  %v3087_v63 = vld [vmem:[%s6539_s10 + $0x18] sm:$0xff] }
0x19f3   : > { %2932 = vrot.lane.b32.xlu2 %v2821_v1, %s6914_s17 }
0x1a4d   : > { %v2933_v7 = vpop.permute.xlu2 %2932 }
0x1a6e   : > { %v2864_v3 = vpop.f32.mrf.mxu2 }
0x1a6f   : > { %v2865_v4 = vadd.f32 %v2864_v3, %v2842_v2 }
0x1a71   : > { %2934 = vrot.lane.b32.xlu1 %v2865_v4, %s6914_s17  ;;  %4721 = vmatpush.xpose.msk.msra.mxu3 %vm1708_vm3, %v2865_v4 }
0x1a74   : > { %4722 = vmatmul.msk.f32.vlgmr.msra.gmra.mxu3 %vm1708_vm3, %v2821_v1 }
0x1a75   : > { %3018 = vmatpush.msrb.mxu3 %v2798_v33 }
0x1a77   : > { %3019 = vmatpush.msrb.mxu3 %v2797_v34  ;;  %v4743_v34 = vld [vmem:[%s6104_s28 + $0x20] sm:$0xff] }
0x1a79   : > { %3020 = vmatpush.msrb.mxu3 %v2796_v35 }
0x1a7b   : > { %3021 = vmatpush.msrb.mxu3 %v2795_v37 }
0x1ae3   : > { %v2935_v5 = vpop.permute.xlu1 %2934 }
0x1ae4   : > { %4724 = vmatpush.xpose.msk.msrb.mxu1 %vm1708_vm3, %v2935_v5 }
0x1ae7   : > { %4725 = vmatmul.msk.f32.vlgmr.msrb.gmra.mxu1 %vm1708_vm3, %v2933_v7  ;;  %v3049_v7 = vrot.slane %v6487_v32, 2 }
0x1ae8   : > { %3104 = vmatpush.msra.mxu1 %v3091_v55 }
0x1aea   : > { %3105 = vmatpush.msra.mxu1 %v3090_v56 }
0x1aec   : > { %3106 = vmatpush.msra.mxu1 %v3089_v57 }
0x1aee   : > { %3107 = vmatpush.msra.mxu1 %v3088_v60 }
0x1af0   : > { %3108 = vmatpush.msra.mxu1 %v3087_v63 }
0x1af7   : > { %v2890_v8 = vpop.f32.mrf.mxu3 }
0x1af8   : > { %v2893_v9 = vmul.f32 0.25, %v2890_v8 }
0x1afa   : > { %v2895_v10 = vsel %vm2894_vm7, %v2893_v9, -inf }
0x1afb   : > { %2896 = vmax.xlane.f32.xlu2 %v2895_v10  ;;  %v3052_v10 = vrot.slane %v6487_v32, 3 }
0x1b13   : > { %2972 = vrot.lane.b32.xlu2 %v2865_v4, %s6915_s5 }
0x1b64   : > { %v2957_v11 = vpop.f32.mrf.mxu1 }
0x1b65   : > { %v2960_v12 = vmul.f32 0.25, %v2957_v11 }
0x1b67   : > { %v2961_v13 = vsel %vm2894_vm7, %v2960_v12, -inf }
0x1b68   : > { %2962 = vmax.xlane.f32.xlu1 %v2961_v13  ;;  %v3086_v13 = vld [vmem:[%s6539_s10 + $0x10] sm:$0xff] }
0x1b69   : > { %3109 = vmatpush.msra.mxu1 %v3086_v13  ;;  %v4737_v13 = vld [vmem:[%s6453_s19 + $0x28] sm:$0xff] }
0x1b6e   : > { %v2897_v14 = vpop.xlane.xlu2 %2896 }
0x1b6f   : > { %v2898_v15 = vsub.f32 %v2893_v9, %v2897_v14  ;;  %v3085_v14 = vld [vmem:[%s6539_s10 + $0x8] sm:$0xff] }
0x1b70   : > { %3110 = vmatpush.msra.mxu1 %v3085_v14  ;;  %v4736_v14 = vld [vmem:[%s6453_s19 + $0x20] sm:$0xff] }
0x1b71   : > { %v2899_v17 = vmul.f32 1.442695, %v2898_v15  ;;  %v3084_v15 = vld [vmem:[%s6539_s10] sm:$0xff] }
0x1b72   : > { %3111 = vmatpush.msra.mxu1 %v3084_v15 }
0x1b73   : > { %5055 = vpow2.f32 %v2899_v17  ;;  %v3059_v17 = vld [vmem:[%s6128_s0] sm:$0x1] }
0x1b76   : > { %v2973_v6 = vpop.permute.xlu2 %2972 }
0x1b77   : > { %2993 = vmatpush.msra.mxu2 %v2973_v6 }
0x1b79   : > { %v5056_v18 = vpop.eup %5055 }
0x1b7a   : > { %v2901_v19 = vsel %vm2894_vm7, %v5056_v18, 0.0 }
0x1b7b   : > { %2902 = vadd.xlane.f32.xlu1 %v2901_v19 }
0x1bdb   : > { %v2963_v20 = vpop.xlane.xlu1 %2962 }
0x1bdc   : > { %v2964_v21 = vsub.f32 %v2960_v12, %v2963_v20  ;;  %v3092_v20 = vld [vmem:[%s6136_s2] sm:$0x1] }
0x1bde   : > { %v2965_v22 = vmul.f32 1.442695, %v2964_v21 }
0x1be0   : > { %5057 = vpow2.f32 %v2965_v22 }
0x1be6   : > { %v5058_v23 = vpop.eup %5057 }
0x1be7   : > { %v2967_v24 = vsel %vm2894_vm7, %v5058_v23, 0.0 }
0x1be8   : > { %2968 = vadd.xlane.f32.xlu0 %v2967_v24 }
0x1bee   : > { %v2903_v27 = vpop.xlane.xlu1 %2902 }
0x1bfc   : > { %2906 = vrot.lane.b32.xlu0 %v2865_v4, %s6917_s8 }
0x1c5b   : > { %v2969_v25 = vpop.xlane.xlu0 %2968 }
0x1c5c   : > { %5059 = vrcp.f32 %v2969_v25  ;;  %v5009_v25 = vld [vmem:[%s6093_s15 + $0x1] ss:$0 sm:$0xff] }
0x1c5d   : > { %5061 = vrcp.f32 %v2903_v27  ;;  %v4734_v27 = vld [vmem:[%s6421_s7 + $0x38] sm:$0xff] }
0x1c62   : > { %v5060_v26 = vpop.eup %5059 }
0x1c63   : > { %v2971_v28 = vmul.f32 %v5060_v26, %v5058_v23  ;;  %v5062_v29 = vpop.eup %5061  ;;  %v4733_v26 = vld [vmem:[%s6421_s7 + $0x30] sm:$0xff] }
0x1c64   : > { %v2905_v30 = vmul.f32 %v5062_v29, %v5056_v18  ;;  %v4746_v29 = vld [vmem:[%s6104_s28 + $0x38] sm:$0xff] }
0x1c65   : > { %4726 = vmatmul.msk.f32.vlgmr.msra.gmra.mxu2 %vm1734_vm4, %v2971_v28  ;;  %v4954_v28 = vpack.i.bf16 %v4733_v26, %v4734_v27 }
0x1c6e   : > { %v2907_v31 = vpop.permute.xlu0 %2906 }
0x1c6f   : > { %2927 = vmatpush.msrb.mxu0 %v2907_v31  ;;  %v4744_v31 = vld [vmem:[%s6104_s28 + $0x28] sm:$0xff] }
0x1c70   : > { %4723 = vmatmul.msk.f32.vlgmr.msrb.gmra.mxu0 %vm1734_vm4, %v2905_v30  ;;  %v4745_v30 = vld [vmem:[%s6104_s28 + $0x30] sm:$0xff]  ;;  %v4969_v35 = vpack.i.bf16 %v4743_v34, %v4744_v31 }
0x1c71   : > { %3075 = vmatpush.msra.mxu0 %v3058_v52  ;;  %v4964_v33 = vpack.i.bf16 %v4745_v30, %v4746_v29 }
0x1c73   : > { %3076 = vmatpush.msra.mxu0 %v3057_v53  ;;  %v5010_v53 = vld [vmem:[%s6108_s11 + $0x1] ss:$0 sm:$0xff] }
0x1c75   : > { %3077 = vmatpush.msra.mxu0 %v3056_v54  ;;  %v4739_v54 = vld [vmem:[%s6453_s19 + $0x38] sm:$0xff] }
0x1c76   : > { %3220 = vmatpush.msra.mxu3 %v4739_v54 }
0x1ce8   : > { %v2995_v36 = vpop.f32.mrf.mxu2 }
0x1ce9   : > { %2999 = vrot.lane.b32.xlu1 %v2995_v36, %s6919_s1 }
0x1ced   : > { %v2929_v38 = vpop.f32.mrf.mxu0 }
0x1d5b   : > { %v3000_v40 = vpop.permute.xlu1 %2999 }
0x1d5c   : > { %v3002_v41 = vsel %vm1708_vm3, %v2929_v38, %v3000_v40 }
0x1d5d   : > { %4727 = vmatmul.msk.f32.vlgmr.msrb.gmra.mxu3 %vm1681_vm2, %v3002_v41 }
0x1de0   : > { %v3023_v43 = vpop.f32.mrf.mxu3 }
0x1de1   : > { %v3024_v44 = vadd.f32 %v3023_v43, %v2799_v42  ;;  %v4731_v42 = vld [vmem:[%s6421_s7 + $0x20] sm:$0xff]  ;;  %v4732_v43 = vld [vmem:[%s6421_s7 + $0x28] sm:$0xff] }
0x1de3   : > { %v3026_v45 = vadd.f32 %v3024_v44, %v6492_v39  ;;  %v3055_v39 = vld [vmem:[%s6124_s13] sm:$0xff]  ;;  %v4959_v44 = vpack.i.bf16 %v4731_v42, %v4732_v43 }
0x1de4   : > { %3078 = vmatpush.msra.mxu0 %v3055_v39  ;;  %v4738_v39 = vld [vmem:[%s6453_s19 + $0x30] sm:$0xff] }
0x1de5   : > { %v3027_v46 = vsel %vm2762_vm10, %v3026_v45, 0.0  ;;  %3221 = vmatpush.msra.mxu3 %v4738_v39 }
0x1de6   : > { %3028 = vadd.xlane.f32.xlu2 %v3027_v46  ;;  %3285 = vmatpush.msrb.mxu0 %v4746_v29 }
0x1de7   : > { %3222 = vmatpush.msra.mxu3 %v4737_v13  ;;  %v4750_v13 = vld [vmem:[%s6114_s12 + $0x30] sm:$0xff] }
0x1de8   : > { %3286 = vmatpush.msrb.mxu0 %v4745_v30 }
0x1de9   : > { %3223 = vmatpush.msra.mxu3 %v4736_v14  ;;  %v4749_v14 = vld [vmem:[%s6114_s12 + $0x28] sm:$0xff] }
0x1dea   : > { %3287 = vmatpush.msrb.mxu0 %v4744_v31 }
0x1dec   : > { %3288 = vmatpush.msrb.mxu0 %v4743_v34 }
0x1e59   : > { %v3029_v47 = vpop.xlane.xlu2 %3028 }
0x1e5a   : > { %v3030_v48 = vmul.f32 %v3029_v47, %v6267_v16 }
0x1e5c   : > { %v3031_v49 = vsub.f32 %v3026_v45, %v3030_v48 }
0x1e5e   : > { %v3032_v50 = vmul.f32 %v3031_v49, %v3031_v49 }
0x1e60   : > { %v3033_v51 = vsel %vm2762_vm10, %v3032_v50, 0.0 }
0x1e61   : > { %3034 = vadd.xlane.f32.xlu0 %v3033_v51 }
0x1e75   : > { %4955 = vrot.lane.b32.xlu0 %v4954_v28, %s6918_s20 }
0x1ed4   : > { %v3035_v58 = vpop.xlane.xlu0 %3034 }
0x1ed5   : > { %v3036_v59 = vmul.f32 %v3035_v58, %v6267_v16 }
0x1ed7   : > { %v3037_v61 = vadd.f32 1e-05, %v3036_v59 }
0x1ed9   : > { %5063 = vrsqrt.f32 %v3037_v61  ;;  %vm3044_vm11 = vweird.f32 %v3037_v61 }
0x1edf   : > { %v5064_v0 = vpop.eup %5063 }
0x1ee0   : > { %v3039_v1 = vmul.f32 %v5064_v0, %v3037_v61  ;;  %vm3045_vm8 = vweird.f32 %v5064_v0 }
0x1ee1   : > { %vm3046_vm12 = vmor %vm3044_vm11, %vm3045_vm8 }
0x1ee2   : > { %v3040_v2 = vmul.f32 %v5064_v0, %v3039_v1 }
0x1ee4   : > { %v3041_v3 = vmul.f32 0.5, %v3040_v2 }
0x1ee6   : > { %v3042_v4 = vsub.f32 1.5, %v3041_v3 }
0x1ee7   : > { %v4956_v45 = vpop.permute.xlu0 %4955 }
0x1ee8   : > { %v3043_v5 = vmul.f32 %v5064_v0, %v3042_v4  ;;  %v4957_v46 = vunpack.i.l.bf16 %v4956_v45  ;;  %v4958_v47 = vunpack.i.h.bf16 %v4956_v45 }
0x1eea   : > { %v3047_v8 = vsel %vm3046_vm12, %v5064_v0, %v3043_v5  ;;  %3197 = vmatpush.msrb.mxu2 %v4957_v46 }
0x1eeb   : > { %v3048_v9 = vmul.f32 %v3047_v8, %v3031_v49 }
0x1eec   : > { %3198 = vmatpush.msrb.mxu2 %v4958_v47  ;;  %v4747_v47 = vld [vmem:[%s6108_s11 + $0x1] sm:$0x1] }
0x1eed   : > { %v3051_v11 = vmul.f32 %v3049_v7, %v3048_v9  ;;  %v3139_v7 = vrot.slane %v6487_v32, 4 }
0x1eef   : > { %v3054_v12 = vadd.f32 %v3052_v10, %v3051_v11  ;;  %v3142_v10 = vrot.slane %v6487_v32, 5 }
0x1ef1   : > { %4728 = vmatmul.msk.f32.vlgmr.msra.gmra.mxu0 %vm1681_vm2, %v3054_v12 }
0x1f6e   : > { %v3080_v6 = vpop.f32.mrf.mxu0 }
0x1f6f   : > { %v3081_v18 = vadd.f32 %v3080_v6, %v3059_v17 }
0x1f71   : > { %v3083_v19 = vmax.f32 %v3081_v18, 0.0 }
0x1f73   : > { %4729 = vmatmul.msk.f32.vlgmr.msra.gmra.mxu1 %vm1947_vm9, %v3083_v19 }
0x1ff0   : > { %v3113_v21 = vpop.f32.mrf.mxu1 }
0x1ff1   : > { %v3114_v22 = vadd.f32 %v3113_v21, %v3092_v20  ;;  %v4740_v20 = vld [vmem:[%s6097_s4 + $0x1] sm:$0x1] }
0x1ff3   : > { %v3116_v23 = vadd.f32 %v3114_v22, %v3054_v12 }
0x1ff5   : > { %v3117_v24 = vsel %vm2762_vm10, %v3116_v23, 0.0 }
0x1ff6   : > { %3118 = vadd.xlane.f32.xlu1 %v3117_v24 }
0x200f   : > { %3179 = vrot.lane.b32.xlu1 %v5009_v25, %s6918_s20 }
0x2017   : > { %4965 = vrot.lane.b32.xlu1 %v4964_v33, %s6917_s8 }
0x201f   : > { %4970 = vrot.lane.b32.xlu1 %v4969_v35, %s6917_s8 }
0x2027   : > { %3311 = vrot.lane.b32.xlu1 %v5010_v53, %s6917_s8 }
0x2069   : > { %v3119_v36 = vpop.xlane.xlu1 %3118 }
0x206a   : > { %v3120_v37 = vmul.f32 %v3119_v36, %v6267_v16 }
0x206c   : > { %v3121_v38 = vsub.f32 %v3116_v23, %v3120_v37 }
0x206e   : > { %v3122_v40 = vmul.f32 %v3121_v38, %v3121_v38 }
0x2070   : > { %v3123_v41 = vsel %vm2762_vm10, %v3122_v40, 0.0  ;;  %v6596_v40 = vld [vmem:[%s6484_s24 + $0x8] sm:$0x3f] }
0x2071   : > { %3124 = vadd.xlane.f32.xlu2 %v3123_v41 }
0x2081   : > { %v3180_v48 = vpop.permute.xlu1 %3179 }
0x2089   : > { %4960 = vrot.lane.b32.xlu2 %v4959_v44, %s6918_s20  ;;  %v4966_v51 = vpop.permute.xlu1 %4965  ;;  %v3253_v44 = vrot.slane %v6596_v40, 1 }
0x208a   : > { %v4967_v58 = vunpack.i.l.bf16 %v4966_v51  ;;  %v4968_v63 = vunpack.i.h.bf16 %v4966_v51 }
0x2091   : > { %v4971_v60 = vpop.permute.xlu1 %4970 }
0x2092   : > { %v4972_v1 = vunpack.i.l.bf16 %v4971_v60  ;;  %v4973_v3 = vunpack.i.h.bf16 %v4971_v60 }
0x2099   : > { %v3312_v6 = vpop.permute.xlu1 %3311 }
0x20e4   : > { %v3125_v49 = vpop.xlane.xlu2 %3124 }
0x20e5   : > { %v3126_v50 = vmul.f32 %v3125_v49, %v6267_v16 }
0x20e7   : > { %v3127_v52 = vadd.f32 1e-05, %v3126_v50 }
0x20e9   : > { %5065 = vrsqrt.f32 %v3127_v52  ;;  %vm3134_vm14 = vweird.f32 %v3127_v52 }
0x20ec   : > { %v4961_v55 = vpop.permute.xlu2 %4960 }
0x20ed   : > { %v4963_v56 = vunpack.i.h.bf16 %v4961_v55  ;;  %v4962_v57 = vunpack.i.l.bf16 %v4961_v55 }
0x20ef   : > { %v5066_v59 = vpop.eup %5065  ;;  %3199 = vmatpush.msrb.mxu2 %v4962_v57 }
0x20f0   : > { %v3129_v61 = vmul.f32 %v5066_v59, %v3127_v52  ;;  %vm3135_vm13 = vweird.f32 %v5066_v59 }
0x20f1   : > { %3200 = vmatpush.msrb.mxu2 %v4963_v56  ;;  %vm3136_vm15 = vmor %vm3134_vm14, %vm3135_vm13 }
0x20f2   : > { %v3130_v0 = vmul.f32 %v5066_v59, %v3129_v61 }
0x20f3   : > { %3326 = vmatpush.msra.mxu2 %v4967_v58 }
0x20f4   : > { %v3131_v2 = vmul.f32 0.5, %v3130_v0 }
0x20f5   : > { %3327 = vmatpush.msra.mxu2 %v4968_v63 }
0x20f6   : > { %v3132_v4 = vsub.f32 1.5, %v3131_v2 }
0x20f7   : > { %3328 = vmatpush.msra.mxu2 %v4972_v1 }
0x20f8   : > { %v3133_v5 = vmul.f32 %v5066_v59, %v3132_v4 }
0x20f9   : > { %3329 = vmatpush.msra.mxu2 %v4973_v3 }
0x20fa   : > { %v3137_v8 = vsel %vm3136_vm15, %v5066_v59, %v3133_v5 }
0x20fb   : > { %v3138_v9 = vmul.f32 %v3137_v8, %v3121_v38 }
0x20fd   : > { %v3141_v11 = vmul.f32 %v3139_v7, %v3138_v9 }
0x20ff   : > { %v3144_v12 = vadd.f32 %v3142_v10, %v3141_v11 }
0x2101   : > { %4741 = vmatmul.msk.f32.vlgmr.msrb.gmra.mxu2 %vm1681_vm2, %v3144_v12 }
0x2109   : > { %4754 = vmatmul.msk.f32.vlgmr.msra.gmra.mxu2 %vm1681_vm2, %v6500_v62 }
0x2184   : > { %v3202_v15 = vpop.f32.mrf.mxu2 }
0x2185   : > { %v3203_v17 = vadd.f32 %v3202_v15, %v3180_v48 }
0x2187   : > { %4742 = vmatmul.msk.f32.vlgmr.msra.gmra.mxu3 %vm1681_vm2, %v3203_v17  ;;  %v4748_v17 = vld [vmem:[%s6114_s12 + $0x20] sm:$0xff] }
0x218c   : > { %v3331_v18 = vpop.f32.mrf.mxu2 }
0x218d   : > { %v3332_v19 = vadd.f32 %v3331_v18, %v3312_v6 }
0x218f   : > { %3400 = vrot.lane.b32.xlu1 %v3332_v19, %s6914_s17  ;;  %4755 = vmatpush.xpose.msk.msrb.mxu3 %vm1708_vm3, %v3332_v19 }
0x2201   : > { %v3401_v32 = vpop.permute.xlu1 %3400 }
0x2202   : > { %4758 = vmatpush.xpose.msk.msrb.mxu1 %vm1708_vm3, %v3401_v32  ;;  %v4752_v32 = vld [vmem:[%s6118_s14 + $0x1] sm:$0x1] }
0x220a   : > { %v3225_v21 = vpop.f32.mrf.mxu3 }
0x220b   : > { %v3226_v22 = vadd.f32 %v4740_v20, %v3225_v21 }
0x220d   : > { %v3228_v23 = vadd.f32 %v3226_v22, %v3144_v12  ;;  %v4751_v12 = vld [vmem:[%s6114_s12 + $0x38] sm:$0xff] }
0x220e   : > { %3484 = vmatpush.msra.mxu3 %v4751_v12 }
0x220f   : > { %v3229_v24 = vsel %vm2762_vm10, %v3228_v23, 0.0 }
0x2210   : > { %3230 = vadd.xlane.f32.xlu0 %v3229_v24  ;;  %3485 = vmatpush.msra.mxu3 %v4750_v13 }
0x2212   : > { %3486 = vmatpush.msra.mxu3 %v4749_v14 }
0x2214   : > { %3487 = vmatpush.msra.mxu3 %v4748_v17 }
0x2283   : > { %v3231_v25 = vpop.xlane.xlu0 %3230 }
0x2284   : > { %v3232_v26 = vmul.f32 %v3231_v25, %v6267_v16 }
0x2286   : > { %v3233_v27 = vsub.f32 %v3228_v23, %v3232_v26 }
0x2288   : > { %v3234_v28 = vmul.f32 %v3233_v27, %v3233_v27 }
0x228a   : > { %v3235_v29 = vsel %vm2762_vm10, %v3234_v28, 0.0 }
0x228b   : > { %3236 = vadd.xlane.f32.xlu2 %v3235_v29  ;;  %v4765_v29 = vld [vmem:[%s6124_s13 + $0x38] sm:$0xff] }
0x22fe   : > { %v3237_v30 = vpop.xlane.xlu2 %3236 }
0x22ff   : > { %v3238_v31 = vmul.f32 %v3237_v30, %v6267_v16  ;;  %v4764_v30 = vld [vmem:[%s6124_s13 + $0x30] sm:$0xff] }
0x2301   : > { %v3239_v33 = vadd.f32 1e-05, %v3238_v31  ;;  %v4763_v31 = vld [vmem:[%s6124_s13 + $0x28] sm:$0xff] }
0x2303   : > { %5067 = vrsqrt.f32 %v3239_v33  ;;  %vm3246_vm1 = vweird.f32 %v3239_v33 }
0x2309   : > { %v5068_v34 = vpop.eup %5067 }
0x230a   : > { %v3241_v35 = vmul.f32 %v5068_v34, %v3239_v33  ;;  %vm3247_vm0 = vweird.f32 %v5068_v34  ;;  %v4762_v33 = vld [vmem:[%s6124_s13 + $0x20] sm:$0xff] }
0x230b   : > { %vm3248_vm5 = vmor %vm3246_vm1, %vm3247_vm0 }
0x230c   : > { %v3242_v36 = vmul.f32 %v5068_v34, %v3241_v35  ;;  %v4774_v35 = vld [vmem:[%s6539_s10 + $0x70] sm:$0xff] }
0x230e   : > { %v3243_v37 = vmul.f32 0.5, %v3242_v36  ;;  %v4773_v36 = vld [vmem:[%s6539_s10 + $0x68] sm:$0xff] }
0x2310   : > { %v3244_v38 = vsub.f32 1.5, %v3243_v37 }
0x2312   : > { %v3245_v41 = vmul.f32 %v5068_v34, %v3244_v38 }
0x2314   : > { %v3249_v42 = vsel %vm3248_vm5, %v5068_v34, %v3245_v41  ;;  %v4775_v34 = vld [vmem:[%s6539_s10 + $0x78] sm:$0xff]  ;;  %v4772_v41 = vld [vmem:[%s6539_s10 + $0x60] sm:$0xff] }
0x2315   : > { %v3250_v43 = vmul.f32 %v3249_v42, %v3233_v27  ;;  %3574 = vmatpush.msra.mxu1 %v4775_v34 }
0x2317   : > { %v3251_v45 = vmul.f32 %v6596_v40, %v3250_v43  ;;  %3575 = vmatpush.msra.mxu1 %v4774_v35  ;;  %v4771_v43 = vld [vmem:[%s6539_s10 + $0x58] sm:$0xff]  ;;  %v3609_v35 = vrot.slane %v6596_v40, 4 }
0x2319   : > { %v6600_v46 = vadd.f32 %v3253_v44, %v3251_v45  ;;  %3576 = vmatpush.msra.mxu1 %v4773_v36 }
0x231b   : > { %4753 = vmatmul.msk.f32.vlgmr.msrb.gmra.mxu0 %vm1681_vm2, %v6600_v46  ;;  %3577 = vmatpush.msra.mxu1 %v4772_v41 }
0x231d   : > { %3578 = vmatpush.msra.mxu1 %v4771_v43  ;;  %v4784_v43 = vld [vmem:[%s6453_s19 + $0x40] sm:$0xff] }
0x2398   : > { %v3290_v48 = vpop.f32.mrf.mxu0 }
0x2399   : > { %v3291_v49 = vadd.f32 %v4747_v47, %v3290_v48 }
0x239b   : > { %3398 = vrot.lane.b32.xlu0 %v3291_v49, %s6914_s17  ;;  %4756 = vmatmul.msk.f32.vlgmr.msrb.gmra.mxu3 %vm1708_vm3, %v3291_v49 }
0x23a3   : > { %3438 = vrot.lane.b32.xlu0 %v3332_v19, %s6915_s5 }
0x23ab   : > { %3372 = vrot.lane.b32.xlu0 %v3332_v19, %s6917_s8 }
0x240d   : > { %v3399_v50 = vpop.permute.xlu0 %3398 }
0x240e   : > { %4759 = vmatmul.msk.f32.vlgmr.msrb.gmra.mxu1 %vm1708_vm3, %v3399_v50  ;;  %v3515_v50 = vrot.slane %v6596_v40, 2 }
0x2415   : > { %v3439_v51 = vpop.permute.xlu0 %3438 }
0x2416   : > { %3459 = vmatpush.msrb.mxu2 %v3439_v51 }
0x241d   : > { %v3373_v52 = vpop.permute.xlu0 %3372 }
0x241e   : > { %v3357_v53 = vpop.f32.mrf.mxu3  ;;  %3393 = vmatpush.msra.mxu0 %v3373_v52 }
0x241f   : > { %v3360_v54 = vmul.f32 0.25, %v3357_v53  ;;  %v3518_v53 = vrot.slane %v6596_v40, 3 }
0x2420   : > { %3543 = vmatpush.msrb.mxu0 %v4765_v29 }
0x2421   : > { %v3361_v39 = vsel %vm2894_vm7, %v3360_v54, -inf }
0x2422   : > { %3362 = vmax.xlane.f32.xlu2 %v3361_v39  ;;  %3544 = vmatpush.msrb.mxu0 %v4764_v30 }
0x2424   : > { %3545 = vmatpush.msrb.mxu0 %v4763_v31 }
0x2426   : > { %3546 = vmatpush.msrb.mxu0 %v4762_v33 }
0x248b   : > { %v3423_v55 = vpop.f32.mrf.mxu1 }
0x248c   : > { %v3426_v56 = vmul.f32 0.25, %v3423_v55  ;;  %v4770_v55 = vld [vmem:[%s6539_s10 + $0x50] sm:$0xff] }
0x248d   : > { %3579 = vmatpush.msra.mxu1 %v4770_v55 }
0x248e   : > { %v3427_v57 = vsel %vm2894_vm7, %v3426_v56, -inf }
0x248f   : > { %3428 = vmax.xlane.f32.xlu1 %v3427_v57  ;;  %v4768_v57 = vld [vmem:[%s6539_s10 + $0x40] sm:$0xff] }
0x2495   : > { %v3363_v58 = vpop.xlane.xlu2 %3362 }
0x2496   : > { %v3364_v61 = vsub.f32 %v3360_v54, %v3363_v58  ;;  %v4766_v58 = vld [vmem:[%s6128_s0 + $0x1] sm:$0x1] }
0x2498   : > { %v3365_v0 = vmul.f32 1.442695, %v3364_v61 }
0x2502   : > { %v3429_v59 = vpop.xlane.xlu1 %3428 }
0x2503   : > { %v3430_v60 = vsub.f32 %v3426_v56, %v3429_v59  ;;  %v4769_v56 = vld [vmem:[%s6539_s10 + $0x48] sm:$0xff] }
0x2504   : > { %3580 = vmatpush.msra.mxu1 %v4769_v56 }
0x2505   : > { %v3431_v63 = vmul.f32 1.442695, %v3430_v60 }
0x2506   : > { %3581 = vmatpush.msra.mxu1 %v4768_v57 }
0x2507   : > { %5069 = vpow2.f32 %v3431_v63  ;;  %v4776_v63 = vld [vmem:[%s6136_s2 + $0x1] sm:$0x1] }
0x2508   : > { %5071 = vpow2.f32 %v3365_v0 }
0x250d   : > { %v5070_v1 = vpop.eup %5069 }
0x250e   : > { %v3433_v2 = vsel %vm2894_vm7, %v5070_v1, 0.0  ;;  %v5072_v3 = vpop.eup %5071 }
0x250f   : > { %3434 = vadd.xlane.f32.xlu2 %v3433_v2  ;;  %v3367_v4 = vsel %vm2894_vm7, %v5072_v3, 0.0 }
0x2517   : > { %3368 = vadd.xlane.f32.xlu2 %v3367_v4  ;;  %v4781_v4 = vld [vmem:[%s6421_s7 + $0x50] sm:$0xff] }
0x2582   : > { %v3435_v5 = vpop.xlane.xlu2 %3434 }
0x2583   : > { %5073 = vrcp.f32 %v3435_v5  ;;  %v4782_v5 = vld [vmem:[%s6421_s7 + $0x58] sm:$0xff] }
0x2589   : > { %v5074_v7 = vpop.eup %5073 }
0x258a   : > { %v3437_v8 = vmul.f32 %v5074_v7, %v5070_v1  ;;  %v3369_v9 = vpop.xlane.xlu2 %3368  ;;  %v4779_v7 = vld [vmem:[%s6421_s7 + $0x40] sm:$0xff] }
0x258b   : > { %5075 = vrcp.f32 %v3369_v9  ;;  %v4780_v9 = vld [vmem:[%s6421_s7 + $0x48] sm:$0xff] }
0x258c   : > { %4760 = vmatmul.msk.f32.vlgmr.msrb.gmra.mxu2 %vm1734_vm4, %v3437_v8  ;;  %v4974_v8 = vpack.i.bf16 %v4781_v4, %v4782_v5 }
0x2591   : > { %v5076_v10 = vpop.eup %5075 }
0x2592   : > { %v3371_v11 = vmul.f32 %v5076_v10, %v5072_v3  ;;  %v4979_v10 = vpack.i.bf16 %v4779_v7, %v4780_v9 }
0x2594   : > { %4757 = vmatmul.msk.f32.vlgmr.msra.gmra.mxu0 %vm1734_vm4, %v3371_v11 }
0x260f   : > { %v3461_v15 = vpop.f32.mrf.mxu2 }
0x2610   : > { %3465 = vrot.lane.b32.xlu2 %v3461_v15, %s6919_s1 }
0x2611   : > { %v3395_v6 = vpop.f32.mrf.mxu0 }
0x266a   : > { %v3466_v18 = vpop.permute.xlu2 %3465 }
0x266b   : > { %v3468_v19 = vsel %vm1708_vm3, %v3395_v6, %v3466_v18 }
0x266c   : > { %4761 = vmatmul.msk.f32.vlgmr.msra.gmra.mxu3 %vm1681_vm2, %v3468_v19 }
0x26ef   : > { %v3489_v20 = vpop.f32.mrf.mxu3 }
0x26f0   : > { %v3490_v21 = vadd.f32 %v4752_v32, %v3489_v20 }
0x26f2   : > { %v3492_v22 = vadd.f32 %v3490_v21, %v6600_v46  ;;  %v5011_v21 = vld [vmem:[%s6093_s15 + $0x2] ss:$0 sm:$0xff] }
0x26f4   : > { %v3493_v23 = vsel %vm2762_vm10, %v3492_v22, 0.0 }
0x26f5   : > { %3494 = vadd.xlane.f32.xlu0 %v3493_v23  ;;  %v4786_v23 = vld [vmem:[%s6453_s19 + $0x50] sm:$0xff] }
0x2709   : > { %4980 = vrot.lane.b32.xlu0 %v4979_v10, %s6918_s20 }
0x2768   : > { %v3495_v24 = vpop.xlane.xlu0 %3494 }
0x2769   : > { %v3496_v25 = vmul.f32 %v3495_v24, %v6267_v16  ;;  %v4785_v24 = vld [vmem:[%s6453_s19 + $0x48] sm:$0xff] }
0x276b   : > { %v3497_v26 = vsub.f32 %v3492_v22, %v3496_v25  ;;  %v4787_v22 = vld [vmem:[%s6453_s19 + $0x58] sm:$0xff] }
0x276c   : > { %3690 = vmatpush.msrb.mxu3 %v4787_v22  ;;  %v4795_v22 = vld [vmem:[%s6108_s11 + $0x2] sm:$0x1] }
0x276d   : > { %v3498_v27 = vmul.f32 %v3497_v26, %v3497_v26 }
0x276e   : > { %3691 = vmatpush.msrb.mxu3 %v4786_v23 }
0x276f   : > { %v3499_v28 = vsel %vm2762_vm10, %v3498_v27, 0.0 }
0x2770   : > { %3500 = vadd.xlane.f32.xlu1 %v3499_v28  ;;  %3692 = vmatpush.msrb.mxu3 %v4785_v24 }
0x2772   : > { %3693 = vmatpush.msrb.mxu3 %v4784_v43 }
0x277b   : > { %v4981_v19 = vpop.permute.xlu0 %4980 }
0x277c   : > { %v4982_v32 = vunpack.i.l.bf16 %v4981_v19  ;;  %v4983_v20 = vunpack.i.h.bf16 %v4981_v19 }
0x27e3   : > { %v3501_v37 = vpop.xlane.xlu1 %3500 }
0x27e4   : > { %v3502_v38 = vmul.f32 %v3501_v37, %v6267_v16 }
0x27e6   : > { %v3503_v42 = vadd.f32 1e-05, %v3502_v38  ;;  %v3612_v38 = vrot.slane %v6596_v40, 5 }
0x27e8   : > { %5077 = vrsqrt.f32 %v3503_v42  ;;  %vm3510_vm8 = vweird.f32 %v3503_v42 }
0x27ee   : > { %v5078_v44 = vpop.eup %5077 }
0x27ef   : > { %v3505_v45 = vmul.f32 %v5078_v44, %v3503_v42  ;;  %vm3511_vm6 = vweird.f32 %v5078_v44 }
0x27f0   : > { %vm3512_vm11 = vmor %vm3510_vm8, %vm3511_vm6 }
0x27f1   : > { %v3506_v46 = vmul.f32 %v5078_v44, %v3505_v45 }
0x27f3   : > { %v3507_v47 = vmul.f32 0.5, %v3506_v46 }
0x27f5   : > { %v3508_v48 = vsub.f32 1.5, %v3507_v47  ;;  %v4788_v47 = vld [vmem:[%s6097_s4 + $0x2] sm:$0x1] }
0x27f7   : > { %v3509_v49 = vmul.f32 %v5078_v44, %v3508_v48 }
0x27f9   : > { %v3513_v51 = vsel %vm3512_vm11, %v5078_v44, %v3509_v49 }
0x27fa   : > { %v3514_v52 = vmul.f32 %v3513_v51, %v3497_v26  ;;  %v4793_v51 = vld [vmem:[%s6104_s28 + $0x50] sm:$0xff] }
0x27fc   : > { %v3517_v54 = vmul.f32 %v3515_v50, %v3514_v52  ;;  %v4794_v52 = vld [vmem:[%s6104_s28 + $0x58] sm:$0xff] }
0x27fd   : > { %3755 = vmatpush.msra.mxu0 %v4794_v52 }
0x27fe   : > { %v3520_v39 = vadd.f32 %v3518_v53, %v3517_v54  ;;  %v4984_v53 = vpack.i.bf16 %v4793_v51, %v4794_v52  ;;  %v4792_v54 = vld [vmem:[%s6104_s28 + $0x48] sm:$0xff] }
0x27ff   : > { %3756 = vmatpush.msra.mxu0 %v4793_v51 }
0x2800   : > { %4767 = vmatmul.msk.f32.vlgmr.msrb.gmra.mxu0 %vm1681_vm2, %v3520_v39  ;;  %4985 = vrot.lane.b32.xlu0 %v4984_v53, %s6917_s8 }
0x2801   : > { %3757 = vmatpush.msra.mxu0 %v4792_v54 }
0x287d   : > { %v3548_v59 = vpop.f32.mrf.mxu0 }
0x287e   : > { %v3549_v60 = vadd.f32 %v4766_v58, %v3548_v59 }
0x2880   : > { %v3551_v61 = vmax.f32 %v3549_v60, 0.0 }
0x2882   : > { %4777 = vmatmul.msk.f32.vlgmr.msra.gmra.mxu1 %vm1947_vm9, %v3551_v61  ;;  %v4986_v61 = vpop.permute.xlu0 %4985 }
0x28ff   : > { %v3583_v0 = vpop.f32.mrf.mxu1 }
0x2900   : > { %v3584_v1 = vadd.f32 %v4776_v63, %v3583_v0  ;;  %v4987_v63 = vunpack.i.l.bf16 %v4986_v61  ;;  %v4988_v0 = vunpack.i.h.bf16 %v4986_v61 }
0x2902   : > { %v3586_v2 = vadd.f32 %v3584_v1, %v3520_v39  ;;  %v4791_v39 = vld [vmem:[%s6104_s28 + $0x40] sm:$0xff]  ;;  %s6925_s28 = sld [smem:[#allocation64_spill]] }
0x2903   : > { %3758 = vmatpush.msra.mxu0 %v4791_v39  ;;  %v4989_v60 = vpack.i.bf16 %v4791_v39, %v4792_v54  ;;  %v5012_v1 = vld [vmem:[%s6108_s11 + $0x2] ss:$0 sm:$0xff]  ;;  %v4798_v39 = vld [vmem:[%s6114_s12 + $0x50] sm:$0xff] }
0x2904   : > { %v3587_v3 = vsel %vm2762_vm10, %v3586_v2, 0.0  ;;  %3781 = vrot.lane.b32.xlu0 %v5012_v1, %s6917_s8  ;;  %v4799_v54 = vld [vmem:[%s6114_s12 + $0x58] sm:$0xff] }
0x2905   : > { %3588 = vadd.xlane.f32.xlu1 %v3587_v3 }
0x291e   : > { %4975 = vrot.lane.b32.xlu1 %v4974_v8, %s6918_s20 }
0x2926   : > { %3649 = vrot.lane.b32.xlu1 %v5011_v21, %s6918_s20 }
0x2978   : > { %v3589_v11 = vpop.xlane.xlu1 %3588 }
0x2979   : > { %v3590_v12 = vmul.f32 %v3589_v11, %v6267_v16 }
0x297b   : > { %v3591_v13 = vsub.f32 %v3586_v2, %v3590_v12 }
0x297d   : > { %v3592_v14 = vmul.f32 %v3591_v13, %v3591_v13 }
0x297f   : > { %v3593_v15 = vsel %vm2762_vm10, %v3592_v14, 0.0  ;;  %v6683_v14 = vld [vmem:[%s6484_s24 + $0x10] sm:$0x3f] }
0x2980   : > { %3594 = vadd.xlane.f32.xlu2 %v3593_v15 }
0x2990   : > { %v4976_v17 = vpop.permute.xlu1 %4975 }
0x2991   : > { %v4977_v6 = vunpack.i.l.bf16 %v4976_v17  ;;  %v4978_v18 = vunpack.i.h.bf16 %v4976_v17 }
0x2993   : > { %3667 = vmatpush.msra.mxu2 %v4977_v6 }
0x2995   : > { %3668 = vmatpush.msra.mxu2 %v4978_v18  ;;  %v3723_v18 = vrot.slane %v6683_v14, 1 }
0x2997   : > { %3669 = vmatpush.msra.mxu2 %v4982_v32 }
0x2998   : > { %v3650_v44 = vpop.permute.xlu1 %3649 }
0x2999   : > { %3670 = vmatpush.msra.mxu2 %v4983_v20 }
0x299b   : > { %3796 = vmatpush.msrb.mxu2 %v4987_v63 }
0x299d   : > { %3797 = vmatpush.msrb.mxu2 %v4988_v0 }
0x29f3   : > { %v3595_v25 = vpop.xlane.xlu2 %3594 }
0x29f4   : > { %v3596_v26 = vmul.f32 %v3595_v25, %v6267_v16 }
0x29f6   : > { %v3597_v27 = vadd.f32 1e-05, %v3596_v26 }
0x29f8   : > { %5079 = vrsqrt.f32 %v3597_v27  ;;  %vm3604_vm13 = vweird.f32 %v3597_v27 }
0x29fe   : > { %v5080_v28 = vpop.eup %5079 }
0x29ff   : > { %v3599_v29 = vmul.f32 %v5080_v28, %v3597_v27  ;;  %vm3605_vm12 = vweird.f32 %v5080_v28 }
0x2a00   : > { %vm3606_vm14 = vmor %vm3604_vm13, %vm3605_vm12  ;;  %vm4143_vm12 = vcmask 286720  }
0x2a01   : > { %v3600_v30 = vmul.f32 %v5080_v28, %v3599_v29 }
0x2a03   : > { %v3601_v31 = vmul.f32 0.5, %v3600_v30 }
0x2a05   : > { %v3602_v33 = vsub.f32 1.5, %v3601_v31 }
0x2a07   : > { %v3603_v34 = vmul.f32 %v5080_v28, %v3602_v33 }
0x2a09   : > { %v3607_v36 = vsel %vm3606_vm14, %v5080_v28, %v3603_v34 }
0x2a0a   : > { %v3608_v37 = vmul.f32 %v3607_v36, %v3591_v13 }
0x2a0c   : > { %v3611_v41 = vmul.f32 %v3609_v35, %v3608_v37 }
0x2a0e   : > { %v3614_v42 = vadd.f32 %v3612_v38, %v3611_v41 }
0x2a10   : > { %4789 = vmatmul.msk.f32.vlgmr.msra.gmra.mxu2 %vm1681_vm2, %v3614_v42 }
0x2a93   : > { %v3672_v45 = vpop.f32.mrf.mxu2 }
0x2a94   : > { %v3673_v46 = vadd.f32 %v3672_v45, %v3650_v44 }
0x2a96   : > { %4790 = vmatmul.msk.f32.vlgmr.msrb.gmra.mxu3 %vm1681_vm2, %v3673_v46 }
0x2b19   : > { %v3695_v48 = vpop.f32.mrf.mxu3 }
0x2b1a   : > { %v3696_v49 = vadd.f32 %v4788_v47, %v3695_v48 }
0x2b1c   : > { %v3698_v50 = vadd.f32 %v3696_v49, %v3614_v42 }
0x2b1e   : > { %v3699_v40 = vsel %vm2762_vm10, %v3698_v50, 0.0 }
0x2b1f   : > { %3700 = vadd.xlane.f32.xlu1 %v3699_v40 }
0x2b92   : > { %v3701_v55 = vpop.xlane.xlu1 %3700 }
0x2b93   : > { %v3702_v56 = vmul.f32 %v3701_v55, %v6267_v16  ;;  %v4797_v55 = vld [vmem:[%s6114_s12 + $0x48] sm:$0xff] }
0x2b95   : > { %v3703_v57 = vsub.f32 %v3698_v50, %v3702_v56  ;;  %v4796_v56 = vld [vmem:[%s6114_s12 + $0x40] sm:$0xff] }
0x2b97   : > { %v3704_v58 = vmul.f32 %v3703_v57, %v3703_v57 }
0x2b99   : > { %v3705_v59 = vsel %vm2762_vm10, %v3704_v58, 0.0 }
0x2b9a   : > { %3706 = vadd.xlane.f32.xlu2 %v3705_v59 }
0x2bb2   : > { %4990 = vrot.lane.b32.xlu2 %v4989_v60, %s6917_s8  ;;  %v4800_v60 = vld [vmem:[%s6118_s14 + $0x2] sm:$0x1] }
0x2c0d   : > { %v3707_v2 = vpop.xlane.xlu2 %3706 }
0x2c0e   : > { %v3708_v3 = vmul.f32 %v3707_v2, %v6267_v16 }
0x2c10   : > { %v3709_v4 = vadd.f32 1e-05, %v3708_v3 }
0x2c12   : > { %5081 = vrsqrt.f32 %v3709_v4  ;;  %vm3716_vm0 = vweird.f32 %v3709_v4 }
0x2c15   : > { %v4991_v5 = vpop.permute.xlu2 %4990 }
0x2c16   : > { %v4993_v7 = vunpack.i.h.bf16 %v4991_v5  ;;  %v4992_v8 = vunpack.i.l.bf16 %v4991_v5 }
0x2c18   : > { %v5082_v9 = vpop.eup %5081  ;;  %3798 = vmatpush.msrb.mxu2 %v4992_v8  ;;  %v4813_v8 = vld [vmem:[%s6124_s13 + $0x58] sm:$0xff] }
0x2c19   : > { %v3711_v10 = vmul.f32 %v5082_v9, %v3709_v4  ;;  %vm3717_vm15 = vweird.f32 %v5082_v9 }
0x2c1a   : > { %3799 = vmatpush.msrb.mxu2 %v4993_v7  ;;  %vm3718_vm1 = vmor %vm3716_vm0, %vm3717_vm15 }
0x2c1b   : > { %v3712_v11 = vmul.f32 %v5082_v9, %v3711_v10  ;;  %4802 = vmatmul.msk.f32.vlgmr.msrb.gmra.mxu2 %vm1681_vm2, %v6500_v62  ;;  %v3782_v62 = vpop.permute.xlu0 %3781  ;;  %v4811_v10 = vld [vmem:[%s6124_s13 + $0x48] sm:$0xff] }
0x2c1d   : > { %v3713_v12 = vmul.f32 0.5, %v3712_v11  ;;  %v4810_v11 = vld [vmem:[%s6124_s13 + $0x40] sm:$0xff] }
0x2c1f   : > { %v3714_v13 = vsub.f32 1.5, %v3713_v12  ;;  %v4823_v12 = vld [vmem:[%s6539_s10 + $0xb8] sm:$0xff] }
0x2c21   : > { %v3715_v15 = vmul.f32 %v5082_v9, %v3714_v13  ;;  %v4822_v13 = vld [vmem:[%s6539_s10 + $0xb0] sm:$0xff] }
0x2c23   : > { %v3719_v17 = vsel %vm3718_vm1, %v5082_v9, %v3715_v15  ;;  %v4812_v9 = vld [vmem:[%s6124_s13 + $0x50] sm:$0xff]  ;;  %v4821_v15 = vld [vmem:[%s6539_s10 + $0xa8] sm:$0xff]  ;;  %s6926_s13 = sld [smem:[#allocation65_spill]] }
0x2c24   : > { %v3720_v6 = vmul.f32 %v3719_v17, %v3703_v57 }
0x2c26   : > { %v3721_v19 = vmul.f32 %v6683_v14, %v3720_v6 }
0x2c28   : > { %v6687_v32 = vadd.f32 %v3723_v18, %v3721_v19  ;;  %v4820_v18 = vld [vmem:[%s6539_s10 + $0xa0] sm:$0xff] }
0x2c2a   : > { %4801 = vmatmul.msk.f32.vlgmr.msra.gmra.mxu0 %vm1681_vm2, %v6687_v32 }
0x2c9e   : > { %v3801_v20 = vpop.f32.mrf.mxu2 }
0x2c9f   : > { %v3802_v21 = vadd.f32 %v3801_v20, %v3782_v62 }
0x2ca1   : > { %3870 = vrot.lane.b32.xlu0 %v3802_v21, %s6914_s17  ;;  %4803 = vmatpush.xpose.msk.msra.mxu3 %vm1708_vm3, %v3802_v21 }
0x2ca5   : > { %3954 = vmatpush.msrb.mxu3 %v4799_v54 }
0x2ca7   : > { %v3760_v23 = vpop.f32.mrf.mxu0  ;;  %3955 = vmatpush.msrb.mxu3 %v4798_v39 }
0x2ca8   : > { %v3761_v24 = vadd.f32 %v4795_v22, %v3760_v23 }
0x2ca9   : > { %3956 = vmatpush.msrb.mxu3 %v4797_v55 }
0x2caa   : > { %3868 = vrot.lane.b32.xlu0 %v3761_v24, %s6914_s17  ;;  %4804 = vmatmul.msk.f32.vlgmr.msra.gmra.mxu3 %vm1708_vm3, %v3761_v24 }
0x2cab   : > { %3957 = vmatpush.msrb.mxu3 %v4796_v56 }
0x2d13   : > { %v3871_v25 = vpop.permute.xlu0 %3870 }
0x2d14   : > { %4806 = vmatpush.xpose.msk.msrb.mxu1 %vm1708_vm3, %v3871_v25  ;;  %v3985_v25 = vrot.slane %v6683_v14, 2 }
0x2d18   : > { %4044 = vmatpush.msra.mxu1 %v4823_v12 }
0x2d1a   : > { %4045 = vmatpush.msra.mxu1 %v4822_v13 }
0x2d1c   : > { %v3869_v26 = vpop.permute.xlu0 %3868  ;;  %4046 = vmatpush.msra.mxu1 %v4821_v15 }
0x2d1d   : > { %4807 = vmatmul.msk.f32.vlgmr.msrb.gmra.mxu1 %vm1708_vm3, %v3869_v26 }
0x2d1e   : > { %4047 = vmatpush.msra.mxu1 %v4820_v18 }
0x2d2d   : > { %v3827_v27 = vpop.f32.mrf.mxu3 }
0x2d2e   : > { %v3830_v28 = vmul.f32 0.25, %v3827_v27 }
0x2d30   : > { %v3831_v29 = vsel %vm2894_vm7, %v3830_v28, -inf }
0x2d31   : > { %3832 = vmax.xlane.f32.xlu0 %v3831_v29 }
0x2d9a   : > { %v3893_v30 = vpop.f32.mrf.mxu1 }
0x2d9b   : > { %v3896_v31 = vmul.f32 0.25, %v3893_v30 }
0x2d9d   : > { %v3897_v33 = vsel %vm2894_vm7, %v3896_v31, -inf }
0x2d9e   : > { %3898 = vmax.xlane.f32.xlu2 %v3897_v33  ;;  %v4817_v33 = vld [vmem:[%s6539_s10 + $0x88] sm:$0xff] }
0x2da4   : > { %v3833_v42 = vpop.xlane.xlu0 %3832 }
0x2da5   : > { %v3834_v43 = vsub.f32 %v3830_v28, %v3833_v42  ;;  %v3988_v28 = vrot.slane %v6683_v14, 3 }
0x2da7   : > { %v3835_v44 = vmul.f32 1.442695, %v3834_v43 }
0x2db6   : > { %3842 = vrot.lane.b32.xlu2 %v3802_v21, %s6917_s8 }
0x2e11   : > { %v3899_v34 = vpop.xlane.xlu2 %3898 }
0x2e12   : > { %v3900_v35 = vsub.f32 %v3896_v31, %v3899_v34  ;;  %v4818_v31 = vld [vmem:[%s6539_s10 + $0x90] sm:$0xff]  ;;  %v4816_v34 = vld [vmem:[%s6539_s10 + $0x80] sm:$0xff] }
0x2e14   : > { %v3901_v36 = vmul.f32 1.442695, %v3900_v35  ;;  %v4814_v35 = vld [vmem:[%s6128_s0 + $0x2] sm:$0x1]  ;;  %s1589_s0 = scalar_lea.vmem %s6926_s13, %s6933_s30 }
0x2e16   : > { %5083 = vpow2.f32 %v3901_v36 }
0x2e17   : > { %5085 = vpow2.f32 %v3835_v44 }
0x2e19   : > { %v3843_v37 = vpop.permute.xlu2 %3842 }
0x2e1a   : > { %3863 = vmatpush.msrb.mxu0 %v3843_v37 }
0x2e1c   : > { %v5084_v38 = vpop.eup %5083  ;;  %4013 = vmatpush.msra.mxu0 %v4813_v8 }
0x2e1d   : > { %v3903_v41 = vsel %vm2894_vm7, %v5084_v38, 0.0  ;;  %v5086_v45 = vpop.eup %5085 }
0x2e1e   : > { %3904 = vadd.xlane.f32.xlu1 %v3903_v41  ;;  %v3837_v46 = vsel %vm2894_vm7, %v5086_v45, 0.0  ;;  %4014 = vmatpush.msra.mxu0 %v4812_v9  ;;  %v4824_v41 = vld [vmem:[%s6136_s2 + $0x2] sm:$0x1]  ;;  %s4829_s2 = sshll.u32 %s6933_s30, 5 }
0x2e1f   : > { %s1586_s11 = scalar_lea.vmem %s6925_s28, %s4829_s2 }
0x2e20   : > { %4015 = vmatpush.msra.mxu0 %v4811_v10  ;;  %v4117_v8 = vld [vmem:[%s1586_s11 + $0x18] sm:$0xff]  ;;  %v4115_v9 = vld [vmem:[%s1586_s11 + $0x8] sm:$0xff]  ;;  %v4114_v10 = vld [vmem:[%s1586_s11] sm:$0xff] }
0x2e22   : > { %4016 = vmatpush.msra.mxu0 %v4810_v11 }
0x2e37   : > { %3908 = vrot.lane.b32.xlu1 %v3802_v21, %s6915_s5  ;;  %s6927_s5 = sld [smem:[#allocation66_spill]] }
0x2e61   : > { %3838 = vadd.xlane.f32.xlu1 %v3837_v46 }
0x2e91   : > { %v3905_v47 = vpop.xlane.xlu1 %3904 }
0x2e92   : > { %5087 = vrcp.f32 %v3905_v47 }
0x2e98   : > { %v5088_v48 = vpop.eup %5087 }
0x2e99   : > { %v3907_v49 = vmul.f32 %v5088_v48, %v5084_v38 }
0x2ea9   : > { %v3909_v50 = vpop.permute.xlu1 %3908 }
0x2eaa   : > { %3929 = vmatpush.msra.mxu2 %v3909_v50 }
0x2eab   : > { %4808 = vmatmul.msk.f32.vlgmr.msra.gmra.mxu2 %vm1734_vm4, %v3907_v49 }
0x2eac   : > { %4134 = vmatpush.msrb.mxu2 %v4117_v8 }
0x2ed4   : > { %v3839_v40 = vpop.xlane.xlu1 %3838 }
0x2ed5   : > { %5089 = vrcp.f32 %v3839_v40 }
0x2edb   : > { %v5090_v51 = vpop.eup %5089 }
0x2edc   : > { %v3841_v52 = vmul.f32 %v5090_v51, %v5086_v45 }
0x2ede   : > { %4805 = vmatmul.msk.f32.vlgmr.msrb.gmra.mxu0 %vm1734_vm4, %v3841_v52 }
0x2f2e   : > { %v3931_v53 = vpop.f32.mrf.mxu2 }
0x2f2f   : > { %3935 = vrot.lane.b32.xlu0 %v3931_v53, %s6919_s1 }
0x2f5b   : > { %v3865_v57 = vpop.f32.mrf.mxu0 }
0x2fa1   : > { %v3936_v58 = vpop.permute.xlu0 %3935 }
0x2fa2   : > { %v3938_v59 = vsel %vm1708_vm3, %v3865_v57, %v3936_v58  ;;  %v4079_v58 = vrot.slane %v6683_v14, 4 }
0x2fa3   : > { %4809 = vmatmul.msk.f32.vlgmr.msrb.gmra.mxu3 %vm1681_vm2, %v3938_v59 }
0x3026   : > { %v3959_v61 = vpop.f32.mrf.mxu3 }
0x3027   : > { %v3960_v63 = vadd.f32 %v4800_v60, %v3959_v61  ;;  %v4082_v61 = vrot.slane %v6683_v14, 5  ;;  %v4116_v14 = vld [vmem:[%s1586_s11 + $0x10] sm:$0xff] }
0x3028   : > { %4135 = vmatpush.msrb.mxu2 %v4116_v14 }
0x3029   : > { %v3962_v0 = vadd.f32 %v3960_v63, %v6687_v32  ;;  %v4819_v32 = vld [vmem:[%s6539_s10 + $0x98] sm:$0xff] }
0x302a   : > { %4048 = vmatpush.msra.mxu1 %v4819_v32  ;;  %4136 = vmatpush.msrb.mxu2 %v4115_v9 }
0x302b   : > { %v3963_v1 = vsel %vm2762_vm10, %v3962_v0, 0.0 }
0x302c   : > { %3964 = vadd.xlane.f32.xlu0 %v3963_v1  ;;  %4049 = vmatpush.msra.mxu1 %v4818_v31 }
0x302d   : > { %4137 = vmatpush.msrb.mxu2 %v4114_v10 }
0x302e   : > { %4050 = vmatpush.msra.mxu1 %v4817_v33 }
0x3030   : > { %4051 = vmatpush.msra.mxu1 %v4816_v34 }
0x309f   : > { %v3965_v2 = vpop.xlane.xlu0 %3964 }
0x30a0   : > { %v3966_v3 = vmul.f32 %v3965_v2, %v6267_v16 }
0x30a2   : > { %v3967_v4 = vsub.f32 %v3962_v0, %v3966_v3 }
0x30a4   : > { %v3968_v5 = vmul.f32 %v3967_v4, %v3967_v4 }
0x30a6   : > { %v3969_v7 = vsel %vm2762_vm10, %v3968_v5, 0.0 }
0x30a7   : > { %3970 = vadd.xlane.f32.xlu2 %v3969_v7 }
0x311a   : > { %v3971_v17 = vpop.xlane.xlu2 %3970 }
0x311b   : > { %v3972_v6 = vmul.f32 %v3971_v17, %v6267_v16 }
0x311d   : > { %v3973_v19 = vadd.f32 1e-05, %v3972_v6 }
0x311f   : > { %5091 = vrsqrt.f32 %v3973_v19  ;;  %vm3980_vm4 = vweird.f32 %v3973_v19 }
0x3125   : > { %v5092_v62 = vpop.eup %5091 }
0x3126   : > { %v3975_v20 = vmul.f32 %v5092_v62, %v3973_v19  ;;  %vm3981_vm3 = vweird.f32 %v5092_v62 }
0x3127   : > { %vm3982_vm7 = vmor %vm3980_vm4, %vm3981_vm3 }
0x3128   : > { %v3976_v21 = vmul.f32 %v5092_v62, %v3975_v20 }
0x312a   : > { %v3977_v22 = vmul.f32 0.5, %v3976_v21 }
0x312c   : > { %v3978_v23 = vsub.f32 1.5, %v3977_v22 }
0x312e   : > { %v3979_v24 = vmul.f32 %v5092_v62, %v3978_v23 }
0x3130   : > { %v3983_v26 = vsel %vm3982_vm7, %v5092_v62, %v3979_v24  ;;  %v5097_v62 = vld [vmem:[%s6139_s6] sm:$0xf]  ;;  %s1592_s6 = scalar_lea.vmem %s6927_s5, %s6933_s30 }
0x3131   : > { %v3984_v27 = vmul.f32 %v3983_v26, %v3967_v4  ;;  %v4108_v20 = vrot.slane %v5097_v62, 2  ;;  %v4111_v23 = vrot.slane %v5097_v62, 3 }
0x3133   : > { %v3987_v29 = vmul.f32 %v3985_v25, %v3984_v27  ;;  %v4118_v25 = vld [vmem:[%s1589_s0] sm:$0x1] }
0x3135   : > { %v3990_v30 = vadd.f32 %v3988_v28, %v3987_v29 }
0x3137   : > { %4815 = vmatmul.msk.f32.vlgmr.msra.gmra.mxu0 %vm1681_vm2, %v3990_v30 }
0x31b4   : > { %v4018_v36 = vpop.f32.mrf.mxu0 }
0x31b5   : > { %v4019_v37 = vadd.f32 %v4814_v35, %v4018_v36 }
0x31b7   : > { %v4021_v38 = vmax.f32 %v4019_v37, 0.0 }
0x31b9   : > { %4825 = vmatmul.msk.f32.vlgmr.msra.gmra.mxu1 %vm1947_vm9, %v4021_v38 }
0x3236   : > { %v4053_v42 = vpop.f32.mrf.mxu1 }
0x3237   : > { %v4054_v43 = vadd.f32 %v4824_v41, %v4053_v42 }
0x3239   : > { %v4056_v44 = vadd.f32 %v4054_v43, %v3990_v30 }
0x323b   : > { %v4057_v45 = vsel %vm2762_vm10, %v4056_v44, 0.0 }
0x323c   : > { %4058 = vadd.xlane.f32.xlu1 %v4057_v45 }
0x32af   : > { %v4059_v46 = vpop.xlane.xlu1 %4058 }
0x32b0   : > { %v4060_v47 = vmul.f32 %v4059_v46, %v6267_v16 }
0x32b2   : > { %v4061_v48 = vsub.f32 %v4056_v44, %v4060_v47 }
0x32b4   : > { %v4062_v49 = vmul.f32 %v4061_v48, %v4061_v48 }
0x32b6   : > { %v4063_v50 = vsel %vm2762_vm10, %v4062_v49, 0.0 }
0x32b7   : > { %4064 = vadd.xlane.f32.xlu1 %v4063_v50 }
0x332a   : > { %v4065_v40 = vpop.xlane.xlu1 %4064 }
0x332b   : > { %v4066_v51 = vmul.f32 %v4065_v40, %v6267_v16 }
0x332d   : > { %v4067_v52 = vadd.f32 1e-05, %v4066_v51 }
0x332f   : > { %5093 = vrsqrt.f32 %v4067_v52  ;;  %vm4074_vm5 = vweird.f32 %v4067_v52 }
0x3335   : > { %v5094_v53 = vpop.eup %5093 }
0x3336   : > { %v4069_v54 = vmul.f32 %v5094_v53, %v4067_v52  ;;  %vm4075_vm9 = vweird.f32 %v5094_v53 }
0x3337   : > { %vm4076_vm6 = vmor %vm4074_vm5, %vm4075_vm9 }
0x3338   : > { %v4070_v39 = vmul.f32 %v5094_v53, %v4069_v54 }
0x333a   : > { %v4071_v55 = vmul.f32 0.5, %v4070_v39 }
0x333c   : > { %v4072_v56 = vsub.f32 1.5, %v4071_v55 }
0x333e   : > { %v4073_v57 = vmul.f32 %v5094_v53, %v4072_v56 }
0x3340   : > { %v4077_v59 = vsel %vm4076_vm6, %v5094_v53, %v4073_v57 }
0x3341   : > { %v4078_v60 = vmul.f32 %v4077_v59, %v4061_v48 }
0x3343   : > { %v4081_v63 = vmul.f32 %v4079_v58, %v4078_v60 }
0x3345   : > { %v4084_v0 = vadd.f32 %v4082_v61, %v4081_v63 }
0x3347   : > { %v4085_v1 = vsel %vm2762_vm10, %v4084_v0, 0.0 }
0x3348   : > { %4086 = vadd.xlane.f32.xlu1 %v4085_v1 }
0x33bb   : > { %v4087_v2 = vpop.xlane.xlu1 %4086 }
0x33bc   : > { %v4088_v3 = vmul.f32 %v4087_v2, %v6267_v16 }
0x33be   : > { %v4089_v4 = vsub.f32 %v4084_v0, %v4088_v3 }
0x33c0   : > { %v4090_v5 = vmul.f32 %v4089_v4, %v4089_v4 }
0x33c2   : > { %v4091_v7 = vsel %vm2762_vm10, %v4090_v5, 0.0 }
0x33c3   : > { %4092 = vadd.xlane.f32.xlu1 %v4091_v7 }
0x3436   : > { %v4093_v11 = vpop.xlane.xlu1 %4092 }
0x3437   : > { %v4094_v12 = vmul.f32 %v4093_v11, %v6267_v16 }
0x3439   : > { %v4095_v13 = vadd.f32 1e-05, %v4094_v12 }
0x343b   : > { %5095 = vrsqrt.f32 %v4095_v13  ;;  %vm4102_vm8 = vweird.f32 %v4095_v13 }
0x3441   : > { %v5096_v15 = vpop.eup %5095 }
0x3442   : > { %v4097_v17 = vmul.f32 %v5096_v15, %v4095_v13  ;;  %vm4103_vm10 = vweird.f32 %v5096_v15 }
0x3443   : > { %vm4104_vm11 = vmor %vm4102_vm8, %vm4103_vm10 }
0x3444   : > { %v4098_v6 = vmul.f32 %v5096_v15, %v4097_v17 }
0x3446   : > { %v4099_v18 = vmul.f32 0.5, %v4098_v6 }
0x3448   : > { %v4100_v19 = vsub.f32 1.5, %v4099_v18 }
0x344a   : > { %v4101_v32 = vmul.f32 %v5096_v15, %v4100_v19 }
0x344c   : > { %v4105_v21 = vsel %vm4104_vm11, %v5096_v15, %v4101_v32 }
0x344d   : > { %v4106_v22 = vmul.f32 %v4105_v21, %v4089_v4 }
0x344f   : > { %v4110_v24 = vmul.f32 %v4108_v20, %v4106_v22 }
0x3451   : > { %v4113_v16 = vadd.f32 %v4111_v23, %v4110_v24 }
0x3453   : > { %4826 = vmatmul.msk.f32.vlgmr.msrb.gmra.mxu2 %vm1681_vm2, %v4113_v16 }
0x34d6   : > { %v4139_v26 = vpop.f32.mrf.mxu2 }
0x34d7   : > { %v4140_v27 = vadd.f32 %v4139_v26, %v4118_v25 }
0x34d9   : > { %v4142_v28 = vmax.f32 %v4140_v27, 0.0 }
0x34db   : > { %4144 = vst.msk [vmem:[%s1592_s6] sm:$0x1] %vm4143_vm12, %v4142_v28 }
0x34dc PF: > { %s6928_s30 = sld [smem:[#allocation35_spill]] }
0x34dd   : > { %s6929_s8 = sld [smem:[#allocation32_spill]] }
0x34de   : > { %s6930_s5 = sld [smem:[#allocation33_spill]] }
0x34df   : > { %s6931_s9 = sld [smem:[#allocation36_spill]] }
0x34e2   : > { %p59_p6 = scmp.ge.s32.totalorder %s6928_s30, 4  }
0x34e4   :  { %61 = sbr.rel (!%p59_p6) target bundleno = 47 (0x2f), region = 406 }
0x34e9   :  { %4162 = vsyncpa [#allocation3], 1 }
0x34ea   :  { %4164 = vsyncpa [#allocation3 + $0x1], 1 }
0x34eb   :  { %4165 = vsyncpa [#allocation5], 1 }
0x34ec   :  { %4167 = vsyncpa [#allocation5 + $0x1], 1 }
0x34ed   :  { %4168 = vsyncpa [#allocation8], 1 }
0x34ee   :  { %4170 = vsyncpa [#allocation8 + $0x1], 1 }
0x34ef   :  { %4171 = vsyncpa [#allocation11], 1 }
0x34f0   :  { %4173 = vsyncpa [#allocation11 + $0x1], 1 }
0x34f1   :  { %4174 = vsyncpa [#allocation14], 1 }
0x34f2   :  { %4176 = vsyncpa [#allocation14 + $0x1], 1 }
0x34f3   :  { %4177 = vsyncpa [#allocation17], 1 }
0x34f4   :  { %4179 = vsyncpa [#allocation17 + $0x1], 1 }
0x34f5   :  { %4180 = vsyncpa [#allocation20], 1 }
0x34f6   :  { %4182 = vsyncpa [#allocation20 + $0x1], 1 }
0x34f7   :  { %4183 = vsyncpa [#allocation23], 1 }
0x34f8   :  { %4185 = vsyncpa [#allocation23 + $0x1], 1 }

</bundles_post_ra>
